<compile_context>
chip_gen: v7x
topology: tpu7x:2x2x1
jax: 0.10.0
libtpu: 0.0.40
codegen_flags: <defaults>
</compile_context>

<pallas_src>
import functools

import jax
import jax.numpy as jnp
from jax.experimental import pallas as pl
from jax.experimental.pallas import tpu as pltpu

LANE = 128                                   # feature dims padded to multiples of 128
NODE_TILE = 512                              # node tile (rows of A / rows of XW)
_VMEM_LIMIT = 48 * 1024 * 1024               # safe on v7x (64 MiB/TC); fine on v5e/v6e
_XW_RESIDENT_MAX_BYTES = 12 * 1024 * 1024    # keep XW resident (x2 buffers) under budget


def _round_up(v, m):
    return (v + m - 1) // m * m


def _pad2d(x, rows, cols):
    return jnp.pad(x, ((0, rows - x.shape[0]), (0, cols - x.shape[1])))


# ---------------------------------------------------------------------------
# Kernels
# ---------------------------------------------------------------------------
def _xw_kernel(x_ref, w_ref, o_ref):
    # XW tile = X_rowtile @ W   (bf16 inputs, f32 MXU accumulation, bf16 store)
    o_ref[...] = jnp.dot(
        x_ref[...], w_ref[...], preferred_element_type=jnp.float32
    ).astype(o_ref.dtype)


def _aggregate_kernel(counts_ref, ktiles_ref, a_ref, xw_ref, b_ref, o_ref,
                      acc_ref=None, *, apply_relu, xw_resident):
    """out_tile = [relu]( sum_k A[i, kt_k] @ XW[kt_k] + b ).

    counts_ref[i]    : number of non-empty A tiles in row-tile i (SMEM, prefetched)
    ktiles_ref[i, k] : column-tile index of the k-th non-empty tile; tail entries
                       repeat the last valid index so the pipelined DMA dedups.
    For the f32-output layer, acc_ref is None and the resident output tile itself
    is used as the accumulator.
    """
    acc = o_ref if acc_ref is None else acc_ref
    i = pl.program_id(0)
    k = pl.program_id(1)

    @pl.when(k == 0)
    def _():
        acc[...] = jnp.zeros(acc.shape, acc.dtype)

    @pl.when(k < counts_ref[i])           # skip compute for empty A_hat tiles
    def _():
        kt = ktiles_ref[i, k]
        xw = xw_ref[kt] if xw_resident else xw_ref[0]
        acc[...] += jnp.dot(a_ref[...], xw, preferred_element_type=jnp.float32)

    @pl.when(k == pl.num_programs(1) - 1)
    def _():
        out = acc[...] + b_ref[...]       # bias broadcast over node rows
        if apply_relu:
            out = jnp.maximum(out, 0.0)
        o_ref[...] = out.astype(o_ref.dtype)


# ---------------------------------------------------------------------------
# One GCNConv layer (operands already padded; A_hat already bf16)
# ---------------------------------------------------------------------------
def gcn_layer(a_bf16, counts, ktiles, h_bf16, w_bf16, b, *, apply_relu, out_dtype,
              xw_resident_max_bytes):
    n_pad = a_bf16.shape[0]
    n_rt = counts.shape[0]
    tm = n_pad // n_rt          # node row tile (== column tile, see prepare_graph)
    tk = tm
    n_kt = n_pad // tk          # total column tiles (for the XW reshape)
    kt_steps = ktiles.shape[1]  # compacted reduction extent (max non-empty tiles/row)
    f_in, f_out = w_bf16.shape

    # ---- stage 1: XW = H @ W  (row-tiled, resident W, bf16 out) ----
    xw = pl.pallas_call(
        _xw_kernel,
        out_shape=jax.ShapeDtypeStruct((n_pad, f_out), jnp.bfloat16),
        grid_spec=pltpu.PrefetchScalarGridSpec(
            num_scalar_prefetch=0,
            grid=(n_rt,),
            in_specs=[
                pl.BlockSpec((tm, f_in), lambda i: (i, 0)),
                pl.BlockSpec((f_in, f_out), lambda i: (0, 0)),   # resident weights
            ],
            out_specs=pl.BlockSpec((tm, f_out), lambda i: (i, 0)),
        ),
        compiler_params=pltpu.CompilerParams(
            dimension_semantics=("parallel",),
            vmem_limit_bytes=_VMEM_LIMIT,
        ),
    )(h_bf16, w_bf16)

    # ---- stage 2: out = [relu](A_hat @ XW + b), block-sparse over A tiles ----
    xw3 = xw.reshape(n_kt, tk, f_out)            # free row-major reshape
    xw_resident = xw3.size * 2 <= xw_resident_max_bytes
    if xw_resident:
        # whole XW in VMEM: constant block index => DMA'd once for the entire grid
        xw_spec = pl.BlockSpec((n_kt, tk, f_out), lambda i, k, cnt, kts: (0, 0, 0))
    else:
        # stream only the non-empty tiles, gathered via the prefetched schedule
        xw_spec = pl.BlockSpec((1, tk, f_out), lambda i, k, cnt, kts: (kts[i, k], 0, 0))

    acc_into_out = out_dtype == jnp.float32      # final layer: accumulate in o_ref
    scratch = [] if acc_into_out else [pltpu.VMEM((tm, f_out), jnp.float32)]

    out = pl.pallas_call(
        functools.partial(_aggregate_kernel, apply_relu=apply_relu,
                          xw_resident=xw_resident),
        out_shape=jax.ShapeDtypeStruct((n_pad, f_out), out_dtype),
        grid_spec=pltpu.PrefetchScalarGridSpec(
            num_scalar_prefetch=2,
            grid=(n_rt, kt_steps),
            in_specs=[
                pl.BlockSpec((tm, tk), lambda i, k, cnt, kts: (i, kts[i, k])),
                xw_spec,
                pl.BlockSpec((1, f_out), lambda i, k, cnt, kts: (0, 0)),
            ],
            out_specs=pl.BlockSpec((tm, f_out), lambda i, k, cnt, kts: (i, 0)),
            scratch_shapes=scratch,
        ),
        compiler_params=pltpu.CompilerParams(
            # row axis parallel (megacore on v7x), reduction axis arbitrary
            dimension_semantics=("parallel", "arbitrary"),
            vmem_limit_bytes=_VMEM_LIMIT,
        ),
    )(counts, ktiles, a_bf16, xw3, b)
    return out


# ---------------------------------------------------------------------------
# Graph preprocessing (once per static graph, hoisted out of the forward path)
# ---------------------------------------------------------------------------
def build_norm_adj(edge_index, num_nodes, n_pad=None):
    """Dense GCNConv normalization D^-1/2 (A + I) D^-1/2, optionally zero-padded."""
    if n_pad is None:
        n_pad = num_nodes
    src, dst = edge_index[0], edge_index[1]
    loop = jnp.arange(num_nodes, dtype=edge_index.dtype)
    src = jnp.concatenate([src, loop])
    dst = jnp.concatenate([dst, loop])
    a = jnp.zeros((n_pad, n_pad), jnp.float32).at[dst, src].add(1.0)
    deg = a.sum(axis=1)
    d_inv_sqrt = jnp.where(deg > 0, jax.lax.rsqrt(jnp.maximum(deg, 1.0)), 0.0)
    return a * d_inv_sqrt[:, None] * d_inv_sqrt[None, :]


def _pick_node_tile(num_nodes):
    n_lane = _round_up(num_nodes, LANE)
    t = min(NODE_TILE, n_lane)
    if n_lane >= 2 * LANE:            # keep >= 2 row tiles (v7x has two TensorCores)
        t = min(t, _round_up(n_lane // 2, LANE))
    return t


def _tile_schedule(a_pad, tile):
    """Per row-tile list of non-empty (tile x tile) column tiles of A_hat."""
    n_pad = a_pad.shape[0]
    n_t = n_pad // tile
    occ = (a_pad.reshape(n_t, tile, n_t, tile) != 0).any(axis=(1, 3))   # (n_t, n_t)
    counts = occ.sum(axis=1).astype(jnp.int32)
    order = jnp.argsort(1 - occ.astype(jnp.int32), axis=1, stable=True).astype(jnp.int32)
    col = jnp.arange(n_t, dtype=jnp.int32)[None, :]
    last = jnp.take_along_axis(order, jnp.maximum(counts - 1, 0)[:, None], axis=1)
    # pad the tail with the last valid tile index so the pipelined DMA dedups
    ktiles = jnp.where(col < counts[:, None], order, last)
    return counts, ktiles


def prepare_graph(edge_index, num_nodes):
    """Padded bf16 normalized adjacency + block-sparse tile schedule (shared by all
    3 layers). Call once per graph; hoist out of the per-inference path."""
    tile = _pick_node_tile(num_nodes)
    n_pad = _round_up(num_nodes, tile)
    a_bf16 = build_norm_adj(edge_index, num_nodes, n_pad).astype(jnp.bfloat16)
    counts, ktiles = _tile_schedule(a_bf16, tile)
    try:    # compact the reduction grid to the worst-case #non-empty tiles per row
        kt_steps = max(int(jnp.max(counts)), 1)
    except Exception:   # traced (called under jit): keep the dense extent
        kt_steps = ktiles.shape[1]
    return a_bf16, counts, ktiles[:, :kt_steps]


# ---------------------------------------------------------------------------
# Full 3-layer forward (padding handled in the wrapper)
# ---------------------------------------------------------------------------
def gcn_forward(params, x, a_bf16, counts, ktiles, *,
                xw_resident_max_bytes=_XW_RESIDENT_MAX_BYTES):
    n, f_in = x.shape
    hidden = params["w1"].shape[1]
    f_out = params["w3"].shape[1]
    n_pad = a_bf16.shape[0]

    f_in_p = _round_up(f_in, LANE)
    hid_p = _round_up(hidden, LANE)
    f_out_p = _round_up(f_out, LANE)

    x_p = _pad2d(x, n_pad, f_in_p).astype(jnp.bfloat16)
    w1 = _pad2d(params["w1"], f_in_p, hid_p).astype(jnp.bfloat16)
    w2 = _pad2d(params["w2"], hid_p, hid_p).astype(jnp.bfloat16)
    w3 = _pad2d(params["w3"], hid_p, f_out_p).astype(jnp.bfloat16)
    b1 = _pad2d(params["b1"], 1, hid_p)
    b2 = _pad2d(params["b2"], 1, hid_p)
    b3 = _pad2d(params["b3"], 1, f_out_p)

    layer = functools.partial(gcn_layer, a_bf16, counts, ktiles,
                              xw_resident_max_bytes=xw_resident_max_bytes)
    # TODO(synk): nn.Dropout(0.2) is identity in eval mode; training-mode RNG dropout
    # is not implemented.
    # TODO(synk): for graphs whose bf16 A_hat fits VMEM, the three layers could share
    # a single pallas_call so A_hat is DMA'd once instead of 3x; kept as per-layer
    # calls (with block-sparse tile skipping) so the kernel also handles large graphs.
    h = layer(x_p, w1, b1, apply_relu=True, out_dtype=jnp.bfloat16)
    h = layer(h, w2, b2, apply_relu=True, out_dtype=jnp.bfloat16)
    out = layer(h, w3, b3, apply_relu=False, out_dtype=jnp.float32)
    return out[:n, :f_out]


def init_params(key, in_feats, hidden_feats, out_feats):
    k1, k2, k3 = jax.random.split(key, 3)

    def glorot(k, fan_in, fan_out):
        scale = jnp.sqrt(6.0 / (fan_in + fan_out))
        return jax.random.uniform(k, (fan_in, fan_out), jnp.float32, -scale, scale)

    return {
        "w1": glorot(k1, in_feats, hidden_feats),
        "b1": jnp.zeros((1, hidden_feats), jnp.float32),
        "w2": glorot(k2, hidden_feats, hidden_feats),
        "b2": jnp.zeros((1, hidden_feats), jnp.float32),
        "w3": glorot(k3, hidden_feats, out_feats),
        "b3": jnp.zeros((1, out_feats), jnp.float32),
    }


# ---------------------------------------------------------------------------
# Pure-JAX reference mirroring the kernel's bf16 casts (f32 accumulation).
# ---------------------------------------------------------------------------
def gcn_forward_ref(params, x, a_hat):
    f32 = jnp.float32
    a = a_hat.astype(jnp.bfloat16).astype(f32)

    def layer(h, w, b, relu):
        hb = h.astype(jnp.bfloat16).astype(f32)
        wb = w.astype(jnp.bfloat16).astype(f32)
        xw = (hb @ wb).astype(jnp.bfloat16).astype(f32)
        o = a @ xw + b
        return jnp.maximum(o, 0.0) if relu else o

    h = layer(x, params["w1"], params["b1"], True)
    h = layer(h, params["w2"], params["b2"], True)
    return layer(h, params["w3"], params["b3"], False)


if __name__ == "__main__":
    # PPI-consistent feature sizes (in=50, out=121, hidden=512) on a small graph.
    # Edges only among nodes 0..99 while 100..199 keep just self-loops, so some
    # 128x128 A_hat tiles are completely empty -> exercises the block-sparse skip.
    # num_nodes=200 / in=50 / out=121 also exercise node + feature padding.
    num_nodes = 200
    in_feats = 50
    hidden_feats = 512
    out_feats = 121
    num_edges = 400

    key = jax.random.PRNGKey(0)
    k_feat, k_src, k_dst, k_par = jax.random.split(key, 4)

    x = jax.random.normal(k_feat, (num_nodes, in_feats), jnp.float32)
    src = jax.random.randint(k_src, (num_edges,), 0, 100, jnp.int32)
    dst = jax.random.randint(k_dst, (num_edges,), 0, 100, jnp.int32)
    # undirected synthetic graph (like the barabasi-albert graphs)
    edge_index = jnp.stack(
        [jnp.concatenate([src, dst]), jnp.concatenate([dst, src])], axis=0
    )

    params = init_params(k_par, in_feats, hidden_feats, out_feats)
    a_bf16, counts, ktiles = prepare_graph(edge_index, num_nodes)   # once per graph

    out = jax.jit(gcn_forward)(params, x, a_bf16, counts, ktiles)
    out = jax.block_until_ready(out)

    ref = gcn_forward_ref(params, x, build_norm_adj(edge_index, num_nodes))
    assert out.shape == (num_nodes, out_feats)
    assert jnp.allclose(out, ref, atol=2e-2, rtol=2e-2), float(
        jnp.max(jnp.abs(out - ref))
    )

    # also exercise the streamed (non-VMEM-resident XW) fallback path
    out_streamed = jax.jit(
        functools.partial(gcn_forward, xw_resident_max_bytes=0)
    )(params, x, a_bf16, counts, ktiles)
    out_streamed = jax.block_until_ready(out_streamed)
    assert jnp.allclose(out_streamed, ref, atol=2e-2, rtol=2e-2)

    print("KERNEL_OK")
</pallas_src>

<mosaic_0001>
module attributes {stable_mosaic.version = 11 : i64} {
  func.func @_xw_kernel(%arg0: i32, %arg1: memref<128x128xbf16, #tpu.memory_space<vmem>>, %arg2: memref<128x512xbf16, #tpu.memory_space<vmem>>, %arg3: memref<128x512xbf16, #tpu.memory_space<vmem>>) attributes {dimension_semantics = [#tpu.dimension_semantics<parallel>], iteration_bounds = array<i64: 2>, scalar_prefetch = 0 : i64, scratch_operands = 0 : i64, tpu.core_type = #tpu.core_type<tc>, window_params = [{transform_indices = @transform_0, window_bounds = array<i64: 128, 128>}, {pipeline_mode = #tpu.pipeline_mode<synchronous>, transform_indices = @transform_1, window_bounds = array<i64: 128, 512>}, {transform_indices = @transform_2, window_bounds = array<i64: 128, 512>}]} {
    %c0 = arith.constant 0 : index
    %c0_0 = arith.constant 0 : index
    %0 = vector.load %arg1[%c0, %c0_0] : memref<128x128xbf16, #tpu.memory_space<vmem>>, vector<128x128xbf16>
    %c0_1 = arith.constant 0 : index
    %c0_2 = arith.constant 0 : index
    %1 = vector.load %arg2[%c0_1, %c0_2] : memref<128x512xbf16, #tpu.memory_space<vmem>>, vector<128x512xbf16>
    %cst = arith.constant dense<0.000000e+00> : vector<128x512xf32>
    %2 = tpu.matmul %0, %1, %cst {dimension_numbers = #tpu.dot_dimension_numbers<[1], [0], [0], [1], [0, 0, 1, 1], [], []>} : vector<128x128xbf16>, vector<128x512xbf16>, vector<128x512xf32> -> vector<128x512xf32>
    %3 = arith.truncf %2 : vector<128x512xf32> to vector<128x512xbf16>
    %c0_3 = arith.constant 0 : index
    %c0_4 = arith.constant 0 : index
    %4 = vector.load %arg3[%c0_3, %c0_4] : memref<128x512xbf16, #tpu.memory_space<vmem>>, vector<128x512xbf16>
    tpu.vector_store %arg3[%c0_3, %c0_4], %3 {strides = array<i32>} : memref<128x512xbf16, #tpu.memory_space<vmem>>, vector<128x512xbf16>,
    return
  }
  func.func @transform_0(%arg0: i32) -> (i32, i32) {
    %c0_i32 = arith.constant 0 : i32
    %c0_i32_0 = arith.constant 0 : i32
    return %arg0, %c0_i32 : i32, i32
  }
  func.func @transform_1(%arg0: i32) -> (i32, i32) {
    %c0_i32 = arith.constant 0 : i32
    %c0_i32_0 = arith.constant 0 : i32
    %c0_i32_1 = arith.constant 0 : i32
    return %c0_i32, %c0_i32_0 : i32, i32
  }
  func.func @transform_2(%arg0: i32) -> (i32, i32) {
    %c0_i32 = arith.constant 0 : i32
    %c0_i32_0 = arith.constant 0 : i32
    return %arg0, %c0_i32 : i32, i32
  }
}

module attributes {stable_mosaic.version = 11 : i64} {
  func.func @_aggregate_kernel(%arg0: i32, %arg1: i32, %arg2: memref<2xi32, #tpu.memory_space<smem>>, %arg3: memref<2x1xi32, #tpu.memory_space<smem>>, %arg4: memref<128x128xbf16, #tpu.memory_space<vmem>>, %arg5: memref<2x128x512xbf16, #tpu.memory_space<vmem>>, %arg6: memref<1x512xf32, #tpu.memory_space<vmem>>, %arg7: memref<128x512xbf16, #tpu.memory_space<vmem>>, %arg8: memref<128x512xf32, #tpu.memory_space<vmem>>) attributes {dimension_semantics = [#tpu.dimension_semantics<parallel>, #tpu.dimension_semantics<arbitrary>], iteration_bounds = array<i64: 2, 1>, scalar_prefetch = 2 : i64, scratch_operands = 1 : i64, tpu.core_type = #tpu.core_type<tc>, window_params = [{transform_indices = @transform_0, window_bounds = array<i64: 128, 128>}, {pipeline_mode = #tpu.pipeline_mode<synchronous>, transform_indices = @transform_1, window_bounds = array<i64: 2, 128, 512>}, {pipeline_mode = #tpu.pipeline_mode<synchronous>, transform_indices = @transform_2, window_bounds = array<i64: 1, 512>}, {transform_indices = @transform_3, window_bounds = array<i64: 128, 512>}]} {
    %c0_i32 = arith.constant 0 : i32
    %0 = arith.cmpi eq, %arg1, %c0_i32 : i32
    %1 = arith.extui %0 : i1 to i32
    %c0_i32_0 = arith.constant 0 : i32
    %2 = arith.cmpi ne, %1, %c0_i32_0 : i32
    scf.if %2 {
      %cst = arith.constant 0.000000e+00 : f32
      %11 = vector.broadcast %cst : f32 to vector<128x512xf32>
      %c0 = arith.constant 0 : index
      %c0_4 = arith.constant 0 : index
      %12 = vector.load %arg8[%c0, %c0_4] : memref<128x512xf32, #tpu.memory_space<vmem>>, vector<128x512xf32>
      tpu.vector_store %arg8[%c0, %c0_4], %11 {strides = array<i32>} : memref<128x512xf32, #tpu.memory_space<vmem>>, vector<128x512xf32>,
    } else {
    }
    %3 = arith.index_cast %arg0 : i32 to index
    %4 = memref.load %arg2[%3] : memref<2xi32, #tpu.memory_space<smem>>
    %5 = arith.cmpi slt, %arg1, %4 : i32
    %6 = arith.extui %5 : i1 to i32
    %c0_i32_1 = arith.constant 0 : i32
    %7 = arith.cmpi ne, %6, %c0_i32_1 : i32
    scf.if %7 {
      %11 = arith.index_cast %arg0 : i32 to index
      %12 = arith.index_cast %arg1 : i32 to index
      %13 = memref.load %arg3[%11, %12] : memref<2x1xi32, #tpu.memory_space<smem>>
      %14 = arith.index_cast %13 : i32 to index
      %c0 = arith.constant 0 : index
      %c0_4 = arith.constant 0 : index
      %15 = vector.load %arg5[%14, %c0, %c0_4] : memref<2x128x512xbf16, #tpu.memory_space<vmem>>, vector<1x128x512xbf16>
      %16 = vector.shape_cast %15 : vector<1x128x512xbf16> to vector<128x512xbf16>
      %c0_5 = arith.constant 0 : index
      %c0_6 = arith.constant 0 : index
      %17 = vector.load %arg8[%c0_5, %c0_6] : memref<128x512xf32, #tpu.memory_space<vmem>>, vector<128x512xf32>
      %c0_7 = arith.constant 0 : index
      %c0_8 = arith.constant 0 : index
      %18 = vector.load %arg4[%c0_7, %c0_8] : memref<128x128xbf16, #tpu.memory_space<vmem>>, vector<128x128xbf16>
      %cst = arith.constant dense<0.000000e+00> : vector<128x512xf32>
      %19 = tpu.matmul %18, %16, %cst {dimension_numbers = #tpu.dot_dimension_numbers<[1], [0], [0], [1], [0, 0, 1, 1], [], []>} : vector<128x128xbf16>, vector<128x512xbf16>, vector<128x512xf32> -> vector<128x512xf32>
      %20 = arith.addf %17, %19 : vector<128x512xf32>
      %c0_9 = arith.constant 0 : index
      %c0_10 = arith.constant 0 : index
      %21 = vector.load %arg8[%c0_9, %c0_10] : memref<128x512xf32, #tpu.memory_space<vmem>>, vector<128x512xf32>
      tpu.vector_store %arg8[%c0_9, %c0_10], %20 {strides = array<i32>} : memref<128x512xf32, #tpu.memory_space<vmem>>, vector<128x512xf32>,
    } else {
    }
    %c0_i32_2 = arith.constant 0 : i32
    %8 = arith.cmpi eq, %arg1, %c0_i32_2 : i32
    %9 = arith.extui %8 : i1 to i32
    %c0_i32_3 = arith.constant 0 : i32
    %10 = arith.cmpi ne, %9, %c0_i32_3 : i32
    scf.if %10 {
      %c0 = arith.constant 0 : index
      %c0_4 = arith.constant 0 : index
      %11 = vector.load %arg8[%c0, %c0_4] : memref<128x512xf32, #tpu.memory_space<vmem>>, vector<128x512xf32>
      %c0_5 = arith.constant 0 : index
      %c0_6 = arith.constant 0 : index
      %12 = vector.load %arg6[%c0_5, %c0_6] : memref<1x512xf32, #tpu.memory_space<vmem>>, vector<1x512xf32>
      %13 = vector.broadcast %12 : vector<1x512xf32> to vector<128x512xf32>
      %14 = arith.addf %11, %13 : vector<128x512xf32>
      %cst = arith.constant 0.000000e+00 : f32
      %15 = vector.broadcast %cst : f32 to vector<128x512xf32>
      %16 = arith.maximumf %14, %15 : vector<128x512xf32>
      %17 = arith.truncf %16 : vector<128x512xf32> to vector<128x512xbf16>
      %c0_7 = arith.constant 0 : index
      %c0_8 = arith.constant 0 : index
      %18 = vector.load %arg7[%c0_7, %c0_8] : memref<128x512xbf16, #tpu.memory_space<vmem>>, vector<128x512xbf16>
      tpu.vector_store %arg7[%c0_7, %c0_8], %17 {strides = array<i32>} : memref<128x512xbf16, #tpu.memory_space<vmem>>, vector<128x512xbf16>,
    } else {
    }
    return
  }
  func.func @transform_0(%arg0: i32, %arg1: i32, %arg2: memref<2xi32, #tpu.memory_space<smem>>, %arg3: memref<2x1xi32, #tpu.memory_space<smem>>) -> (i32, i32) {
    %0 = arith.index_cast %arg0 : i32 to index
    %1 = arith.index_cast %arg1 : i32 to index
    %2 = memref.load %arg3[%0, %1] : memref<2x1xi32, #tpu.memory_space<smem>>
    %c0_i32 = arith.constant 0 : i32
    return %arg0, %2 : i32, i32
  }
  func.func @transform_1(%arg0: i32, %arg1: i32, %arg2: memref<2xi32, #tpu.memory_space<smem>>, %arg3: memref<2x1xi32, #tpu.memory_space<smem>>) -> (i32, i32, i32) {
    %c0_i32 = arith.constant 0 : i32
    %c0_i32_0 = arith.constant 0 : i32
    %c0_i32_1 = arith.constant 0 : i32
    %c0_i32_2 = arith.constant 0 : i32
    return %c0_i32, %c0_i32_0, %c0_i32_1 : i32, i32, i32
  }
  func.func @transform_2(%arg0: i32, %arg1: i32, %arg2: memref<2xi32, #tpu.memory_space<smem>>, %arg3: memref<2x1xi32, #tpu.memory_space<smem>>) -> (i32, i32) {
    %c0_i32 = arith.constant 0 : i32
    %c0_i32_0 = arith.constant 0 : i32
    %c0_i32_1 = arith.constant 0 : i32
    return %c0_i32, %c0_i32_0 : i32, i32
  }
  func.func @transform_3(%arg0: i32, %arg1: i32, %arg2: memref<2xi32, #tpu.memory_space<smem>>, %arg3: memref<2x1xi32, #tpu.memory_space<smem>>) -> (i32, i32) {
    %c0_i32 = arith.constant 0 : i32
    %c0_i32_0 = arith.constant 0 : i32
    return %arg0, %c0_i32 : i32, i32
  }
}

module attributes {stable_mosaic.version = 11 : i64} {
  func.func @_xw_kernel(%arg0: i32, %arg1: memref<128x512xbf16, #tpu.memory_space<vmem>>, %arg2: memref<512x512xbf16, #tpu.memory_space<vmem>>, %arg3: memref<128x512xbf16, #tpu.memory_space<vmem>>) attributes {dimension_semantics = [#tpu.dimension_semantics<parallel>], iteration_bounds = array<i64: 2>, scalar_prefetch = 0 : i64, scratch_operands = 0 : i64, tpu.core_type = #tpu.core_type<tc>, window_params = [{transform_indices = @transform_0, window_bounds = array<i64: 128, 512>}, {pipeline_mode = #tpu.pipeline_mode<synchronous>, transform_indices = @transform_1, window_bounds = array<i64: 512, 512>}, {transform_indices = @transform_2, window_bounds = array<i64: 128, 512>}]} {
    %c0 = arith.constant 0 : index
    %c0_0 = arith.constant 0 : index
    %0 = vector.load %arg1[%c0, %c0_0] : memref<128x512xbf16, #tpu.memory_space<vmem>>, vector<128x512xbf16>
    %c0_1 = arith.constant 0 : index
    %c0_2 = arith.constant 0 : index
    %1 = vector.load %arg2[%c0_1, %c0_2] : memref<512x512xbf16, #tpu.memory_space<vmem>>, vector<512x512xbf16>
    %cst = arith.constant dense<0.000000e+00> : vector<128x512xf32>
    %2 = tpu.matmul %0, %1, %cst {dimension_numbers = #tpu.dot_dimension_numbers<[1], [0], [0], [1], [0, 0, 1, 1], [], []>} : vector<128x512xbf16>, vector<512x512xbf16>, vector<128x512xf32> -> vector<128x512xf32>
    %3 = arith.truncf %2 : vector<128x512xf32> to vector<128x512xbf16>
    %c0_3 = arith.constant 0 : index
    %c0_4 = arith.constant 0 : index
    %4 = vector.load %arg3[%c0_3, %c0_4] : memref<128x512xbf16, #tpu.memory_space<vmem>>, vector<128x512xbf16>
    tpu.vector_store %arg3[%c0_3, %c0_4], %3 {strides = array<i32>} : memref<128x512xbf16, #tpu.memory_space<vmem>>, vector<128x512xbf16>,
    return
  }
  func.func @transform_0(%arg0: i32) -> (i32, i32) {
    %c0_i32 = arith.constant 0 : i32
    %c0_i32_0 = arith.constant 0 : i32
    return %arg0, %c0_i32 : i32, i32
  }
  func.func @transform_1(%arg0: i32) -> (i32, i32) {
    %c0_i32 = arith.constant 0 : i32
    %c0_i32_0 = arith.constant 0 : i32
    %c0_i32_1 = arith.constant 0 : i32
    return %c0_i32, %c0_i32_0 : i32, i32
  }
  func.func @transform_2(%arg0: i32) -> (i32, i32) {
    %c0_i32 = arith.constant 0 : i32
    %c0_i32_0 = arith.constant 0 : i32
    return %arg0, %c0_i32 : i32, i32
  }
}

module attributes {stable_mosaic.version = 11 : i64} {
  func.func @_xw_kernel(%arg0: i32, %arg1: memref<128x512xbf16, #tpu.memory_space<vmem>>, %arg2: memref<512x128xbf16, #tpu.memory_space<vmem>>, %arg3: memref<128x128xbf16, #tpu.memory_space<vmem>>) attributes {dimension_semantics = [#tpu.dimension_semantics<parallel>], iteration_bounds = array<i64: 2>, scalar_prefetch = 0 : i64, scratch_operands = 0 : i64, tpu.core_type = #tpu.core_type<tc>, window_params = [{transform_indices = @transform_0, window_bounds = array<i64: 128, 512>}, {pipeline_mode = #tpu.pipeline_mode<synchronous>, transform_indices = @transform_1, window_bounds = array<i64: 512, 128>}, {transform_indices = @transform_2, window_bounds = array<i64: 128, 128>}]} {
    %c0 = arith.constant 0 : index
    %c0_0 = arith.constant 0 : index
    %0 = vector.load %arg1[%c0, %c0_0] : memref<128x512xbf16, #tpu.memory_space<vmem>>, vector<128x512xbf16>
    %c0_1 = arith.constant 0 : index
    %c0_2 = arith.constant 0 : index
    %1 = vector.load %arg2[%c0_1, %c0_2] : memref<512x128xbf16, #tpu.memory_space<vmem>>, vector<512x128xbf16>
    %cst = arith.constant dense<0.000000e+00> : vector<128x128xf32>
    %2 = tpu.matmul %0, %1, %cst {dimension_numbers = #tpu.dot_dimension_numbers<[1], [0], [0], [1], [0, 0, 1, 1], [], []>} : vector<128x512xbf16>, vector<512x128xbf16>, vector<128x128xf32> -> vector<128x128xf32>
    %3 = arith.truncf %2 : vector<128x128xf32> to vector<128x128xbf16>
    %c0_3 = arith.constant 0 : index
    %c0_4 = arith.constant 0 : index
    %4 = vector.load %arg3[%c0_3, %c0_4] : memref<128x128xbf16, #tpu.memory_space<vmem>>, vector<128x128xbf16>
    tpu.vector_store %arg3[%c0_3, %c0_4], %3 {strides = array<i32>} : memref<128x128xbf16, #tpu.memory_space<vmem>>, vector<128x128xbf16>,
    return
  }
  func.func @transform_0(%arg0: i32) -> (i32, i32) {
    %c0_i32 = arith.constant 0 : i32
    %c0_i32_0 = arith.constant 0 : i32
    return %arg0, %c0_i32 : i32, i32
  }
  func.func @transform_1(%arg0: i32) -> (i32, i32) {
    %c0_i32 = arith.constant 0 : i32
    %c0_i32_0 = arith.constant 0 : i32
    %c0_i32_1 = arith.constant 0 : i32
    return %c0_i32, %c0_i32_0 : i32, i32
  }
  func.func @transform_2(%arg0: i32) -> (i32, i32) {
    %c0_i32 = arith.constant 0 : i32
    %c0_i32_0 = arith.constant 0 : i32
    return %arg0, %c0_i32 : i32, i32
  }
}

module attributes {stable_mosaic.version = 11 : i64} {
  func.func @_aggregate_kernel(%arg0: i32, %arg1: i32, %arg2: memref<2xi32, #tpu.memory_space<smem>>, %arg3: memref<2x1xi32, #tpu.memory_space<smem>>, %arg4: memref<128x128xbf16, #tpu.memory_space<vmem>>, %arg5: memref<2x128x128xbf16, #tpu.memory_space<vmem>>, %arg6: memref<1x128xf32, #tpu.memory_space<vmem>>, %arg7: memref<128x128xf32, #tpu.memory_space<vmem>>) attributes {dimension_semantics = [#tpu.dimension_semantics<parallel>, #tpu.dimension_semantics<arbitrary>], iteration_bounds = array<i64: 2, 1>, scalar_prefetch = 2 : i64, scratch_operands = 0 : i64, tpu.core_type = #tpu.core_type<tc>, window_params = [{transform_indices = @transform_0, window_bounds = array<i64: 128, 128>}, {pipeline_mode = #tpu.pipeline_mode<synchronous>, transform_indices = @transform_1, window_bounds = array<i64: 2, 128, 128>}, {pipeline_mode = #tpu.pipeline_mode<synchronous>, transform_indices = @transform_2, window_bounds = array<i64: 1, 128>}, {transform_indices = @transform_3, window_bounds = array<i64: 128, 128>}]} {
    %c0_i32 = arith.constant 0 : i32
    %0 = arith.cmpi eq, %arg1, %c0_i32 : i32
    %1 = arith.extui %0 : i1 to i32
    %c0_i32_0 = arith.constant 0 : i32
    %2 = arith.cmpi ne, %1, %c0_i32_0 : i32
    scf.if %2 {
      %cst = arith.constant 0.000000e+00 : f32
      %11 = vector.broadcast %cst : f32 to vector<128x128xf32>
      %c0 = arith.constant 0 : index
      %c0_4 = arith.constant 0 : index
      %12 = vector.load %arg7[%c0, %c0_4] : memref<128x128xf32, #tpu.memory_space<vmem>>, vector<128x128xf32>
      tpu.vector_store %arg7[%c0, %c0_4], %11 {strides = array<i32>} : memref<128x128xf32, #tpu.memory_space<vmem>>, vector<128x128xf32>,
    } else {
    }
    %3 = arith.index_cast %arg0 : i32 to index
    %4 = memref.load %arg2[%3] : memref<2xi32, #tpu.memory_space<smem>>
    %5 = arith.cmpi slt, %arg1, %4 : i32
    %6 = arith.extui %5 : i1 to i32
    %c0_i32_1 = arith.constant 0 : i32
    %7 = arith.cmpi ne, %6, %c0_i32_1 : i32
    scf.if %7 {
      %11 = arith.index_cast %arg0 : i32 to index
      %12 = arith.index_cast %arg1 : i32 to index
      %13 = memref.load %arg3[%11, %12] : memref<2x1xi32, #tpu.memory_space<smem>>
      %14 = arith.index_cast %13 : i32 to index
      %c0 = arith.constant 0 : index
      %c0_4 = arith.constant 0 : index
      %15 = vector.load %arg5[%14, %c0, %c0_4] : memref<2x128x128xbf16, #tpu.memory_space<vmem>>, vector<1x128x128xbf16>
      %16 = vector.shape_cast %15 : vector<1x128x128xbf16> to vector<128x128xbf16>
      %c0_5 = arith.constant 0 : index
      %c0_6 = arith.constant 0 : index
      %17 = vector.load %arg7[%c0_5, %c0_6] : memref<128x128xf32, #tpu.memory_space<vmem>>, vector<128x128xf32>
      %c0_7 = arith.constant 0 : index
      %c0_8 = arith.constant 0 : index
      %18 = vector.load %arg4[%c0_7, %c0_8] : memref<128x128xbf16, #tpu.memory_space<vmem>>, vector<128x128xbf16>
      %cst = arith.constant dense<0.000000e+00> : vector<128x128xf32>
      %19 = tpu.matmul %18, %16, %cst {dimension_numbers = #tpu.dot_dimension_numbers<[1], [0], [0], [1], [0, 0, 1, 1], [], []>} : vector<128x128xbf16>, vector<128x128xbf16>, vector<128x128xf32> -> vector<128x128xf32>
      %20 = arith.addf %17, %19 : vector<128x128xf32>
      %c0_9 = arith.constant 0 : index
      %c0_10 = arith.constant 0 : index
      %21 = vector.load %arg7[%c0_9, %c0_10] : memref<128x128xf32, #tpu.memory_space<vmem>>, vector<128x128xf32>
      tpu.vector_store %arg7[%c0_9, %c0_10], %20 {strides = array<i32>} : memref<128x128xf32, #tpu.memory_space<vmem>>, vector<128x128xf32>,
    } else {
    }
    %c0_i32_2 = arith.constant 0 : i32
    %8 = arith.cmpi eq, %arg1, %c0_i32_2 : i32
    %9 = arith.extui %8 : i1 to i32
    %c0_i32_3 = arith.constant 0 : i32
    %10 = arith.cmpi ne, %9, %c0_i32_3 : i32
    scf.if %10 {
      %c0 = arith.constant 0 : index
      %c0_4 = arith.constant 0 : index
      %11 = vector.load %arg7[%c0, %c0_4] : memref<128x128xf32, #tpu.memory_space<vmem>>, vector<128x128xf32>
      %c0_5 = arith.constant 0 : index
      %c0_6 = arith.constant 0 : index
      %12 = vector.load %arg6[%c0_5, %c0_6] : memref<1x128xf32, #tpu.memory_space<vmem>>, vector<1x128xf32>
      %13 = vector.broadcast %12 : vector<1x128xf32> to vector<128x128xf32>
      %14 = arith.addf %11, %13 : vector<128x128xf32>
      %c0_7 = arith.constant 0 : index
      %c0_8 = arith.constant 0 : index
      %15 = vector.load %arg7[%c0_7, %c0_8] : memref<128x128xf32, #tpu.memory_space<vmem>>, vector<128x128xf32>
      tpu.vector_store %arg7[%c0_7, %c0_8], %14 {strides = array<i32>} : memref<128x128xf32, #tpu.memory_space<vmem>>, vector<128x128xf32>,
    } else {
    }
    return
  }
  func.func @transform_0(%arg0: i32, %arg1: i32, %arg2: memref<2xi32, #tpu.memory_space<smem>>, %arg3: memref<2x1xi32, #tpu.memory_space<smem>>) -> (i32, i32) {
    %0 = arith.index_cast %arg0 : i32 to index
    %1 = arith.index_cast %arg1 : i32 to index
    %2 = memref.load %arg3[%0, %1] : memref<2x1xi32, #tpu.memory_space<smem>>
    %c0_i32 = arith.constant 0 : i32
    return %arg0, %2 : i32, i32
  }
  func.func @transform_1(%arg0: i32, %arg1: i32, %arg2: memref<2xi32, #tpu.memory_space<smem>>, %arg3: memref<2x1xi32, #tpu.memory_space<smem>>) -> (i32, i32, i32) {
    %c0_i32 = arith.constant 0 : i32
    %c0_i32_0 = arith.constant 0 : i32
    %c0_i32_1 = arith.constant 0 : i32
    %c0_i32_2 = arith.constant 0 : i32
    return %c0_i32, %c0_i32_0, %c0_i32_1 : i32, i32, i32
  }
  func.func @transform_2(%arg0: i32, %arg1: i32, %arg2: memref<2xi32, #tpu.memory_space<smem>>, %arg3: memref<2x1xi32, #tpu.memory_space<smem>>) -> (i32, i32) {
    %c0_i32 = arith.constant 0 : i32
    %c0_i32_0 = arith.constant 0 : i32
    %c0_i32_1 = arith.constant 0 : i32
    return %c0_i32, %c0_i32_0 : i32, i32
  }
  func.func @transform_3(%arg0: i32, %arg1: i32, %arg2: memref<2xi32, #tpu.memory_space<smem>>, %arg3: memref<2x1xi32, #tpu.memory_space<smem>>) -> (i32, i32) {
    %c0_i32 = arith.constant 0 : i32
    %c0_i32_0 = arith.constant 0 : i32
    return %arg0, %c0_i32 : i32, i32
  }
}

</mosaic_0001>

<bundles_post_ra>
// kernel: gcn_forward.6
= control target key start
LH: loop header
LB: loop body
LE: loop exit
PB: predicated region body
PF: predicated region fallthrough
CT: control target
= control target key end

     0   :  { %s1120_s9 = smov 0   ;;  %s1297_s0 = inlined_call_operand.vmem [shape: bf16[256,128], index: 0, kind: input, shape index: {}]   ;;  %s1298_s1 = inlined_call_operand.vmem [shape: bf16[128,512], index: 1, kind: input, shape index: {}]   ;;  %s1299_s2 = inlined_call_operand.vmem [shape: bf16[256,512], index: 2, kind: output, shape index: {}]  }
   0x1 LB: > { %s914_s10 = sadd.s32 4294967295, %s1102_s9   ;;  %p918_p0 = scmp.ge.s32.totalorder %s1102_s9, 1  ;;  %s1102_s9 = sphi %s1120_s9, %s12_s9  }
   0x2   : > { %p113_p1 = scmp.lt.s32.totalorder %s1102_s9, 3 }
   0x4   : > { %p114_p2 = pnand %p918_p0, %p113_p1 }
   0x5   : > { %v1040_v0 = vld [vmem:[%s1298_s1 + $0x4] ss:$16 sps:$4 sm:$0xff] (!%p114_p2)   ;;  %v1042_v1 = vld [vmem:[%s1298_s1 + $0xc] ss:$16 sps:$4 sm:$0xff] (!%p114_p2)   ;;  %v1104_v2 = vmov (!%p114_p2), 0   ;;  %s919_s29 = sshll.u32 (!%p114_p2), %s914_s10, 4 }
   0x6   : > { %117 = sbr.rel (%p114_p2) target bundleno = 313 (0x139), region = 28  ;;  %438 = vmatprep.mubr.bf16.mxu0 (!%p114_p2), %v1104_v2  ;;  %551 = vmatprep.mubr.bf16.mxu1 (!%p114_p2), %v1104_v2  ;;  %v1044_v3 = vld [vmem:[%s1298_s1] ss:$16 sps:$4 sm:$0xff] (!%p114_p2)   ;;  %v1045_v4 = vld [vmem:[%s1298_s1 + $0x8] ss:$16 sps:$4 sm:$0xff] (!%p114_p2)   ;;  %p137_p3 = scmp.lt.s32.totalorder (!%p114_p2), %s919_s29, 31 }
   0x7   : > { %406 = vmatprep.subr.bf16.mxu0 (!%p114_p2), %v1040_v0  ;;  %519 = vmatprep.subr.bf16.mxu1 (!%p114_p2), %v1042_v1  ;;  %v1046_v5 = vld [vmem:[%s1298_s1 + $0x24] ss:$16 sps:$4 sm:$0xff] (!%p114_p2)   ;;  %v1048_v6 = vld [vmem:[%s1298_s1 + $0x2c] ss:$16 sps:$4 sm:$0xff] (!%p114_p2)   ;;  %v1050_v7 = vld [vmem:[%s1298_s1 + $0x20] ss:$16 sps:$4 sm:$0xff] (!%p114_p2)  }
   0x8   : > { %407 = vmatpush1.bf16.msra.mxu0 (!%p114_p2), %v1044_v3  ;;  %520 = vmatpush1.bf16.msra.mxu1 (!%p114_p2), %v1045_v4  ;;  %v1051_v8 = vld [vmem:[%s1298_s1 + $0x28] ss:$16 sps:$4 sm:$0xff] (!%p114_p2)   ;;  %v1052_v9 = vld [vmem:[%s1298_s1 + $0x44] ss:$16 sps:$4 sm:$0xff] (!%p114_p2)   ;;  %v1054_v10 = vld [vmem:[%s1298_s1 + $0x4c] ss:$16 sps:$4 sm:$0xff] (!%p114_p2)  }
   0x9   : > { %408 = vmatprep.subr.bf16.mxu0 (!%p114_p2), %v1046_v5  ;;  %521 = vmatprep.subr.bf16.mxu1 (!%p114_p2), %v1048_v6  ;;  %v1056_v11 = vld [vmem:[%s1298_s1 + $0x40] ss:$16 sps:$4 sm:$0xff] (!%p114_p2)   ;;  %v1057_v12 = vld [vmem:[%s1298_s1 + $0x48] ss:$16 sps:$4 sm:$0xff] (!%p114_p2)   ;;  %v1058_v13 = vld [vmem:[%s1298_s1 + $0x64] ss:$16 sps:$4 sm:$0xff] (!%p114_p2)  }
   0xa   : > { %v1060_v14 = vld [vmem:[%s1298_s1 + $0x6c] ss:$16 sps:$4 sm:$0xff] (!%p114_p2)   ;;  %v1062_v15 = vld [vmem:[%s1298_s1 + $0x60] ss:$16 sps:$4 sm:$0xff] (!%p114_p2)   ;;  %v1063_v16 = vld [vmem:[%s1298_s1 + $0x68] ss:$16 sps:$4 sm:$0xff] (!%p114_p2)  }
   0xb   : > { %v1064_v17 = vld [vmem:[%s1298_s1 + $0x84] ss:$16 sps:$4 sm:$0xff] (!%p114_p2)   ;;  %v1066_v18 = vld [vmem:[%s1298_s1 + $0x8c] ss:$16 sps:$4 sm:$0xff] (!%p114_p2)   ;;  %v1068_v19 = vld [vmem:[%s1298_s1 + $0x80] ss:$16 sps:$4 sm:$0xff] (!%p114_p2)  }
   0xc   : > { %409 = vmatpush1.bf16.msra.mxu0 (!%p114_p2), %v1050_v7  ;;  %522 = vmatpush1.bf16.msra.mxu1 (!%p114_p2), %v1051_v8  ;;  %v1069_v20 = vld [vmem:[%s1298_s1 + $0x88] ss:$16 sps:$4 sm:$0xff] (!%p114_p2)   ;;  %v1070_v21 = vld [vmem:[%s1298_s1 + $0xa4] ss:$16 sps:$4 sm:$0xff] (!%p114_p2)   ;;  %v1072_v22 = vld [vmem:[%s1298_s1 + $0xac] ss:$16 sps:$4 sm:$0xff] (!%p114_p2)  }
   0xd   : > { %410 = vmatprep.subr.bf16.mxu0 %v1052_v9  ;;  %523 = vmatprep.subr.bf16.mxu1 %v1054_v10  ;;  %s1301_s29 = smov (!%p137_p3, %s919_s29), 31  ;;  %v1074_v23 = vld [vmem:[%s1298_s1 + $0xa0] ss:$16 sps:$4 sm:$0xff]   ;;  %v1075_v24 = vld [vmem:[%s1298_s1 + $0xa8] ss:$16 sps:$4 sm:$0xff]  }
   0xe   : > { %s920_s30 = sshll.u32 %s1301_s29, 2  ;;  %v1076_v25 = vld [vmem:[%s1298_s1 + $0xc4] ss:$16 sps:$4 sm:$0xff]   ;;  %v1078_v26 = vld [vmem:[%s1298_s1 + $0xcc] ss:$16 sps:$4 sm:$0xff]   ;;  %s998_s27 = sshll.u32 %s1301_s29, 4 }
   0xf   : > { %s1211_s12 = scalar_lea.vmem %s1297_s0, %s920_s30  ;;  %v1080_v27 = vld [vmem:[%s1298_s1 + $0xc0] ss:$16 sps:$4 sm:$0xff]   ;;  %v1081_v28 = vld [vmem:[%s1298_s1 + $0xc8] ss:$16 sps:$4 sm:$0xff]   ;;  %v1082_v29 = vld [vmem:[%s1298_s1 + $0xe4] ss:$16 sps:$4 sm:$0xff]   ;;  %s1260_s3 = scalar_lea.vmem %s1299_s2, %s998_s27 }
  0x10   : > { %411 = vmatpush1.bf16.msra.mxu0 %v1056_v11  ;;  %524 = vmatpush1.bf16.msra.mxu1 %v1057_v12  ;;  %v1084_v30 = vld [vmem:[%s1298_s1 + $0xec] ss:$16 sps:$4 sm:$0xff]   ;;  %v1086_v31 = vld [vmem:[%s1298_s1 + $0xe0] ss:$16 sps:$4 sm:$0xff]   ;;  %v1087_v32 = vld [vmem:[%s1298_s1 + $0xe8] ss:$16 sps:$4 sm:$0xff]  }
  0x11   : > { %412 = vmatprep.subr.bf16.mxu0 %v1058_v13  ;;  %525 = vmatprep.subr.bf16.mxu1 %v1060_v14  ;;  %v1088_v33 = vld [vmem:[%s1211_s12] sm:$0xff]   ;;  %v1089_v34 = vld [vmem:[%s1211_s12 + $0x8] sm:$0xff]   ;;  %v1090_v35 = vld [vmem:[%s1211_s12 + $0x10] sm:$0xff]  }
  0x12   : > { %v1091_v36 = vld [vmem:[%s1211_s12 + $0x18] sm:$0xff]   ;;  %v1092_v37 = vld [vmem:[%s1211_s12 + $0x20] sm:$0xff]   ;;  %v1093_v38 = vld [vmem:[%s1211_s12 + $0x28] sm:$0xff]  }
  0x13   : > { %v1094_v39 = vld [vmem:[%s1211_s12 + $0x30] sm:$0xff]   ;;  %v1095_v40 = vld [vmem:[%s1211_s12 + $0x38] sm:$0xff]  }
  0x14   : > { %413 = vmatpush1.bf16.msra.mxu0 %v1062_v15  ;;  %526 = vmatpush1.bf16.msra.mxu1 %v1063_v16 }
  0x15   : > { %414 = vmatprep.subr.bf16.mxu0 %v1064_v17  ;;  %527 = vmatprep.subr.bf16.mxu1 %v1066_v18 }
  0x18   : > { %415 = vmatpush1.bf16.msra.mxu0 %v1068_v19  ;;  %528 = vmatpush1.bf16.msra.mxu1 %v1069_v20 }
  0x19   : > { %416 = vmatprep.subr.bf16.mxu0 %v1070_v21  ;;  %529 = vmatprep.subr.bf16.mxu1 %v1072_v22 }
  0x1c   : > { %417 = vmatpush1.bf16.msra.mxu0 %v1074_v23  ;;  %530 = vmatpush1.bf16.msra.mxu1 %v1075_v24 }
  0x1d   : > { %418 = vmatprep.subr.bf16.mxu0 %v1076_v25  ;;  %531 = vmatprep.subr.bf16.mxu1 %v1078_v26 }
  0x20   : > { %419 = vmatpush1.bf16.msra.mxu0 %v1080_v27  ;;  %532 = vmatpush1.bf16.msra.mxu1 %v1081_v28 }
  0x21   : > { %420 = vmatprep.subr.bf16.mxu0 %v1082_v29  ;;  %533 = vmatprep.subr.bf16.mxu1 %v1084_v30 }
  0x24   : > { %421 = vmatpush1.bf16.msra.mxu0 %v1086_v31  ;;  %534 = vmatpush1.bf16.msra.mxu1 %v1087_v32 }
  0x27   : > { %439 = vmatmul.mubr.bf16.vlgmr.msra.gmra.mrb[0].mxu0 %v1088_v33  ;;  %552 = vmatmul.mubr.bf16.vlgmr.msra.gmra.mrb[0].mxu1 %v1088_v33 }
  0x28   : > { %448 = vmatprep.mubr.bf16.mxu0 %v1104_v2  ;;  %561 = vmatprep.mubr.bf16.mxu1 %v1104_v2 }
  0x2f   : > { %449 = vmatmul.mubr.bf16.gmra.mrb[4].mxu0 %v1089_v34  ;;  %562 = vmatmul.mubr.bf16.gmra.mrb[4].mxu1 %v1089_v34 }
  0x30   : > { %458 = vmatprep.mubr.bf16.mxu0 %v1104_v2  ;;  %571 = vmatprep.mubr.bf16.mxu1 %v1104_v2 }
  0x37   : > { %459 = vmatmul.mubr.bf16.gmra.mrb[8].mxu0 %v1090_v35  ;;  %572 = vmatmul.mubr.bf16.gmra.mrb[8].mxu1 %v1090_v35 }
  0x38   : > { %468 = vmatprep.mubr.bf16.mxu0 %v1104_v2  ;;  %581 = vmatprep.mubr.bf16.mxu1 %v1104_v2 }
  0x3f   : > { %469 = vmatmul.mubr.bf16.gmra.mrb[12].mxu0 %v1091_v36  ;;  %582 = vmatmul.mubr.bf16.gmra.mrb[12].mxu1 %v1091_v36 }
  0x40   : > { %478 = vmatprep.mubr.bf16.mxu0 %v1104_v2  ;;  %591 = vmatprep.mubr.bf16.mxu1 %v1104_v2 }
  0x47   : > { %479 = vmatmul.mubr.bf16.gmra.mrb[16].mxu0 %v1092_v37  ;;  %592 = vmatmul.mubr.bf16.gmra.mrb[16].mxu1 %v1092_v37 }
  0x48   : > { %488 = vmatprep.mubr.bf16.mxu0 %v1104_v2  ;;  %601 = vmatprep.mubr.bf16.mxu1 %v1104_v2 }
  0x4f   : > { %489 = vmatmul.mubr.bf16.gmra.mrb[20].mxu0 %v1093_v38  ;;  %602 = vmatmul.mubr.bf16.gmra.mrb[20].mxu1 %v1093_v38 }
  0x50   : > { %498 = vmatprep.mubr.bf16.mxu0 %v1104_v2  ;;  %611 = vmatprep.mubr.bf16.mxu1 %v1104_v2 }
  0x57   : > { %499 = vmatmul.mubr.bf16.gmra.mrb[24].mxu0 %v1094_v39  ;;  %612 = vmatmul.mubr.bf16.gmra.mrb[24].mxu1 %v1094_v39 }
  0x58   : > { %508 = vmatprep.mubr.bf16.mxu0 %v1104_v2  ;;  %621 = vmatprep.mubr.bf16.mxu1 %v1104_v2 }
  0x5f   : > { %509 = vmatmul.mubr.bf16.gmra.mrb[28].mxu0 %v1095_v40  ;;  %622 = vmatmul.mubr.bf16.gmra.mrb[28].mxu1 %v1095_v40 }
  0xfa   : > { %v440_v41 = vpop.f32.mrb[0].mxu0  ;;  %v553_v42 = vpop.f32.mrb[0].mxu1 }
  0xfb   : > { %v442_v43 = vpop.f32.mrb[1].mxu0  ;;  %v555_v44 = vpop.f32.mrb[1].mxu1 }
  0xfc   : > { %v999_v45 = vpack.c.bf16 %v442_v43, %v440_v41  ;;  %v1000_v46 = vpack.c.bf16 %v555_v44, %v553_v42  ;;  %v444_v47 = vpop.f32.mrb[2].mxu0  ;;  %v557_v48 = vpop.f32.mrb[2].mxu1 }
  0xfd   : > { %v446_v49 = vpop.f32.mrb[3].mxu0  ;;  %v559_v50 = vpop.f32.mrb[3].mxu1 }
  0xfe   : > { %824 = vst [vmem:[%s1260_s3] sm:$0xff] %v999_v45  ;;  %825 = vst [vmem:[%s1260_s3 + $0x8] sm:$0xff] %v1000_v46  ;;  %v1001_v51 = vpack.c.bf16 %v446_v49, %v444_v47  ;;  %v1002_v52 = vpack.c.bf16 %v559_v50, %v557_v48 }
 0x100   : > { %826 = vst [vmem:[%s1260_s3 + $0x10] sm:$0xff] %v1001_v51  ;;  %827 = vst [vmem:[%s1260_s3 + $0x18] sm:$0xff] %v1002_v52 }
 0x102   : > { %v450_v53 = vpop.f32.mrb[4].mxu0  ;;  %v563_v54 = vpop.f32.mrb[4].mxu1 }
 0x103   : > { %v452_v55 = vpop.f32.mrb[5].mxu0  ;;  %v565_v56 = vpop.f32.mrb[5].mxu1 }
 0x104   : > { %v1003_v57 = vpack.c.bf16 %v452_v55, %v450_v53  ;;  %v1004_v58 = vpack.c.bf16 %v565_v56, %v563_v54  ;;  %v454_v59 = vpop.f32.mrb[6].mxu0  ;;  %v567_v60 = vpop.f32.mrb[6].mxu1 }
 0x105   : > { %v456_v61 = vpop.f32.mrb[7].mxu0  ;;  %v569_v62 = vpop.f32.mrb[7].mxu1 }
 0x106   : > { %828 = vst [vmem:[%s1260_s3 + $0x20] sm:$0xff] %v1003_v57  ;;  %829 = vst [vmem:[%s1260_s3 + $0x28] sm:$0xff] %v1004_v58  ;;  %v1005_v63 = vpack.c.bf16 %v456_v61, %v454_v59  ;;  %v1006_v0 = vpack.c.bf16 %v569_v62, %v567_v60 }
 0x108   : > { %830 = vst [vmem:[%s1260_s3 + $0x30] sm:$0xff] %v1005_v63  ;;  %831 = vst [vmem:[%s1260_s3 + $0x38] sm:$0xff] %v1006_v0 }
 0x10a   : > { %v460_v1 = vpop.f32.mrb[8].mxu0  ;;  %v573_v2 = vpop.f32.mrb[8].mxu1 }
 0x10b   : > { %v462_v3 = vpop.f32.mrb[9].mxu0  ;;  %v575_v4 = vpop.f32.mrb[9].mxu1 }
 0x10c   : > { %v1007_v5 = vpack.c.bf16 %v462_v3, %v460_v1  ;;  %v1008_v6 = vpack.c.bf16 %v575_v4, %v573_v2  ;;  %v464_v7 = vpop.f32.mrb[10].mxu0  ;;  %v577_v8 = vpop.f32.mrb[10].mxu1 }
 0x10d   : > { %v466_v9 = vpop.f32.mrb[11].mxu0  ;;  %v579_v10 = vpop.f32.mrb[11].mxu1 }
 0x10e   : > { %832 = vst [vmem:[%s1260_s3 + $0x40] sm:$0xff] %v1007_v5  ;;  %833 = vst [vmem:[%s1260_s3 + $0x48] sm:$0xff] %v1008_v6  ;;  %v1009_v11 = vpack.c.bf16 %v466_v9, %v464_v7  ;;  %v1010_v12 = vpack.c.bf16 %v579_v10, %v577_v8 }
 0x110   : > { %834 = vst [vmem:[%s1260_s3 + $0x50] sm:$0xff] %v1009_v11  ;;  %835 = vst [vmem:[%s1260_s3 + $0x58] sm:$0xff] %v1010_v12 }
 0x112   : > { %v470_v13 = vpop.f32.mrb[12].mxu0  ;;  %v583_v14 = vpop.f32.mrb[12].mxu1 }
 0x113   : > { %v472_v15 = vpop.f32.mrb[13].mxu0  ;;  %v585_v16 = vpop.f32.mrb[13].mxu1 }
 0x114   : > { %v1011_v17 = vpack.c.bf16 %v472_v15, %v470_v13  ;;  %v1012_v18 = vpack.c.bf16 %v585_v16, %v583_v14  ;;  %v474_v19 = vpop.f32.mrb[14].mxu0  ;;  %v587_v20 = vpop.f32.mrb[14].mxu1 }
 0x115   : > { %v476_v21 = vpop.f32.mrb[15].mxu0  ;;  %v589_v22 = vpop.f32.mrb[15].mxu1 }
 0x116   : > { %836 = vst [vmem:[%s1260_s3 + $0x60] sm:$0xff] %v1011_v17  ;;  %837 = vst [vmem:[%s1260_s3 + $0x68] sm:$0xff] %v1012_v18  ;;  %v1013_v23 = vpack.c.bf16 %v476_v21, %v474_v19  ;;  %v1014_v24 = vpack.c.bf16 %v589_v22, %v587_v20 }
 0x118   : > { %838 = vst [vmem:[%s1260_s3 + $0x70] sm:$0xff] %v1013_v23  ;;  %839 = vst [vmem:[%s1260_s3 + $0x78] sm:$0xff] %v1014_v24 }
 0x11a   : > { %v480_v25 = vpop.f32.mrb[16].mxu0  ;;  %v593_v26 = vpop.f32.mrb[16].mxu1 }
 0x11b   : > { %v482_v27 = vpop.f32.mrb[17].mxu0  ;;  %v595_v28 = vpop.f32.mrb[17].mxu1 }
 0x11c   : > { %v1015_v29 = vpack.c.bf16 %v482_v27, %v480_v25  ;;  %v1016_v30 = vpack.c.bf16 %v595_v28, %v593_v26  ;;  %v484_v31 = vpop.f32.mrb[18].mxu0  ;;  %v597_v32 = vpop.f32.mrb[18].mxu1 }
 0x11d   : > { %v486_v33 = vpop.f32.mrb[19].mxu0  ;;  %v599_v34 = vpop.f32.mrb[19].mxu1 }
 0x11e   : > { %840 = vst [vmem:[%s1260_s3 + $0x80] sm:$0xff] %v1015_v29  ;;  %841 = vst [vmem:[%s1260_s3 + $0x88] sm:$0xff] %v1016_v30  ;;  %v1017_v35 = vpack.c.bf16 %v486_v33, %v484_v31  ;;  %v1018_v36 = vpack.c.bf16 %v599_v34, %v597_v32 }
 0x120   : > { %842 = vst [vmem:[%s1260_s3 + $0x90] sm:$0xff] %v1017_v35  ;;  %843 = vst [vmem:[%s1260_s3 + $0x98] sm:$0xff] %v1018_v36 }
 0x122   : > { %v490_v37 = vpop.f32.mrb[20].mxu0  ;;  %v603_v38 = vpop.f32.mrb[20].mxu1 }
 0x123   : > { %v492_v39 = vpop.f32.mrb[21].mxu0  ;;  %v605_v40 = vpop.f32.mrb[21].mxu1 }
 0x124   : > { %v1019_v41 = vpack.c.bf16 %v492_v39, %v490_v37  ;;  %v1020_v42 = vpack.c.bf16 %v605_v40, %v603_v38  ;;  %v494_v43 = vpop.f32.mrb[22].mxu0  ;;  %v607_v44 = vpop.f32.mrb[22].mxu1 }
 0x125   : > { %v496_v45 = vpop.f32.mrb[23].mxu0  ;;  %v609_v46 = vpop.f32.mrb[23].mxu1 }
 0x126   : > { %844 = vst [vmem:[%s1260_s3 + $0xa0] sm:$0xff] %v1019_v41  ;;  %845 = vst [vmem:[%s1260_s3 + $0xa8] sm:$0xff] %v1020_v42  ;;  %v1021_v47 = vpack.c.bf16 %v496_v45, %v494_v43  ;;  %v1022_v48 = vpack.c.bf16 %v609_v46, %v607_v44 }
 0x128   : > { %846 = vst [vmem:[%s1260_s3 + $0xb0] sm:$0xff] %v1021_v47  ;;  %847 = vst [vmem:[%s1260_s3 + $0xb8] sm:$0xff] %v1022_v48 }
 0x12a   : > { %v500_v49 = vpop.f32.mrb[24].mxu0  ;;  %v613_v50 = vpop.f32.mrb[24].mxu1 }
 0x12b   : > { %v502_v51 = vpop.f32.mrb[25].mxu0  ;;  %v615_v52 = vpop.f32.mrb[25].mxu1 }
 0x12c   : > { %v1023_v53 = vpack.c.bf16 %v502_v51, %v500_v49  ;;  %v1024_v54 = vpack.c.bf16 %v615_v52, %v613_v50  ;;  %v504_v55 = vpop.f32.mrb[26].mxu0  ;;  %v617_v56 = vpop.f32.mrb[26].mxu1 }
 0x12d   : > { %v506_v57 = vpop.f32.mrb[27].mxu0  ;;  %v619_v58 = vpop.f32.mrb[27].mxu1 }
 0x12e   : > { %848 = vst [vmem:[%s1260_s3 + $0xc0] sm:$0xff] %v1023_v53  ;;  %849 = vst [vmem:[%s1260_s3 + $0xc8] sm:$0xff] %v1024_v54  ;;  %v1025_v59 = vpack.c.bf16 %v506_v57, %v504_v55  ;;  %v1026_v60 = vpack.c.bf16 %v619_v58, %v617_v56 }
 0x130   : > { %850 = vst [vmem:[%s1260_s3 + $0xd0] sm:$0xff] %v1025_v59  ;;  %851 = vst [vmem:[%s1260_s3 + $0xd8] sm:$0xff] %v1026_v60 }
 0x132   : > { %v510_v61 = vpop.f32.mrb[28].mxu0  ;;  %v623_v62 = vpop.f32.mrb[28].mxu1 }
 0x133   : > { %v512_v63 = vpop.f32.mrb[29].mxu0  ;;  %v625_v0 = vpop.f32.mrb[29].mxu1 }
 0x134   : > { %v1027_v1 = vpack.c.bf16 %v512_v63, %v510_v61  ;;  %v1028_v2 = vpack.c.bf16 %v625_v0, %v623_v62  ;;  %v514_v3 = vpop.f32.mrb[30].mxu0  ;;  %v627_v4 = vpop.f32.mrb[30].mxu1 }
 0x135   : > { %v516_v5 = vpop.f32.mrb[31].mxu0  ;;  %v629_v6 = vpop.f32.mrb[31].mxu1 }
 0x136   : > { %852 = vst [vmem:[%s1260_s3 + $0xe0] sm:$0xff] %v1027_v1  ;;  %853 = vst [vmem:[%s1260_s3 + $0xe8] sm:$0xff] %v1028_v2  ;;  %v1029_v7 = vpack.c.bf16 %v516_v5, %v514_v3  ;;  %v1030_v8 = vpack.c.bf16 %v629_v6, %v627_v4 }
 0x138   : > { %854 = vst [vmem:[%s1260_s3 + $0xf0] sm:$0xff] %v1029_v7  ;;  %855 = vst [vmem:[%s1260_s3 + $0xf8] sm:$0xff] %v1030_v8 }
 0x139 PF: > { %s12_s9 = sadd.s32 1, %s1102_s9  }
 0x13a   : > { %p9_p4 = scmp.ge.s32.totalorder %s12_s9, 4  }
 0x13c   :  { %11 = sbr.rel (!%p9_p4) target bundleno = 1 (0x1), region = 58 }

// kernel: gcn_forward.8
= control target key start
LH: loop header
LB: loop body
LE: loop exit
PB: predicated region body
PF: predicated region fallthrough
CT: control target
= control target key end

     0   :  { %s2420_s9 = smov 0   ;;  %s2898_s0 = inlined_call_operand.vmem [shape: bf16[256,512], index: 0, kind: input, shape index: {}]   ;;  %s2899_s1 = inlined_call_operand.vmem [shape: bf16[512,512], index: 1, kind: input, shape index: {}]   ;;  %s2900_s2 = inlined_call_operand.vmem [shape: bf16[256,512], index: 2, kind: output, shape index: {}]  }
   0x1 LB: > { %s1846_s10 = sadd.s32 4294967295, %s2403_s9   ;;  %p1850_p0 = scmp.ge.s32.totalorder %s2403_s9, 1  ;;  %s2403_s9 = sphi %s2420_s9, %s12_s9  }
   0x2   : > { %p114_p1 = scmp.lt.s32.totalorder %s2403_s9, 3 }
   0x4   : > { %p115_p2 = pnand %p1850_p0, %p114_p1 }
   0x5   : > { %v2157_v0 = vld [vmem:[%s2899_s1 + $0x4] ss:$16 sps:$4 sm:$0xff] (!%p115_p2)   ;;  %v2159_v1 = vld [vmem:[%s2899_s1 + $0xc] ss:$16 sps:$4 sm:$0xff] (!%p115_p2)   ;;  %v2161_v2 = vld [vmem:[%s2899_s1] ss:$16 sps:$4 sm:$0xff] (!%p115_p2)  }
   0x6   : > { %118 = sbr.rel (%p115_p2) target bundleno = 408 (0x198), region = 28  ;;  %1112 = vmatprep.subr.bf16.mxu0 (!%p115_p2), %v2157_v0  ;;  %v2162_v3 = vld [vmem:[%s2899_s1 + $0x8] ss:$16 sps:$4 sm:$0xff] (!%p115_p2)   ;;  %1338 = vmatprep.subr.bf16.mxu1 (!%p115_p2), %v2159_v1  ;;  %v2163_v4 = vld [vmem:[%s2899_s1 + $0x24] ss:$16 sps:$4 sm:$0xff] (!%p115_p2)   ;;  %s1851_s19 = sshll.u32 (!%p115_p2), %s1846_s10, 4 }
   0x7   : > { %1113 = vmatpush1.bf16.msra.mxu0 (!%p115_p2), %v2161_v2  ;;  %1339 = vmatpush1.bf16.msra.mxu1 (!%p115_p2), %v2162_v3  ;;  %v2165_v5 = vld [vmem:[%s2899_s1 + $0x2c] ss:$16 sps:$4 sm:$0xff] (!%p115_p2)   ;;  %v2167_v6 = vld [vmem:[%s2899_s1 + $0x20] ss:$16 sps:$4 sm:$0xff] (!%p115_p2)   ;;  %v2168_v7 = vld [vmem:[%s2899_s1 + $0x28] ss:$16 sps:$4 sm:$0xff] (!%p115_p2)  }
   0x8   : > { %1114 = vmatprep.subr.bf16.mxu0 (!%p115_p2), %v2163_v4  ;;  %1340 = vmatprep.subr.bf16.mxu1 (!%p115_p2), %v2165_v5  ;;  %v2169_v8 = vld [vmem:[%s2899_s1 + $0x44] ss:$16 sps:$4 sm:$0xff] (!%p115_p2)   ;;  %v2171_v9 = vld [vmem:[%s2899_s1 + $0x4c] ss:$16 sps:$4 sm:$0xff] (!%p115_p2)   ;;  %v2173_v10 = vld [vmem:[%s2899_s1 + $0x40] ss:$16 sps:$4 sm:$0xff] (!%p115_p2)  }
   0x9   : > { %v2174_v11 = vld [vmem:[%s2899_s1 + $0x48] ss:$16 sps:$4 sm:$0xff] (!%p115_p2)   ;;  %v2175_v12 = vld [vmem:[%s2899_s1 + $0x64] ss:$16 sps:$4 sm:$0xff] (!%p115_p2)   ;;  %v2177_v13 = vld [vmem:[%s2899_s1 + $0x6c] ss:$16 sps:$4 sm:$0xff] (!%p115_p2)  }
   0xa   : > { %v2179_v14 = vld [vmem:[%s2899_s1 + $0x60] ss:$16 sps:$4 sm:$0xff] (!%p115_p2)   ;;  %v2180_v15 = vld [vmem:[%s2899_s1 + $0x68] ss:$16 sps:$4 sm:$0xff] (!%p115_p2)   ;;  %v2181_v16 = vld [vmem:[%s2899_s1 + $0x84] ss:$16 sps:$4 sm:$0xff] (!%p115_p2)  }
   0xb   : > { %1115 = vmatpush1.bf16.msra.mxu0 (!%p115_p2), %v2167_v6  ;;  %1341 = vmatpush1.bf16.msra.mxu1 (!%p115_p2), %v2168_v7  ;;  %v2183_v17 = vld [vmem:[%s2899_s1 + $0x8c] ss:$16 sps:$4 sm:$0xff] (!%p115_p2)   ;;  %v2185_v18 = vld [vmem:[%s2899_s1 + $0x80] ss:$16 sps:$4 sm:$0xff] (!%p115_p2)   ;;  %v2186_v19 = vld [vmem:[%s2899_s1 + $0x88] ss:$16 sps:$4 sm:$0xff] (!%p115_p2)  }
   0xc   : > { %1116 = vmatprep.subr.bf16.mxu0 (!%p115_p2), %v2169_v8  ;;  %1342 = vmatprep.subr.bf16.mxu1 (!%p115_p2), %v2171_v9  ;;  %v2187_v20 = vld [vmem:[%s2899_s1 + $0xa4] ss:$16 sps:$4 sm:$0xff] (!%p115_p2)   ;;  %v2189_v21 = vld [vmem:[%s2899_s1 + $0xac] ss:$16 sps:$4 sm:$0xff] (!%p115_p2)   ;;  %v2191_v22 = vld [vmem:[%s2899_s1 + $0xa0] ss:$16 sps:$4 sm:$0xff] (!%p115_p2)  }
   0xd   : > { %v2192_v23 = vld [vmem:[%s2899_s1 + $0xa8] ss:$16 sps:$4 sm:$0xff]   ;;  %v2193_v24 = vld [vmem:[%s2899_s1 + $0xc4] ss:$16 sps:$4 sm:$0xff]   ;;  %v2195_v25 = vld [vmem:[%s2899_s1 + $0xcc] ss:$16 sps:$4 sm:$0xff]  }
   0xe   : > { %v2197_v26 = vld [vmem:[%s2899_s1 + $0xc0] ss:$16 sps:$4 sm:$0xff]   ;;  %v2198_v27 = vld [vmem:[%s2899_s1 + $0xc8] ss:$16 sps:$4 sm:$0xff]   ;;  %v2199_v28 = vld [vmem:[%s2899_s1 + $0xe4] ss:$16 sps:$4 sm:$0xff]  }
   0xf   : > { %1117 = vmatpush1.bf16.msra.mxu0 %v2173_v10  ;;  %1343 = vmatpush1.bf16.msra.mxu1 %v2174_v11  ;;  %v2201_v29 = vld [vmem:[%s2899_s1 + $0xec] ss:$16 sps:$4 sm:$0xff]   ;;  %v2203_v30 = vld [vmem:[%s2899_s1 + $0xe0] ss:$16 sps:$4 sm:$0xff]   ;;  %v2204_v31 = vld [vmem:[%s2899_s1 + $0xe8] ss:$16 sps:$4 sm:$0xff]  }
  0x10   : > { %1118 = vmatprep.subr.bf16.mxu0 %v2175_v12  ;;  %1344 = vmatprep.subr.bf16.mxu1 %v2177_v13  ;;  %v2205_v32 = vld [vmem:[%s2899_s1 + $0x104] ss:$16 sps:$4 sm:$0xff]   ;;  %v2207_v33 = vld [vmem:[%s2899_s1 + $0x10c] ss:$16 sps:$4 sm:$0xff]   ;;  %p139_p3 = scmp.lt.s32.totalorder %s1851_s19, 31 }
  0x11   : > { %v2209_v34 = vld [vmem:[%s2899_s1 + $0x100] ss:$16 sps:$4 sm:$0xff]   ;;  %v2210_v35 = vld [vmem:[%s2899_s1 + $0x108] ss:$16 sps:$4 sm:$0xff]   ;;  %v2211_v36 = vld [vmem:[%s2899_s1 + $0x124] ss:$16 sps:$4 sm:$0xff]  }
  0x12   : > { %v2213_v37 = vld [vmem:[%s2899_s1 + $0x12c] ss:$16 sps:$4 sm:$0xff]   ;;  %s2902_s19 = smov (!%p139_p3, %s1851_s19), 31  ;;  %v2215_v38 = vld [vmem:[%s2899_s1 + $0x120] ss:$16 sps:$4 sm:$0xff]  }
  0x13   : > { %1119 = vmatpush1.bf16.msra.mxu0 %v2179_v14  ;;  %1345 = vmatpush1.bf16.msra.mxu1 %v2180_v15  ;;  %v2216_v39 = vld [vmem:[%s2899_s1 + $0x128] ss:$16 sps:$4 sm:$0xff]   ;;  %v2217_v40 = vld [vmem:[%s2899_s1 + $0x144] ss:$16 sps:$4 sm:$0xff]   ;;  %v2219_v41 = vld [vmem:[%s2899_s1 + $0x14c] ss:$16 sps:$4 sm:$0xff]  }
  0x14   : > { %1120 = vmatprep.subr.bf16.mxu0 %v2181_v16  ;;  %1346 = vmatprep.subr.bf16.mxu1 %v2183_v17  ;;  %s2051_s17 = sshll.u32 %s2902_s19, 4  ;;  %v2221_v42 = vld [vmem:[%s2899_s1 + $0x140] ss:$16 sps:$4 sm:$0xff]   ;;  %v2222_v43 = vld [vmem:[%s2899_s1 + $0x148] ss:$16 sps:$4 sm:$0xff]  }
  0x15   : > { %v2223_v44 = vld [vmem:[%s2899_s1 + $0x164] ss:$16 sps:$4 sm:$0xff]   ;;  %s2573_s27 = scalar_lea.vmem %s2898_s0, %s2051_s17  ;;  %v2225_v45 = vld [vmem:[%s2899_s1 + $0x16c] ss:$16 sps:$4 sm:$0xff]   ;;  %v2227_v46 = vld [vmem:[%s2899_s1 + $0x160] ss:$16 sps:$4 sm:$0xff]   ;;  %s2861_s10 = scalar_lea.vmem %s2900_s2, %s2051_s17 }
  0x16   : > { %v2228_v47 = vld [vmem:[%s2899_s1 + $0x168] ss:$16 sps:$4 sm:$0xff]   ;;  %v2255_v48 = vld [vmem:[%s2573_s27 + $0x4] ss:$16 sps:$4 sm:$0xff]   ;;  %v2231_v50 = vld [vmem:[%s2899_s1 + $0x18c] ss:$16 sps:$4 sm:$0xff]  }
  0x17   : > { %1121 = vmatpush1.bf16.msra.mxu0 %v2185_v18  ;;  %1347 = vmatpush1.bf16.msra.mxu1 %v2186_v19  ;;  %v2229_v49 = vld [vmem:[%s2899_s1 + $0x184] ss:$16 sps:$4 sm:$0xff]   ;;  %v2233_v51 = vld [vmem:[%s2899_s1 + $0x180] ss:$16 sps:$4 sm:$0xff]   ;;  %v2234_v52 = vld [vmem:[%s2899_s1 + $0x188] ss:$16 sps:$4 sm:$0xff]  }
  0x18   : > { %1122 = vmatprep.subr.bf16.mxu0 %v2187_v20  ;;  %1348 = vmatprep.subr.bf16.mxu1 %v2189_v21  ;;  %v2235_v53 = vld [vmem:[%s2899_s1 + $0x1a4] ss:$16 sps:$4 sm:$0xff]   ;;  %v2237_v54 = vld [vmem:[%s2899_s1 + $0x1ac] ss:$16 sps:$4 sm:$0xff]   ;;  %v2239_v55 = vld [vmem:[%s2899_s1 + $0x1a0] ss:$16 sps:$4 sm:$0xff]  }
  0x19   : > { %1144 = vmatprep.mubr.bf16.mxu0 %v2255_v48  ;;  %1370 = vmatprep.mubr.bf16.mxu1 %v2255_v48  ;;  %v2240_v56 = vld [vmem:[%s2899_s1 + $0x1a8] ss:$16 sps:$4 sm:$0xff]   ;;  %v2241_v57 = vld [vmem:[%s2899_s1 + $0x1c4] ss:$16 sps:$4 sm:$0xff]   ;;  %v2243_v58 = vld [vmem:[%s2899_s1 + $0x1cc] ss:$16 sps:$4 sm:$0xff]  }
  0x1a   : > { %v2245_v59 = vld [vmem:[%s2899_s1 + $0x1c0] ss:$16 sps:$4 sm:$0xff]   ;;  %v2246_v60 = vld [vmem:[%s2899_s1 + $0x1c8] ss:$16 sps:$4 sm:$0xff]   ;;  %v2247_v61 = vld [vmem:[%s2899_s1 + $0x1e4] ss:$16 sps:$4 sm:$0xff]  }
  0x1b   : > { %1123 = vmatpush1.bf16.msra.mxu0 %v2191_v22  ;;  %1349 = vmatpush1.bf16.msra.mxu1 %v2192_v23  ;;  %v2249_v62 = vld [vmem:[%s2899_s1 + $0x1ec] ss:$16 sps:$4 sm:$0xff]   ;;  %v2251_v63 = vld [vmem:[%s2899_s1 + $0x1e0] ss:$16 sps:$4 sm:$0xff]   ;;  %v2252_v0 = vld [vmem:[%s2899_s1 + $0x1e8] ss:$16 sps:$4 sm:$0xff]  }
  0x1c   : > { %1124 = vmatprep.subr.bf16.mxu0 %v2193_v24  ;;  %1350 = vmatprep.subr.bf16.mxu1 %v2195_v25  ;;  %v2258_v1 = vld [vmem:[%s2899_s1 + $0x204] ss:$16 sps:$4 sm:$0xff]   ;;  %v2261_v2 = vld [vmem:[%s2899_s1 + $0x20c] ss:$16 sps:$4 sm:$0xff]   ;;  %v2253_v3 = vld [vmem:[%s2573_s27] ss:$16 sps:$4 sm:$0xff]  }
  0x1d   : > { %v2256_v4 = vld [vmem:[%s2899_s1 + $0x200] ss:$16 sps:$4 sm:$0xff]   ;;  %v2259_v5 = vld [vmem:[%s2899_s1 + $0x208] ss:$16 sps:$4 sm:$0xff]   ;;  %v2264_v6 = vld [vmem:[%s2899_s1 + $0x224] ss:$16 sps:$4 sm:$0xff]  }
  0x1e   : > { %v2267_v7 = vld [vmem:[%s2899_s1 + $0x22c] ss:$16 sps:$4 sm:$0xff]   ;;  %v2268_v8 = vld [vmem:[%s2573_s27 + $0x24] ss:$16 sps:$4 sm:$0xff]   ;;  %v2262_v9 = vld [vmem:[%s2899_s1 + $0x220] ss:$16 sps:$4 sm:$0xff]  }
  0x1f   : > { %1125 = vmatpush1.bf16.msra.mxu0 %v2197_v26  ;;  %1351 = vmatpush1.bf16.msra.mxu1 %v2198_v27  ;;  %v2265_v10 = vld [vmem:[%s2899_s1 + $0x228] ss:$16 sps:$4 sm:$0xff]   ;;  %v2273_v11 = vld [vmem:[%s2899_s1 + $0x244] ss:$16 sps:$4 sm:$0xff]   ;;  %v2276_v12 = vld [vmem:[%s2899_s1 + $0x24c] ss:$16 sps:$4 sm:$0xff]  }
  0x20   : > { %1126 = vmatprep.subr.bf16.mxu0 %v2199_v28  ;;  %1352 = vmatprep.subr.bf16.mxu1 %v2201_v29  ;;  %v2270_v13 = vld [vmem:[%s2573_s27 + $0x20] ss:$16 sps:$4 sm:$0xff]   ;;  %v2274_v15 = vld [vmem:[%s2899_s1 + $0x248] ss:$16 sps:$4 sm:$0xff]   ;;  %v2279_v16 = vld [vmem:[%s2899_s1 + $0x264] ss:$16 sps:$4 sm:$0xff]  }
  0x21   : > { %v2271_v14 = vld [vmem:[%s2899_s1 + $0x240] ss:$16 sps:$4 sm:$0xff]   ;;  %v2282_v17 = vld [vmem:[%s2899_s1 + $0x26c] ss:$16 sps:$4 sm:$0xff]   ;;  %v2283_v18 = vld [vmem:[%s2573_s27 + $0x44] ss:$16 sps:$4 sm:$0xff]  }
  0x22   : > { %v2277_v19 = vld [vmem:[%s2899_s1 + $0x260] ss:$16 sps:$4 sm:$0xff]   ;;  %v2280_v20 = vld [vmem:[%s2899_s1 + $0x268] ss:$16 sps:$4 sm:$0xff]   ;;  %v2288_v21 = vld [vmem:[%s2899_s1 + $0x284] ss:$16 sps:$4 sm:$0xff]  }
  0x23   : > { %1127 = vmatpush1.bf16.msra.mxu0 %v2203_v30  ;;  %1353 = vmatpush1.bf16.msra.mxu1 %v2204_v31  ;;  %v2291_v22 = vld [vmem:[%s2899_s1 + $0x28c] ss:$16 sps:$4 sm:$0xff]   ;;  %v2285_v23 = vld [vmem:[%s2573_s27 + $0x40] ss:$16 sps:$4 sm:$0xff]   ;;  %v2289_v25 = vld [vmem:[%s2899_s1 + $0x288] ss:$16 sps:$4 sm:$0xff]  }
  0x24   : > { %1128 = vmatprep.subr.bf16.mxu0 %v2205_v32  ;;  %1354 = vmatprep.subr.bf16.mxu1 %v2207_v33  ;;  %v2286_v24 = vld [vmem:[%s2899_s1 + $0x280] ss:$16 sps:$4 sm:$0xff]   ;;  %v2294_v26 = vld [vmem:[%s2899_s1 + $0x2a4] ss:$16 sps:$4 sm:$0xff]   ;;  %v2297_v27 = vld [vmem:[%s2899_s1 + $0x2ac] ss:$16 sps:$4 sm:$0xff]  }
  0x25   : > { %v2298_v28 = vld [vmem:[%s2573_s27 + $0x64] ss:$16 sps:$4 sm:$0xff]   ;;  %v2292_v29 = vld [vmem:[%s2899_s1 + $0x2a0] ss:$16 sps:$4 sm:$0xff]   ;;  %v2295_v30 = vld [vmem:[%s2899_s1 + $0x2a8] ss:$16 sps:$4 sm:$0xff]  }
  0x26   : > { %v2303_v31 = vld [vmem:[%s2899_s1 + $0x2c4] ss:$16 sps:$4 sm:$0xff]   ;;  %v2306_v32 = vld [vmem:[%s2899_s1 + $0x2cc] ss:$16 sps:$4 sm:$0xff]   ;;  %v2300_v33 = vld [vmem:[%s2573_s27 + $0x60] ss:$16 sps:$4 sm:$0xff]  }
  0x27   : > { %1129 = vmatpush1.bf16.msra.mxu0 %v2209_v34  ;;  %1355 = vmatpush1.bf16.msra.mxu1 %v2210_v35  ;;  %v2301_v34 = vld [vmem:[%s2899_s1 + $0x2c0] ss:$16 sps:$4 sm:$0xff]   ;;  %v2304_v35 = vld [vmem:[%s2899_s1 + $0x2c8] ss:$16 sps:$4 sm:$0xff]   ;;  %v2328_v48 = vld [vmem:[%s2573_s27 + $0xa4] ss:$16 sps:$4 sm:$0xff]  }
  0x28   : > { %1130 = vmatprep.subr.bf16.mxu0 %v2211_v36  ;;  %1356 = vmatprep.subr.bf16.mxu1 %v2213_v37  ;;  %v2309_v36 = vld [vmem:[%s2899_s1 + $0x2e4] ss:$16 sps:$4 sm:$0xff]   ;;  %v2312_v37 = vld [vmem:[%s2899_s1 + $0x2ec] ss:$16 sps:$4 sm:$0xff]  }
  0x2b   : > { %1131 = vmatpush1.bf16.msra.mxu0 %v2215_v38  ;;  %1357 = vmatpush1.bf16.msra.mxu1 %v2216_v39  ;;  %v2313_v38 = vld [vmem:[%s2573_s27 + $0x84] ss:$16 sps:$4 sm:$0xff]   ;;  %v2307_v39 = vld [vmem:[%s2899_s1 + $0x2e0] ss:$16 sps:$4 sm:$0xff]  }
  0x2c   : > { %1132 = vmatprep.subr.bf16.mxu0 %v2217_v40  ;;  %1358 = vmatprep.subr.bf16.mxu1 %v2219_v41  ;;  %v2310_v40 = vld [vmem:[%s2899_s1 + $0x2e8] ss:$16 sps:$4 sm:$0xff]   ;;  %v2318_v41 = vld [vmem:[%s2899_s1 + $0x304] ss:$16 sps:$4 sm:$0xff]  }
  0x2f   : > { %1133 = vmatpush1.bf16.msra.mxu0 %v2221_v42  ;;  %1359 = vmatpush1.bf16.msra.mxu1 %v2222_v43  ;;  %v2321_v42 = vld [vmem:[%s2899_s1 + $0x30c] ss:$16 sps:$4 sm:$0xff]   ;;  %v2315_v43 = vld [vmem:[%s2573_s27 + $0x80] ss:$16 sps:$4 sm:$0xff]  }
  0x30   : > { %1134 = vmatprep.subr.bf16.mxu0 %v2223_v44  ;;  %1360 = vmatprep.subr.bf16.mxu1 %v2225_v45  ;;  %v2316_v44 = vld [vmem:[%s2899_s1 + $0x300] ss:$16 sps:$4 sm:$0xff]   ;;  %v2319_v45 = vld [vmem:[%s2899_s1 + $0x308] ss:$16 sps:$4 sm:$0xff]  }
  0x33   : > { %1135 = vmatpush1.bf16.msra.mxu0 %v2227_v46  ;;  %1361 = vmatpush1.bf16.msra.mxu1 %v2228_v47  ;;  %v2324_v46 = vld [vmem:[%s2899_s1 + $0x324] ss:$16 sps:$4 sm:$0xff]   ;;  %v2327_v47 = vld [vmem:[%s2899_s1 + $0x32c] ss:$16 sps:$4 sm:$0xff]  }
  0x34   : > { %1136 = vmatprep.subr.bf16.mxu0 %v2229_v49  ;;  %1362 = vmatprep.subr.bf16.mxu1 %v2231_v50  ;;  %v2322_v49 = vld [vmem:[%s2899_s1 + $0x320] ss:$16 sps:$4 sm:$0xff]   ;;  %v2325_v50 = vld [vmem:[%s2899_s1 + $0x328] ss:$16 sps:$4 sm:$0xff]  }
  0x37   : > { %1137 = vmatpush1.bf16.msra.mxu0 %v2233_v51  ;;  %1363 = vmatpush1.bf16.msra.mxu1 %v2234_v52  ;;  %v2333_v51 = vld [vmem:[%s2899_s1 + $0x344] ss:$16 sps:$4 sm:$0xff]   ;;  %v2336_v52 = vld [vmem:[%s2899_s1 + $0x34c] ss:$16 sps:$4 sm:$0xff]  }
  0x38   : > { %1138 = vmatprep.subr.bf16.mxu0 %v2235_v53  ;;  %1364 = vmatprep.subr.bf16.mxu1 %v2237_v54  ;;  %v2330_v53 = vld [vmem:[%s2573_s27 + $0xa0] ss:$16 sps:$4 sm:$0xff]  }
  0x39   : > { %v2331_v54 = vld [vmem:[%s2899_s1 + $0x340] ss:$16 sps:$4 sm:$0xff]  }
  0x3b   : > { %1139 = vmatpush1.bf16.msra.mxu0 %v2239_v55  ;;  %1365 = vmatpush1.bf16.msra.mxu1 %v2240_v56  ;;  %v2334_v55 = vld [vmem:[%s2899_s1 + $0x348] ss:$16 sps:$4 sm:$0xff]   ;;  %v2339_v56 = vld [vmem:[%s2899_s1 + $0x364] ss:$16 sps:$4 sm:$0xff]  }
  0x3c   : > { %1140 = vmatprep.subr.bf16.mxu0 %v2241_v57  ;;  %1366 = vmatprep.subr.bf16.mxu1 %v2243_v58  ;;  %v2342_v57 = vld [vmem:[%s2899_s1 + $0x36c] ss:$16 sps:$4 sm:$0xff]   ;;  %v2343_v58 = vld [vmem:[%s2573_s27 + $0xc4] ss:$16 sps:$4 sm:$0xff]  }
  0x3f   : > { %1141 = vmatpush1.bf16.msra.mxu0 %v2245_v59  ;;  %1367 = vmatpush1.bf16.msra.mxu1 %v2246_v60  ;;  %v2337_v59 = vld [vmem:[%s2899_s1 + $0x360] ss:$16 sps:$4 sm:$0xff]   ;;  %v2340_v60 = vld [vmem:[%s2899_s1 + $0x368] ss:$16 sps:$4 sm:$0xff]  }
  0x40   : > { %1142 = vmatprep.subr.bf16.mxu0 %v2247_v61  ;;  %1368 = vmatprep.subr.bf16.mxu1 %v2249_v62  ;;  %v2348_v61 = vld [vmem:[%s2899_s1 + $0x384] ss:$16 sps:$4 sm:$0xff]   ;;  %v2351_v62 = vld [vmem:[%s2899_s1 + $0x38c] ss:$16 sps:$4 sm:$0xff]  }
  0x43   : > { %1143 = vmatpush1.bf16.msra.mxu0 %v2251_v63  ;;  %1369 = vmatpush1.bf16.msra.mxu1 %v2252_v0  ;;  %v2345_v63 = vld [vmem:[%s2573_s27 + $0xc0] ss:$16 sps:$4 sm:$0xff]  }
  0x44   : > { %1225 = vmatprep.subr.bf16.mxu0 %v2258_v1  ;;  %1451 = vmatprep.subr.bf16.mxu1 %v2261_v2  ;;  %v2346_v0 = vld [vmem:[%s2899_s1 + $0x380] ss:$16 sps:$4 sm:$0xff]   ;;  %v2349_v1 = vld [vmem:[%s2899_s1 + $0x388] ss:$16 sps:$4 sm:$0xff]   ;;  %v2354_v2 = vld [vmem:[%s2899_s1 + $0x3a4] ss:$16 sps:$4 sm:$0xff]  }
  0x46   : > { %1145 = vmatmul.mubr.bf16.vlgmr.msra.gmra.mrb[0].mxu0 %v2253_v3  ;;  %1371 = vmatmul.mubr.bf16.vlgmr.msra.gmra.mrb[0].mxu1 %v2253_v3  ;;  %v2357_v3 = vld [vmem:[%s2899_s1 + $0x3ac] ss:$16 sps:$4 sm:$0xff]  }
  0x47   : > { %1226 = vmatpush1.bf16.msra.mxu0 %v2256_v4  ;;  %1452 = vmatpush1.bf16.msra.mxu1 %v2259_v5  ;;  %v2358_v4 = vld [vmem:[%s2573_s27 + $0xe4] ss:$16 sps:$4 sm:$0xff]   ;;  %v2352_v5 = vld [vmem:[%s2899_s1 + $0x3a0] ss:$16 sps:$4 sm:$0xff]  }
  0x48   : > { %1227 = vmatprep.subr.bf16.mxu0 %v2264_v6  ;;  %1453 = vmatprep.subr.bf16.mxu1 %v2267_v7  ;;  %v2355_v6 = vld [vmem:[%s2899_s1 + $0x3a8] ss:$16 sps:$4 sm:$0xff]   ;;  %v2363_v7 = vld [vmem:[%s2899_s1 + $0x3c4] ss:$16 sps:$4 sm:$0xff]  }
  0x49   : > { %1154 = vmatprep.mubr.bf16.mxu0 %v2268_v8  ;;  %1380 = vmatprep.mubr.bf16.mxu1 %v2268_v8  ;;  %v2366_v8 = vld [vmem:[%s2899_s1 + $0x3cc] ss:$16 sps:$4 sm:$0xff]  }
  0x4b   : > { %1228 = vmatpush1.bf16.msra.mxu0 %v2262_v9  ;;  %1454 = vmatpush1.bf16.msra.mxu1 %v2265_v10  ;;  %v2360_v9 = vld [vmem:[%s2573_s27 + $0xe0] ss:$16 sps:$4 sm:$0xff]  }
  0x4c   : > { %1229 = vmatprep.subr.bf16.mxu0 %v2273_v11  ;;  %1455 = vmatprep.subr.bf16.mxu1 %v2276_v12  ;;  %v2361_v10 = vld [vmem:[%s2899_s1 + $0x3c0] ss:$16 sps:$4 sm:$0xff]   ;;  %v2364_v11 = vld [vmem:[%s2899_s1 + $0x3c8] ss:$16 sps:$4 sm:$0xff]   ;;  %v2369_v12 = vld [vmem:[%s2899_s1 + $0x3e4] ss:$16 sps:$4 sm:$0xff]  }
  0x4e   : > { %1155 = vmatmul.mubr.bf16.gmra.mrb[4].mxu0 %v2270_v13  ;;  %1381 = vmatmul.mubr.bf16.gmra.mrb[4].mxu1 %v2270_v13  ;;  %v2372_v13 = vld [vmem:[%s2899_s1 + $0x3ec] ss:$16 sps:$4 sm:$0xff]  }
  0x4f   : > { %1230 = vmatpush1.bf16.msra.mxu0 %v2271_v14  ;;  %1456 = vmatpush1.bf16.msra.mxu1 %v2274_v15  ;;  %v2375_v14 = vld [vmem:[%s2573_s27 + $0xc] ss:$16 sps:$4 sm:$0xff]   ;;  %v2367_v15 = vld [vmem:[%s2899_s1 + $0x3e0] ss:$16 sps:$4 sm:$0xff]  }
  0x50   : > { %1231 = vmatprep.subr.bf16.mxu0 %v2279_v16  ;;  %1457 = vmatprep.subr.bf16.mxu1 %v2282_v17  ;;  %v2370_v16 = vld [vmem:[%s2899_s1 + $0x3e8] ss:$16 sps:$4 sm:$0xff]  }
  0x51   : > { %1164 = vmatprep.mubr.bf16.mxu0 %v2283_v18  ;;  %1390 = vmatprep.mubr.bf16.mxu1 %v2283_v18  ;;  %v2373_v17 = vld [vmem:[%s2573_s27 + $0x8] ss:$16 sps:$4 sm:$0xff]   ;;  %v2376_v18 = vld [vmem:[%s2573_s27 + $0x2c] ss:$16 sps:$4 sm:$0xff]  }
  0x53   : > { %1232 = vmatpush1.bf16.msra.mxu0 %v2277_v19  ;;  %1458 = vmatpush1.bf16.msra.mxu1 %v2280_v20  ;;  %v2378_v19 = vld [vmem:[%s2573_s27 + $0x28] ss:$16 sps:$4 sm:$0xff]   ;;  %v2379_v20 = vld [vmem:[%s2573_s27 + $0x4c] ss:$16 sps:$4 sm:$0xff]  }
  0x54   : > { %1233 = vmatprep.subr.bf16.mxu0 %v2288_v21  ;;  %1459 = vmatprep.subr.bf16.mxu1 %v2291_v22  ;;  %v2381_v21 = vld [vmem:[%s2573_s27 + $0x48] ss:$16 sps:$4 sm:$0xff]   ;;  %v2382_v22 = vld [vmem:[%s2573_s27 + $0x6c] ss:$16 sps:$4 sm:$0xff]  }
  0x56   : > { %1165 = vmatmul.mubr.bf16.gmra.mrb[8].mxu0 %v2285_v23  ;;  %1391 = vmatmul.mubr.bf16.gmra.mrb[8].mxu1 %v2285_v23  ;;  %v2384_v23 = vld [vmem:[%s2573_s27 + $0x68] ss:$16 sps:$4 sm:$0xff]  }
  0x57   : > { %1234 = vmatpush1.bf16.msra.mxu0 %v2286_v24  ;;  %1460 = vmatpush1.bf16.msra.mxu1 %v2289_v25  ;;  %v2385_v24 = vld [vmem:[%s2573_s27 + $0x8c] ss:$16 sps:$4 sm:$0xff]   ;;  %v2387_v25 = vld [vmem:[%s2573_s27 + $0x88] ss:$16 sps:$4 sm:$0xff]  }
  0x58   : > { %1235 = vmatprep.subr.bf16.mxu0 %v2294_v26  ;;  %1461 = vmatprep.subr.bf16.mxu1 %v2297_v27  ;;  %v2388_v26 = vld [vmem:[%s2573_s27 + $0xac] ss:$16 sps:$4 sm:$0xff]   ;;  %v2390_v27 = vld [vmem:[%s2573_s27 + $0xa8] ss:$16 sps:$4 sm:$0xff]  }
  0x59   : > { %1174 = vmatprep.mubr.bf16.mxu0 %v2298_v28  ;;  %1400 = vmatprep.mubr.bf16.mxu1 %v2298_v28  ;;  %v2391_v28 = vld [vmem:[%s2573_s27 + $0xcc] ss:$16 sps:$4 sm:$0xff]  }
  0x5b   : > { %1236 = vmatpush1.bf16.msra.mxu0 %v2292_v29  ;;  %1462 = vmatpush1.bf16.msra.mxu1 %v2295_v30  ;;  %v2393_v29 = vld [vmem:[%s2573_s27 + $0xc8] ss:$16 sps:$4 sm:$0xff]   ;;  %v2394_v30 = vld [vmem:[%s2573_s27 + $0xec] ss:$16 sps:$4 sm:$0xff]  }
  0x5c   : > { %1237 = vmatprep.subr.bf16.mxu0 %v2303_v31  ;;  %1463 = vmatprep.subr.bf16.mxu1 %v2306_v32  ;;  %v2396_v31 = vld [vmem:[%s2573_s27 + $0xe8] ss:$16 sps:$4 sm:$0xff]  }
  0x5e   : > { %1175 = vmatmul.mubr.bf16.gmra.mrb[12].mxu0 %v2300_v33  ;;  %1401 = vmatmul.mubr.bf16.gmra.mrb[12].mxu1 %v2300_v33 }
  0x5f   : > { %1238 = vmatpush1.bf16.msra.mxu0 %v2301_v34  ;;  %1464 = vmatpush1.bf16.msra.mxu1 %v2304_v35 }
  0x60   : > { %1239 = vmatprep.subr.bf16.mxu0 %v2309_v36  ;;  %1465 = vmatprep.subr.bf16.mxu1 %v2312_v37 }
  0x61   : > { %1184 = vmatprep.mubr.bf16.mxu0 %v2313_v38  ;;  %1410 = vmatprep.mubr.bf16.mxu1 %v2313_v38 }
  0x63   : > { %1240 = vmatpush1.bf16.msra.mxu0 %v2307_v39  ;;  %1466 = vmatpush1.bf16.msra.mxu1 %v2310_v40 }
  0x64   : > { %1241 = vmatprep.subr.bf16.mxu0 %v2318_v41  ;;  %1467 = vmatprep.subr.bf16.mxu1 %v2321_v42 }
  0x66   : > { %1185 = vmatmul.mubr.bf16.gmra.mrb[16].mxu0 %v2315_v43  ;;  %1411 = vmatmul.mubr.bf16.gmra.mrb[16].mxu1 %v2315_v43 }
  0x67   : > { %1242 = vmatpush1.bf16.msra.mxu0 %v2316_v44  ;;  %1468 = vmatpush1.bf16.msra.mxu1 %v2319_v45 }
  0x68   : > { %1243 = vmatprep.subr.bf16.mxu0 %v2324_v46  ;;  %1469 = vmatprep.subr.bf16.mxu1 %v2327_v47 }
  0x69   : > { %1194 = vmatprep.mubr.bf16.mxu0 %v2328_v48  ;;  %1420 = vmatprep.mubr.bf16.mxu1 %v2328_v48 }
  0x6b   : > { %1244 = vmatpush1.bf16.msra.mxu0 %v2322_v49  ;;  %1470 = vmatpush1.bf16.msra.mxu1 %v2325_v50 }
  0x6c   : > { %1245 = vmatprep.subr.bf16.mxu0 %v2333_v51  ;;  %1471 = vmatprep.subr.bf16.mxu1 %v2336_v52 }
  0x6e   : > { %1195 = vmatmul.mubr.bf16.gmra.mrb[20].mxu0 %v2330_v53  ;;  %1421 = vmatmul.mubr.bf16.gmra.mrb[20].mxu1 %v2330_v53 }
  0x6f   : > { %1246 = vmatpush1.bf16.msra.mxu0 %v2331_v54  ;;  %1472 = vmatpush1.bf16.msra.mxu1 %v2334_v55 }
  0x70   : > { %1247 = vmatprep.subr.bf16.mxu0 %v2339_v56  ;;  %1473 = vmatprep.subr.bf16.mxu1 %v2342_v57 }
  0x71   : > { %1204 = vmatprep.mubr.bf16.mxu0 %v2343_v58  ;;  %1430 = vmatprep.mubr.bf16.mxu1 %v2343_v58 }
  0x73   : > { %1248 = vmatpush1.bf16.msra.mxu0 %v2337_v59  ;;  %1474 = vmatpush1.bf16.msra.mxu1 %v2340_v60 }
  0x74   : > { %1249 = vmatprep.subr.bf16.mxu0 %v2348_v61  ;;  %1475 = vmatprep.subr.bf16.mxu1 %v2351_v62 }
  0x76   : > { %1205 = vmatmul.mubr.bf16.gmra.mrb[24].mxu0 %v2345_v63  ;;  %1431 = vmatmul.mubr.bf16.gmra.mrb[24].mxu1 %v2345_v63 }
  0x77   : > { %1250 = vmatpush1.bf16.msra.mxu0 %v2346_v0  ;;  %1476 = vmatpush1.bf16.msra.mxu1 %v2349_v1 }
  0x78   : > { %1251 = vmatprep.subr.bf16.mxu0 %v2354_v2  ;;  %1477 = vmatprep.subr.bf16.mxu1 %v2357_v3 }
  0x79   : > { %1214 = vmatprep.mubr.bf16.mxu0 %v2358_v4  ;;  %1440 = vmatprep.mubr.bf16.mxu1 %v2358_v4 }
  0x7b   : > { %1252 = vmatpush1.bf16.msra.mxu0 %v2352_v5  ;;  %1478 = vmatpush1.bf16.msra.mxu1 %v2355_v6 }
  0x7c   : > { %1253 = vmatprep.subr.bf16.mxu0 %v2363_v7  ;;  %1479 = vmatprep.subr.bf16.mxu1 %v2366_v8 }
  0x7e   : > { %1215 = vmatmul.mubr.bf16.gmra.mrb[28].mxu0 %v2360_v9  ;;  %1441 = vmatmul.mubr.bf16.gmra.mrb[28].mxu1 %v2360_v9 }
  0x7f   : > { %1254 = vmatpush1.bf16.msra.mxu0 %v2361_v10  ;;  %1480 = vmatpush1.bf16.msra.mxu1 %v2364_v11 }
  0x80   : > { %1255 = vmatprep.subr.bf16.mxu0 %v2369_v12  ;;  %1481 = vmatprep.subr.bf16.mxu1 %v2372_v13 }
  0x81   : > { %1257 = vmatprep.mubr.bf16.mxu0 %v2375_v14  ;;  %1483 = vmatprep.mubr.bf16.mxu1 %v2375_v14 }
  0x83   : > { %1256 = vmatpush1.bf16.msra.mxu0 %v2367_v15  ;;  %1482 = vmatpush1.bf16.msra.mxu1 %v2370_v16 }
  0x86   : > { %1258 = vmatmul.mubr.bf16.vlgmr.msra.gmra.mrb[0].mxu0 %v2373_v17  ;;  %1484 = vmatmul.mubr.bf16.vlgmr.msra.gmra.mrb[0].mxu1 %v2373_v17 }
  0x87   : > { %1267 = vmatprep.mubr.bf16.mxu0 %v2376_v18  ;;  %1493 = vmatprep.mubr.bf16.mxu1 %v2376_v18 }
  0x8e   : > { %1268 = vmatmul.mubr.bf16.gmra.mrb[4].mxu0 %v2378_v19  ;;  %1494 = vmatmul.mubr.bf16.gmra.mrb[4].mxu1 %v2378_v19 }
  0x8f   : > { %1277 = vmatprep.mubr.bf16.mxu0 %v2379_v20  ;;  %1503 = vmatprep.mubr.bf16.mxu1 %v2379_v20 }
  0x96   : > { %1278 = vmatmul.mubr.bf16.gmra.mrb[8].mxu0 %v2381_v21  ;;  %1504 = vmatmul.mubr.bf16.gmra.mrb[8].mxu1 %v2381_v21 }
  0x97   : > { %1287 = vmatprep.mubr.bf16.mxu0 %v2382_v22  ;;  %1513 = vmatprep.mubr.bf16.mxu1 %v2382_v22 }
  0x9e   : > { %1288 = vmatmul.mubr.bf16.gmra.mrb[12].mxu0 %v2384_v23  ;;  %1514 = vmatmul.mubr.bf16.gmra.mrb[12].mxu1 %v2384_v23 }
  0x9f   : > { %1297 = vmatprep.mubr.bf16.mxu0 %v2385_v24  ;;  %1523 = vmatprep.mubr.bf16.mxu1 %v2385_v24 }
  0xa6   : > { %1298 = vmatmul.mubr.bf16.gmra.mrb[16].mxu0 %v2387_v25  ;;  %1524 = vmatmul.mubr.bf16.gmra.mrb[16].mxu1 %v2387_v25 }
  0xa7   : > { %1307 = vmatprep.mubr.bf16.mxu0 %v2388_v26  ;;  %1533 = vmatprep.mubr.bf16.mxu1 %v2388_v26 }
  0xae   : > { %1308 = vmatmul.mubr.bf16.gmra.mrb[20].mxu0 %v2390_v27  ;;  %1534 = vmatmul.mubr.bf16.gmra.mrb[20].mxu1 %v2390_v27 }
  0xaf   : > { %1317 = vmatprep.mubr.bf16.mxu0 %v2391_v28  ;;  %1543 = vmatprep.mubr.bf16.mxu1 %v2391_v28 }
  0xb6   : > { %1318 = vmatmul.mubr.bf16.gmra.mrb[24].mxu0 %v2393_v29  ;;  %1544 = vmatmul.mubr.bf16.gmra.mrb[24].mxu1 %v2393_v29 }
  0xb7   : > { %1327 = vmatprep.mubr.bf16.mxu0 %v2394_v30  ;;  %1553 = vmatprep.mubr.bf16.mxu1 %v2394_v30 }
  0xbe   : > { %1328 = vmatmul.mubr.bf16.gmra.mrb[28].mxu0 %v2396_v31  ;;  %1554 = vmatmul.mubr.bf16.gmra.mrb[28].mxu1 %v2396_v31 }
 0x159   : > { %v1259_v32 = vpop.f32.mrb[0].mxu0  ;;  %v1485_v33 = vpop.f32.mrb[0].mxu1 }
 0x15a   : > { %v1261_v34 = vpop.f32.mrb[1].mxu0  ;;  %v1487_v35 = vpop.f32.mrb[1].mxu1 }
 0x15b   : > { %v2053_v36 = vpack.c.bf16 %v1261_v34, %v1259_v32  ;;  %v2054_v37 = vpack.c.bf16 %v1487_v35, %v1485_v33  ;;  %v1263_v38 = vpop.f32.mrb[2].mxu0  ;;  %v1489_v39 = vpop.f32.mrb[2].mxu1 }
 0x15c   : > { %v1265_v40 = vpop.f32.mrb[3].mxu0  ;;  %v1491_v41 = vpop.f32.mrb[3].mxu1 }
 0x15d   : > { %1756 = vst [vmem:[%s2861_s10] sm:$0xff] %v2053_v36  ;;  %1757 = vst [vmem:[%s2861_s10 + $0x8] sm:$0xff] %v2054_v37  ;;  %v2055_v42 = vpack.c.bf16 %v1265_v40, %v1263_v38  ;;  %v2056_v43 = vpack.c.bf16 %v1491_v41, %v1489_v39 }
 0x15f   : > { %1758 = vst [vmem:[%s2861_s10 + $0x10] sm:$0xff] %v2055_v42  ;;  %1759 = vst [vmem:[%s2861_s10 + $0x18] sm:$0xff] %v2056_v43 }
 0x161   : > { %v1269_v44 = vpop.f32.mrb[4].mxu0  ;;  %v1495_v45 = vpop.f32.mrb[4].mxu1 }
 0x162   : > { %v1271_v46 = vpop.f32.mrb[5].mxu0  ;;  %v1497_v47 = vpop.f32.mrb[5].mxu1 }
 0x163   : > { %v2057_v48 = vpack.c.bf16 %v1271_v46, %v1269_v44  ;;  %v2058_v49 = vpack.c.bf16 %v1497_v47, %v1495_v45  ;;  %v1273_v50 = vpop.f32.mrb[6].mxu0  ;;  %v1499_v51 = vpop.f32.mrb[6].mxu1 }
 0x164   : > { %v1275_v52 = vpop.f32.mrb[7].mxu0  ;;  %v1501_v53 = vpop.f32.mrb[7].mxu1 }
 0x165   : > { %1760 = vst [vmem:[%s2861_s10 + $0x20] sm:$0xff] %v2057_v48  ;;  %1761 = vst [vmem:[%s2861_s10 + $0x28] sm:$0xff] %v2058_v49  ;;  %v2059_v54 = vpack.c.bf16 %v1275_v52, %v1273_v50  ;;  %v2060_v55 = vpack.c.bf16 %v1501_v53, %v1499_v51 }
 0x167   : > { %1762 = vst [vmem:[%s2861_s10 + $0x30] sm:$0xff] %v2059_v54  ;;  %1763 = vst [vmem:[%s2861_s10 + $0x38] sm:$0xff] %v2060_v55 }
 0x169   : > { %v1279_v56 = vpop.f32.mrb[8].mxu0  ;;  %v1505_v57 = vpop.f32.mrb[8].mxu1 }
 0x16a   : > { %v1281_v58 = vpop.f32.mrb[9].mxu0  ;;  %v1507_v59 = vpop.f32.mrb[9].mxu1 }
 0x16b   : > { %v2061_v60 = vpack.c.bf16 %v1281_v58, %v1279_v56  ;;  %v2062_v61 = vpack.c.bf16 %v1507_v59, %v1505_v57  ;;  %v1283_v62 = vpop.f32.mrb[10].mxu0  ;;  %v1509_v63 = vpop.f32.mrb[10].mxu1 }
 0x16c   : > { %v1285_v0 = vpop.f32.mrb[11].mxu0  ;;  %v1511_v1 = vpop.f32.mrb[11].mxu1 }
 0x16d   : > { %1764 = vst [vmem:[%s2861_s10 + $0x40] sm:$0xff] %v2061_v60  ;;  %1765 = vst [vmem:[%s2861_s10 + $0x48] sm:$0xff] %v2062_v61  ;;  %v2063_v2 = vpack.c.bf16 %v1285_v0, %v1283_v62  ;;  %v2064_v3 = vpack.c.bf16 %v1511_v1, %v1509_v63 }
 0x16f   : > { %1766 = vst [vmem:[%s2861_s10 + $0x50] sm:$0xff] %v2063_v2  ;;  %1767 = vst [vmem:[%s2861_s10 + $0x58] sm:$0xff] %v2064_v3 }
 0x171   : > { %v1289_v4 = vpop.f32.mrb[12].mxu0  ;;  %v1515_v5 = vpop.f32.mrb[12].mxu1 }
 0x172   : > { %v1291_v6 = vpop.f32.mrb[13].mxu0  ;;  %v1517_v7 = vpop.f32.mrb[13].mxu1 }
 0x173   : > { %v2065_v8 = vpack.c.bf16 %v1291_v6, %v1289_v4  ;;  %v2066_v9 = vpack.c.bf16 %v1517_v7, %v1515_v5  ;;  %v1293_v10 = vpop.f32.mrb[14].mxu0  ;;  %v1519_v11 = vpop.f32.mrb[14].mxu1 }
 0x174   : > { %v1295_v12 = vpop.f32.mrb[15].mxu0  ;;  %v1521_v13 = vpop.f32.mrb[15].mxu1 }
 0x175   : > { %1768 = vst [vmem:[%s2861_s10 + $0x60] sm:$0xff] %v2065_v8  ;;  %1769 = vst [vmem:[%s2861_s10 + $0x68] sm:$0xff] %v2066_v9  ;;  %v2067_v14 = vpack.c.bf16 %v1295_v12, %v1293_v10  ;;  %v2068_v15 = vpack.c.bf16 %v1521_v13, %v1519_v11 }
 0x177   : > { %1770 = vst [vmem:[%s2861_s10 + $0x70] sm:$0xff] %v2067_v14  ;;  %1771 = vst [vmem:[%s2861_s10 + $0x78] sm:$0xff] %v2068_v15 }
 0x179   : > { %v1299_v16 = vpop.f32.mrb[16].mxu0  ;;  %v1525_v17 = vpop.f32.mrb[16].mxu1 }
 0x17a   : > { %v1301_v18 = vpop.f32.mrb[17].mxu0  ;;  %v1527_v19 = vpop.f32.mrb[17].mxu1 }
 0x17b   : > { %v2069_v20 = vpack.c.bf16 %v1301_v18, %v1299_v16  ;;  %v2070_v21 = vpack.c.bf16 %v1527_v19, %v1525_v17  ;;  %v1303_v22 = vpop.f32.mrb[18].mxu0  ;;  %v1529_v23 = vpop.f32.mrb[18].mxu1 }
 0x17c   : > { %v1305_v24 = vpop.f32.mrb[19].mxu0  ;;  %v1531_v25 = vpop.f32.mrb[19].mxu1 }
 0x17d   : > { %1772 = vst [vmem:[%s2861_s10 + $0x80] sm:$0xff] %v2069_v20  ;;  %1773 = vst [vmem:[%s2861_s10 + $0x88] sm:$0xff] %v2070_v21  ;;  %v2071_v26 = vpack.c.bf16 %v1305_v24, %v1303_v22  ;;  %v2072_v27 = vpack.c.bf16 %v1531_v25, %v1529_v23 }
 0x17f   : > { %1774 = vst [vmem:[%s2861_s10 + $0x90] sm:$0xff] %v2071_v26  ;;  %1775 = vst [vmem:[%s2861_s10 + $0x98] sm:$0xff] %v2072_v27 }
 0x181   : > { %v1309_v28 = vpop.f32.mrb[20].mxu0  ;;  %v1535_v29 = vpop.f32.mrb[20].mxu1 }
 0x182   : > { %v1311_v30 = vpop.f32.mrb[21].mxu0  ;;  %v1537_v31 = vpop.f32.mrb[21].mxu1 }
 0x183   : > { %v2073_v32 = vpack.c.bf16 %v1311_v30, %v1309_v28  ;;  %v2074_v33 = vpack.c.bf16 %v1537_v31, %v1535_v29  ;;  %v1313_v34 = vpop.f32.mrb[22].mxu0  ;;  %v1539_v35 = vpop.f32.mrb[22].mxu1 }
 0x184   : > { %v1315_v36 = vpop.f32.mrb[23].mxu0  ;;  %v1541_v37 = vpop.f32.mrb[23].mxu1 }
 0x185   : > { %1776 = vst [vmem:[%s2861_s10 + $0xa0] sm:$0xff] %v2073_v32  ;;  %1777 = vst [vmem:[%s2861_s10 + $0xa8] sm:$0xff] %v2074_v33  ;;  %v2075_v38 = vpack.c.bf16 %v1315_v36, %v1313_v34  ;;  %v2076_v39 = vpack.c.bf16 %v1541_v37, %v1539_v35 }
 0x187   : > { %1778 = vst [vmem:[%s2861_s10 + $0xb0] sm:$0xff] %v2075_v38  ;;  %1779 = vst [vmem:[%s2861_s10 + $0xb8] sm:$0xff] %v2076_v39 }
 0x189   : > { %v1319_v40 = vpop.f32.mrb[24].mxu0  ;;  %v1545_v41 = vpop.f32.mrb[24].mxu1 }
 0x18a   : > { %v1321_v42 = vpop.f32.mrb[25].mxu0  ;;  %v1547_v43 = vpop.f32.mrb[25].mxu1 }
 0x18b   : > { %v2077_v44 = vpack.c.bf16 %v1321_v42, %v1319_v40  ;;  %v2078_v45 = vpack.c.bf16 %v1547_v43, %v1545_v41  ;;  %v1323_v46 = vpop.f32.mrb[26].mxu0  ;;  %v1549_v47 = vpop.f32.mrb[26].mxu1 }
 0x18c   : > { %v1325_v48 = vpop.f32.mrb[27].mxu0  ;;  %v1551_v49 = vpop.f32.mrb[27].mxu1 }
 0x18d   : > { %1780 = vst [vmem:[%s2861_s10 + $0xc0] sm:$0xff] %v2077_v44  ;;  %1781 = vst [vmem:[%s2861_s10 + $0xc8] sm:$0xff] %v2078_v45  ;;  %v2079_v50 = vpack.c.bf16 %v1325_v48, %v1323_v46  ;;  %v2080_v51 = vpack.c.bf16 %v1551_v49, %v1549_v47 }
 0x18f   : > { %1782 = vst [vmem:[%s2861_s10 + $0xd0] sm:$0xff] %v2079_v50  ;;  %1783 = vst [vmem:[%s2861_s10 + $0xd8] sm:$0xff] %v2080_v51 }
 0x191   : > { %v1329_v52 = vpop.f32.mrb[28].mxu0  ;;  %v1555_v53 = vpop.f32.mrb[28].mxu1 }
 0x192   : > { %v1331_v54 = vpop.f32.mrb[29].mxu0  ;;  %v1557_v55 = vpop.f32.mrb[29].mxu1 }
 0x193   : > { %v2081_v56 = vpack.c.bf16 %v1331_v54, %v1329_v52  ;;  %v2082_v57 = vpack.c.bf16 %v1557_v55, %v1555_v53  ;;  %v1333_v58 = vpop.f32.mrb[30].mxu0  ;;  %v1559_v59 = vpop.f32.mrb[30].mxu1 }
 0x194   : > { %v1335_v60 = vpop.f32.mrb[31].mxu0  ;;  %v1561_v61 = vpop.f32.mrb[31].mxu1 }
 0x195   : > { %1784 = vst [vmem:[%s2861_s10 + $0xe0] sm:$0xff] %v2081_v56  ;;  %1785 = vst [vmem:[%s2861_s10 + $0xe8] sm:$0xff] %v2082_v57  ;;  %v2083_v62 = vpack.c.bf16 %v1335_v60, %v1333_v58  ;;  %v2084_v63 = vpack.c.bf16 %v1561_v61, %v1559_v59 }
 0x197   : > { %1786 = vst [vmem:[%s2861_s10 + $0xf0] sm:$0xff] %v2083_v62  ;;  %1787 = vst [vmem:[%s2861_s10 + $0xf8] sm:$0xff] %v2084_v63 }
 0x198 PF: > { %s12_s9 = sadd.s32 1, %s2403_s9  }
 0x199   : > { %p9_p4 = scmp.ge.s32.totalorder %s12_s9, 4  }
 0x19b   :  { %11 = sbr.rel (!%p9_p4) target bundleno = 1 (0x1), region = 58 }

// kernel: gcn_forward.7
= control target key start
LH: loop header
LB: loop body
LE: loop exit
PB: predicated region body
PF: predicated region fallthrough
CT: control target
= control target key end

     0   :  { %s2286_s0 = inlined_call_operand.vmem [shape: s32[2], index: 0, kind: input, shape index: {}]   ;;  %s2287_s2 = inlined_call_operand.vmem [shape: bf16[256,256], index: 2, kind: input, shape index: {}]   ;;  %s2288_s3 = inlined_call_operand.vmem [shape: bf16[2,128,512], index: 3, kind: input, shape index: {}]   ;;  %s2289_s4 = inlined_call_operand.vmem [shape: f32[1,512], index: 4, kind: input, shape index: {}]   ;;  %s2290_s5 = inlined_call_operand.vmem [shape: bf16[256,512], index: 5, kind: output, shape index: {}]   ;;  %s2291_s1 = inlined_call_operand.vmem [shape: s32[2,1], index: 1, kind: input, shape index: {}]  }
   0x1   :  { %s10_s20 = sshll.u32 %s2286_s0, 4  ;;  %s14_s23 = sshll.u32 %s2291_s1, 4  ;;  %s11_s20 = int_to_ptr.vmem [resolvable:$true] %s10_s20  ;;  %s15_s23 = int_to_ptr.vmem [resolvable:$true] %s14_s23 }
   0x2   :  { %s1844_s24 = scalar_lea.vmem %s11_s20, 16  ;;  %p1849_p1 = scmp.lt.s32.totalorder %s11_s20, %s11_s20 }
   0x3   :  { %p1845_p0 = scmp.ne.s32.totalorder %s11_s20, %s1844_s24  ;;  %p1850_p2 = scmp.lt.s32.totalorder %s1844_s24, %s1844_s24 }
   0x5   :  { %p1851_p3 = por %p1850_p2, %p1849_p1 }
   0x7   :  { %p1852_p4 = pnand %p1851_p3, %p1845_p0 }
   0x9   :  { %1855 = shalt.err (!%p1852_p4)  }
   0xa   :  { %s1910_s25 = smov [#allocation4]   ;;  %s1856_s26 = scalar_lea.vmem %s15_s23, 32 }
   0xb   :  { %13 = dma.vmem_to_smem %s11_s20, 16, %s1910_s25, [#allocation3] }
   0xc   :  { %p1857_p5 = scmp.ne.s32.totalorder %s15_s23, %s1856_s26  ;;  %p1861_p6 = scmp.lt.s32.totalorder %s15_s23, %s15_s23 }
   0xd   :  { %p1862_p7 = scmp.lt.s32.totalorder %s1856_s26, %s1856_s26 }
   0xf   :  { %p1863_p8 = por %p1862_p7, %p1861_p6 }
  0x11   :  { %p1864_p9 = pnand %p1863_p8, %p1857_p5 }
  0x13   :  { %1867 = shalt.err (!%p1864_p9)  }
  0x14   :  { %s1911_s0 = smov [#allocation5]  }
  0x15   :  { %17 = dma.vmem_to_smem %s15_s23, 32, %s1911_s0, [#allocation3] }
  0x16   :  { %1888 = dma.done.wait [#allocation3], 48 }
  0x17   :  { %1889 = vsyncadd [#allocation3], 4294967248 }
  0x18   :  { %19 = sfence }
  0x19   :  { %s1950_s1 = smov 0   ;;  %s1952_s27 = smov 0  }
  0x1a   :  { %s1954_s28 = smov 0   ;;  %s1956_s29 = smov 0  }
  0x1b   :  { %s1958_s30 = smov 0  }
  0x1c LB: > { %s37_s6 = sadd.s32 1, %s1904_s29  ;;  %s1616_s7 = sshll.u32 %s1904_s29, 7  ;;  %s1908_s30 = sphi %s1958_s30, %s25_s30   ;;  %s1904_s29 = sphi %s1956_s29, %s2296_s29   ;;  %s1900_s28 = sphi %s1954_s28, %s2295_s28   ;;  %s1896_s27 = sphi %s1952_s27, %s2294_s27   ;;  %s1892_s1 = sphi %s1950_s1, %s2293_s1  }
  0x1d   : > { %p39_p10 = scmp.ge.s32.totalorder %s37_s6, 2  ;;  %p69_p11 = scmp.ne.s32.totalorder %s1896_s27, %s1892_s1 }
  0x1e   : > { %s48_s8 = sld [smem:[#allocation5 + %s1616_s7]]  ;;  %p70_p12 = scmp.eq.s32.totalorder %s1908_s30, 0 }
  0x1f   : > { %s2298_s6 = smov (%p39_p10, %s37_s6), 0  ;;  %s62_s14 = sadd.s32 1, %s1896_s27 }
  0x20   : > { %s1617_s9 = sshll.u32 %s2298_s6, 7  ;;  %p71_p13 = por %p70_p12, %p69_p11 }
  0x21   : > { %s56_s10 = sld [smem:[#allocation5 + %s1617_s9]]  ;;  %s57_s11 = ssub.s32 %s1904_s29, %s2298_s6 }
  0x22   : > { %p1619_p1 = scmp.ge.s32.totalorder %s1908_s30, 2 }
  0x25   : > { %169 = sbr.rel (%p1619_p1) target bundleno = 64 (0x40), region = 24 }
  0x27   : > { %s58_s12 = ssub.s32 %s48_s8, %s56_s10 }
  0x28   : > { %s59_s13 = sor.u32 %s58_s12, %s57_s11 }
  0x29   : > { %p60_p0 = scmp.eq.s32.totalorder %s59_s13, 0 }
  0x2b   : > { %s1987_s15 = scalar_select %p60_p0, %s1896_s27, %s62_s14  }
  0x2c   : > { %172 = sbr.rel (!%p71_p13) target bundleno = 64 (0x40), region = 28  ;;  %s184_s16 = sld [smem:[#allocation5 + %s1616_s7]] (%p71_p13) }
  0x2d   : > { %s174_s17 = sand.u32 (%p71_p13), 1, %s1896_s27   ;;  %s1709_s18 = sshll.u32 (%p71_p13), %s1904_s29, 5 }
  0x2e   : > { %s1620_s19 = sshll.u32 (%p71_p13), %s174_s17, 6 }
  0x2f   : > { %s176_s25 = scalar_lea.vmem (%p71_p13), [#allocation6], %s1620_s19 }
  0x32   : > { %s187_s20 = sadd.s32 (%p71_p13), %s1709_s18, %s184_s16 }
  0x33   : > { %s1624_s21 = sshll.u32 %s187_s20, 2 }
  0x34   : > { %s1995_s24 = scalar_lea.vmem %s2287_s2, %s1624_s21 }
  0x35   : > { %v205_v0 = vld [vmem:[%s1995_s24] sm:$0xf]  ;;  %v207_v1 = vld [vmem:[%s1995_s24 + $0x8] sm:$0xf]  ;;  %v209_v2 = vld [vmem:[%s1995_s24 + $0x10] sm:$0xf] }
  0x36   : > { %206 = vst [vmem:[%s176_s25] sm:$0xf] %v205_v0  ;;  %208 = vst [vmem:[%s176_s25 + $0x4] sm:$0xf] %v207_v1  ;;  %v211_v3 = vld [vmem:[%s1995_s24 + $0x18] sm:$0xf] }
  0x37   : > { %210 = vst [vmem:[%s176_s25 + $0x8] sm:$0xf] %v209_v2  ;;  %v213_v4 = vld [vmem:[%s1995_s24 + $0x20] sm:$0xf]  ;;  %v215_v5 = vld [vmem:[%s1995_s24 + $0x28] sm:$0xf] }
  0x38   : > { %212 = vst [vmem:[%s176_s25 + $0xc] sm:$0xf] %v211_v3  ;;  %214 = vst [vmem:[%s176_s25 + $0x10] sm:$0xf] %v213_v4  ;;  %v217_v6 = vld [vmem:[%s1995_s24 + $0x30] sm:$0xf] }
  0x39   : > { %216 = vst [vmem:[%s176_s25 + $0x14] sm:$0xf] %v215_v5  ;;  %v219_v7 = vld [vmem:[%s1995_s24 + $0x38] sm:$0xf]  ;;  %v221_v8 = vld [vmem:[%s1995_s24 + $0x40] sm:$0xf] }
  0x3a   : > { %218 = vst [vmem:[%s176_s25 + $0x18] sm:$0xf] %v217_v6  ;;  %220 = vst [vmem:[%s176_s25 + $0x1c] sm:$0xf] %v219_v7  ;;  %v223_v9 = vld [vmem:[%s1995_s24 + $0x48] sm:$0xf] }
  0x3b   : > { %222 = vst [vmem:[%s176_s25 + $0x20] sm:$0xf] %v221_v8  ;;  %v225_v10 = vld [vmem:[%s1995_s24 + $0x50] sm:$0xf]  ;;  %v227_v11 = vld [vmem:[%s1995_s24 + $0x58] sm:$0xf] }
  0x3c   : > { %224 = vst [vmem:[%s176_s25 + $0x24] sm:$0xf] %v223_v9  ;;  %226 = vst [vmem:[%s176_s25 + $0x28] sm:$0xf] %v225_v10  ;;  %v229_v12 = vld [vmem:[%s1995_s24 + $0x60] sm:$0xf] }
  0x3d   : > { %228 = vst [vmem:[%s176_s25 + $0x2c] sm:$0xf] %v227_v11  ;;  %v231_v13 = vld [vmem:[%s1995_s24 + $0x68] sm:$0xf]  ;;  %v233_v14 = vld [vmem:[%s1995_s24 + $0x70] sm:$0xf] }
  0x3e   : > { %230 = vst [vmem:[%s176_s25 + $0x30] sm:$0xf] %v229_v12  ;;  %232 = vst [vmem:[%s176_s25 + $0x34] sm:$0xf] %v231_v13  ;;  %v235_v15 = vld [vmem:[%s1995_s24 + $0x78] sm:$0xf] }
  0x3f   : > { %234 = vst [vmem:[%s176_s25 + $0x38] sm:$0xf] %v233_v14  ;;  %236 = vst [vmem:[%s176_s25 + $0x3c] sm:$0xf] %v235_v15 }
  0x40 PF: > { %p1625_p2 = scmp.ge.s32.totalorder %s1908_s30, 1  ;;  %p290_p3 = scmp.lt.s32.totalorder %s1908_s30, 3 }
  0x42   : > { %p291_p4 = pnand %p1625_p2, %p290_p3 }
  0x43   : > { %s297_s26 = sand.u32 (!%p291_p4), 1, %s1892_s1   ;;  %s1627_s0 = sshll.u32 (!%p291_p4), %s1900_s28, 4  ;;  %v1912_v16 = vmov (!%p291_p4), 0.0  }
  0x44   : > { %294 = sbr.rel (%p291_p4) target bundleno = 444 (0x1bc), region = 69  ;;  %s2017_s7 = sshll.u32 (!%p291_p4), %s297_s26, 6  ;;  %342 = vst [vmem:[#allocation2] sm:$0xff] (!%p291_p4), %v1912_v16  ;;  %343 = vst [vmem:[#allocation2 + $0x8] sm:$0xff] (!%p291_p4), %v1912_v16 }
  0x45   : > { %p2021_p5 = scmp.lt.s32.totalorder (!%p291_p4), %s1627_s0, 31  ;;  %344 = vst [vmem:[#allocation2 + $0x10] sm:$0xff] (!%p291_p4), %v1912_v16  ;;  %345 = vst [vmem:[#allocation2 + $0x18] sm:$0xff] (!%p291_p4), %v1912_v16  ;;  %s406_s1 = sld [smem:[#allocation4 + %s1900_s28]] (!%p291_p4) }
  0x46   : > { %346 = vst [vmem:[#allocation2 + $0x20] sm:$0xff] (!%p291_p4), %v1912_v16  ;;  %347 = vst [vmem:[#allocation2 + $0x28] sm:$0xff] (!%p291_p4), %v1912_v16  ;;  %s2100_s13 = scalar_lea.vmem (!%p291_p4), [#allocation6], %s2017_s7 }
  0x47   : > { %348 = vst [vmem:[#allocation2 + $0x30] sm:$0xff] (!%p291_p4), %v1912_v16  ;;  %349 = vst [vmem:[#allocation2 + $0x38] sm:$0xff] (!%p291_p4), %v1912_v16 }
  0x48   : > { %350 = vst [vmem:[#allocation2 + $0x40] sm:$0xff] (!%p291_p4), %v1912_v16  ;;  %351 = vst [vmem:[#allocation2 + $0x48] sm:$0xff] (!%p291_p4), %v1912_v16 }
  0x49   : > { %352 = vst [vmem:[#allocation2 + $0x50] sm:$0xff] (!%p291_p4), %v1912_v16  ;;  %353 = vst [vmem:[#allocation2 + $0x58] sm:$0xff] (!%p291_p4), %v1912_v16 }
  0x4a   : > { %354 = vst [vmem:[#allocation2 + $0x60] sm:$0xff] (!%p291_p4), %v1912_v16  ;;  %355 = vst [vmem:[#allocation2 + $0x68] sm:$0xff] (!%p291_p4), %v1912_v16 }
  0x4b   : > { %356 = vst [vmem:[#allocation2 + $0x70] sm:$0xff] %v1912_v16  ;;  %357 = vst [vmem:[#allocation2 + $0x78] sm:$0xff] %v1912_v16  ;;  %s2300_s0 = smov (!%p2021_p5, %s1627_s0), 31  ;;  %p1631_p6 = scmp.le.s32.totalorder %s406_s1, 0 }
  0x4c   : > { %358 = vst [vmem:[#allocation2 + $0x80] sm:$0xff] %v1912_v16  ;;  %359 = vst [vmem:[#allocation2 + $0x88] sm:$0xff] %v1912_v16  ;;  %s1710_s9 = sshll.u32 %s2300_s0, 4  ;;  %s1632_s14 = sshll.u32 (!%p1631_p6), %s1900_s28, 7  ;;  %v1913_v17 = vmov (!%p1631_p6), 0   ;;  %v1836_v50 = vld [vmem:[%s2100_s13] sm:$0xff] (!%p1631_p6)  }
  0x4d   : > { %360 = vst [vmem:[#allocation2 + $0x90] sm:$0xff] %v1912_v16  ;;  %361 = vst [vmem:[#allocation2 + $0x98] sm:$0xff] %v1912_v16  ;;  %s2097_s12 = scalar_lea.vmem %s2290_s5, %s1710_s9  ;;  %s418_s16 = sld [smem:[#allocation5 + %s1632_s14]] (!%p1631_p6)  ;;  %774 = vmatprep.mubr.bf16.mxu0 (!%p1631_p6), %v1913_v17  ;;  %887 = vmatprep.mubr.bf16.mxu1 (!%p1631_p6), %v1913_v17  ;;  %v1837_v51 = vld [vmem:[%s2100_s13 + $0x8] sm:$0xff] (!%p1631_p6)   ;;  %v1838_v52 = vld [vmem:[%s2100_s13 + $0x10] sm:$0xff] (!%p1631_p6)  }
  0x4e   : > { %362 = vst [vmem:[#allocation2 + $0xa0] sm:$0xff] %v1912_v16  ;;  %363 = vst [vmem:[#allocation2 + $0xa8] sm:$0xff] %v1912_v16  ;;  %v1839_v53 = vld [vmem:[%s2100_s13 + $0x18] sm:$0xff] (!%p1631_p6)   ;;  %v1840_v54 = vld [vmem:[%s2100_s13 + $0x20] sm:$0xff] (!%p1631_p6)  }
  0x4f   : > { %364 = vst [vmem:[#allocation2 + $0xb0] sm:$0xff] %v1912_v16  ;;  %365 = vst [vmem:[#allocation2 + $0xb8] sm:$0xff] %v1912_v16  ;;  %v1841_v55 = vld [vmem:[%s2100_s13 + $0x28] sm:$0xff] (!%p1631_p6)   ;;  %v1842_v56 = vld [vmem:[%s2100_s13 + $0x30] sm:$0xff] (!%p1631_p6)  }
  0x50   : > { %366 = vst [vmem:[#allocation2 + $0xc0] sm:$0xff] %v1912_v16  ;;  %367 = vst [vmem:[#allocation2 + $0xc8] sm:$0xff] %v1912_v16  ;;  %v1843_v57 = vld [vmem:[%s2100_s13 + $0x38] sm:$0xff] (!%p1631_p6)   ;;  %v454_v58 = vld [vmem:[#allocation2] sm:$0xff] (!%p1631_p6) }
  0x51   : > { %368 = vst [vmem:[#allocation2 + $0xd0] sm:$0xff] %v1912_v16  ;;  %369 = vst [vmem:[#allocation2 + $0xd8] sm:$0xff] %v1912_v16  ;;  %v456_v59 = vld [vmem:[#allocation2 + $0x10] sm:$0xff] (!%p1631_p6)  ;;  %v455_v60 = vld [vmem:[#allocation2 + $0x8] sm:$0xff] (!%p1631_p6) }
  0x52   : > { %370 = vst [vmem:[#allocation2 + $0xe0] sm:$0xff] %v1912_v16  ;;  %371 = vst [vmem:[#allocation2 + $0xe8] sm:$0xff] %v1912_v16  ;;  %v457_v61 = vld [vmem:[#allocation2 + $0x18] sm:$0xff] (!%p1631_p6)  ;;  %v458_v0 = vld [vmem:[#allocation2 + $0x20] sm:$0xff] (!%p1631_p6) }
  0x53   : > { %372 = vst [vmem:[#allocation2 + $0xf0] sm:$0xff] %v1912_v16  ;;  %373 = vst [vmem:[#allocation2 + $0xf8] sm:$0xff] %v1912_v16  ;;  %s1711_s17 = sshll.u32 (!%p1631_p6), %s418_s16, 8  ;;  %v460_v1 = vld [vmem:[#allocation2 + $0x30] sm:$0xff] (!%p1631_p6)  ;;  %v459_v6 = vld [vmem:[#allocation2 + $0x28] sm:$0xff] (!%p1631_p6) }
  0x54   : > { %374 = vst [vmem:[#allocation2 + $0x100] sm:$0xff] %v1912_v16  ;;  %375 = vst [vmem:[#allocation2 + $0x108] sm:$0xff] %v1912_v16  ;;  %s2108_s20 = scalar_lea.vmem (!%p1631_p6), %s2288_s3, %s1711_s17  ;;  %v461_v7 = vld [vmem:[#allocation2 + $0x38] sm:$0xff] (!%p1631_p6) }
  0x55   : > { %376 = vst [vmem:[#allocation2 + $0x110] sm:$0xff] %v1912_v16  ;;  %377 = vst [vmem:[#allocation2 + $0x118] sm:$0xff] %v1912_v16  ;;  %v1788_v18 = vld [vmem:[%s2108_s20 + $0x4] ss:$16 sps:$4 sm:$0xff] (!%p1631_p6)   ;;  %v1790_v19 = vld [vmem:[%s2108_s20 + $0xc] ss:$16 sps:$4 sm:$0xff] (!%p1631_p6)  }
  0x56   : > { %378 = vst [vmem:[#allocation2 + $0x120] sm:$0xff] %v1912_v16  ;;  %379 = vst [vmem:[#allocation2 + $0x128] sm:$0xff] %v1912_v16  ;;  %742 = vmatprep.subr.bf16.mxu0 (!%p1631_p6), %v1788_v18  ;;  %v1792_v20 = vld [vmem:[%s2108_s20] ss:$16 sps:$4 sm:$0xff] (!%p1631_p6)   ;;  %v1793_v21 = vld [vmem:[%s2108_s20 + $0x8] ss:$16 sps:$4 sm:$0xff] (!%p1631_p6)   ;;  %855 = vmatprep.subr.bf16.mxu1 (!%p1631_p6), %v1790_v19 }
  0x57   : > { %380 = vst [vmem:[#allocation2 + $0x130] sm:$0xff] %v1912_v16  ;;  %381 = vst [vmem:[#allocation2 + $0x138] sm:$0xff] %v1912_v16  ;;  %v1794_v22 = vld [vmem:[%s2108_s20 + $0x24] ss:$16 sps:$4 sm:$0xff] (!%p1631_p6)   ;;  %743 = vmatpush1.bf16.msra.mxu0 (!%p1631_p6), %v1792_v20  ;;  %856 = vmatpush1.bf16.msra.mxu1 (!%p1631_p6), %v1793_v21  ;;  %v1796_v23 = vld [vmem:[%s2108_s20 + $0x2c] ss:$16 sps:$4 sm:$0xff] (!%p1631_p6)  }
  0x58   : > { %382 = vst [vmem:[#allocation2 + $0x140] sm:$0xff] %v1912_v16  ;;  %383 = vst [vmem:[#allocation2 + $0x148] sm:$0xff] %v1912_v16  ;;  %v1798_v24 = vld [vmem:[%s2108_s20 + $0x20] ss:$16 sps:$4 sm:$0xff] (!%p1631_p6)   ;;  %744 = vmatprep.subr.bf16.mxu0 (!%p1631_p6), %v1794_v22  ;;  %v1799_v25 = vld [vmem:[%s2108_s20 + $0x28] ss:$16 sps:$4 sm:$0xff] (!%p1631_p6)   ;;  %857 = vmatprep.subr.bf16.mxu1 (!%p1631_p6), %v1796_v23 }
  0x59   : > { %384 = vst [vmem:[#allocation2 + $0x150] sm:$0xff] %v1912_v16  ;;  %385 = vst [vmem:[#allocation2 + $0x158] sm:$0xff] %v1912_v16  ;;  %v1800_v26 = vld [vmem:[%s2108_s20 + $0x44] ss:$16 sps:$4 sm:$0xff] (!%p1631_p6)   ;;  %v1802_v27 = vld [vmem:[%s2108_s20 + $0x4c] ss:$16 sps:$4 sm:$0xff] (!%p1631_p6)  }
  0x5a   : > { %386 = vst [vmem:[#allocation2 + $0x160] sm:$0xff] %v1912_v16  ;;  %387 = vst [vmem:[#allocation2 + $0x168] sm:$0xff] %v1912_v16  ;;  %v1804_v28 = vld [vmem:[%s2108_s20 + $0x40] ss:$16 sps:$4 sm:$0xff] (!%p1631_p6)   ;;  %v1805_v29 = vld [vmem:[%s2108_s20 + $0x48] ss:$16 sps:$4 sm:$0xff] (!%p1631_p6)  }
  0x5b   : > { %388 = vst [vmem:[#allocation2 + $0x170] sm:$0xff] %v1912_v16  ;;  %389 = vst [vmem:[#allocation2 + $0x178] sm:$0xff] %v1912_v16  ;;  %745 = vmatpush1.bf16.msra.mxu0 (!%p1631_p6), %v1798_v24  ;;  %858 = vmatpush1.bf16.msra.mxu1 (!%p1631_p6), %v1799_v25  ;;  %v1806_v30 = vld [vmem:[%s2108_s20 + $0x64] ss:$16 sps:$4 sm:$0xff] (!%p1631_p6)   ;;  %v1808_v31 = vld [vmem:[%s2108_s20 + $0x6c] ss:$16 sps:$4 sm:$0xff] (!%p1631_p6)  }
  0x5c   : > { %390 = vst [vmem:[#allocation2 + $0x180] sm:$0xff] %v1912_v16  ;;  %391 = vst [vmem:[#allocation2 + $0x188] sm:$0xff] %v1912_v16  ;;  %746 = vmatprep.subr.bf16.mxu0 (!%p1631_p6), %v1800_v26  ;;  %859 = vmatprep.subr.bf16.mxu1 (!%p1631_p6), %v1802_v27  ;;  %v1810_v32 = vld [vmem:[%s2108_s20 + $0x60] ss:$16 sps:$4 sm:$0xff] (!%p1631_p6)   ;;  %v1811_v33 = vld [vmem:[%s2108_s20 + $0x68] ss:$16 sps:$4 sm:$0xff] (!%p1631_p6)  }
  0x5d   : > { %392 = vst [vmem:[#allocation2 + $0x190] sm:$0xff] %v1912_v16  ;;  %393 = vst [vmem:[#allocation2 + $0x198] sm:$0xff] %v1912_v16  ;;  %410 = sbr.rel (%p1631_p6) target bundleno = 392 (0x188), region = 81  ;;  %v1812_v34 = vld [vmem:[%s2108_s20 + $0x84] ss:$16 sps:$4 sm:$0xff] (!%p1631_p6)   ;;  %v463_v20 = vld [vmem:[#allocation2 + $0x48] sm:$0xff] (!%p1631_p6) }
  0x5e   : > { %394 = vst [vmem:[#allocation2 + $0x1a0] sm:$0xff] %v1912_v16  ;;  %395 = vst [vmem:[#allocation2 + $0x1a8] sm:$0xff] %v1912_v16  ;;  %v1814_v35 = vld [vmem:[%s2108_s20 + $0x8c] ss:$16 sps:$4 sm:$0xff] (!%p1631_p6)   ;;  %v1816_v36 = vld [vmem:[%s2108_s20 + $0x80] ss:$16 sps:$4 sm:$0xff] (!%p1631_p6)  }
  0x5f   : > { %396 = vst [vmem:[#allocation2 + $0x1b0] sm:$0xff] %v1912_v16  ;;  %397 = vst [vmem:[#allocation2 + $0x1b8] sm:$0xff] %v1912_v16  ;;  %747 = vmatpush1.bf16.msra.mxu0 (!%p1631_p6), %v1804_v28  ;;  %860 = vmatpush1.bf16.msra.mxu1 (!%p1631_p6), %v1805_v29  ;;  %v1817_v37 = vld [vmem:[%s2108_s20 + $0x88] ss:$16 sps:$4 sm:$0xff] (!%p1631_p6)   ;;  %v1818_v38 = vld [vmem:[%s2108_s20 + $0xa4] ss:$16 sps:$4 sm:$0xff] (!%p1631_p6)  }
  0x60   : > { %398 = vst [vmem:[#allocation2 + $0x1c0] sm:$0xff] %v1912_v16  ;;  %399 = vst [vmem:[#allocation2 + $0x1c8] sm:$0xff] %v1912_v16  ;;  %748 = vmatprep.subr.bf16.mxu0 (!%p1631_p6), %v1806_v30  ;;  %861 = vmatprep.subr.bf16.mxu1 (!%p1631_p6), %v1808_v31  ;;  %v1820_v39 = vld [vmem:[%s2108_s20 + $0xac] ss:$16 sps:$4 sm:$0xff] (!%p1631_p6)   ;;  %v1822_v40 = vld [vmem:[%s2108_s20 + $0xa0] ss:$16 sps:$4 sm:$0xff] (!%p1631_p6)  }
  0x61   : > { %400 = vst [vmem:[#allocation2 + $0x1d0] sm:$0xff] %v1912_v16  ;;  %401 = vst [vmem:[#allocation2 + $0x1d8] sm:$0xff] %v1912_v16  ;;  %v1823_v41 = vld [vmem:[%s2108_s20 + $0xa8] ss:$16 sps:$4 sm:$0xff] (!%p1631_p6)   ;;  %v1824_v42 = vld [vmem:[%s2108_s20 + $0xc4] ss:$16 sps:$4 sm:$0xff] (!%p1631_p6)  }
  0x62   : > { %402 = vst [vmem:[#allocation2 + $0x1e0] sm:$0xff] %v1912_v16  ;;  %403 = vst [vmem:[#allocation2 + $0x1e8] sm:$0xff] %v1912_v16  ;;  %v1826_v43 = vld [vmem:[%s2108_s20 + $0xcc] ss:$16 sps:$4 sm:$0xff] (!%p1631_p6)   ;;  %v1828_v44 = vld [vmem:[%s2108_s20 + $0xc0] ss:$16 sps:$4 sm:$0xff] (!%p1631_p6)  }
  0x63   : > { %404 = vst [vmem:[#allocation2 + $0x1f0] sm:$0xff] %v1912_v16  ;;  %405 = vst [vmem:[#allocation2 + $0x1f8] sm:$0xff] %v1912_v16  ;;  %749 = vmatpush1.bf16.msra.mxu0 (!%p1631_p6), %v1810_v32  ;;  %862 = vmatpush1.bf16.msra.mxu1 (!%p1631_p6), %v1811_v33  ;;  %v1829_v45 = vld [vmem:[%s2108_s20 + $0xc8] ss:$16 sps:$4 sm:$0xff] (!%p1631_p6)   ;;  %v1830_v46 = vld [vmem:[%s2108_s20 + $0xe4] ss:$16 sps:$4 sm:$0xff] (!%p1631_p6)  }
  0x64   : > { %750 = vmatprep.subr.bf16.mxu0 %v1812_v34  ;;  %863 = vmatprep.subr.bf16.mxu1 %v1814_v35  ;;  %v1832_v47 = vld [vmem:[%s2108_s20 + $0xec] ss:$16 sps:$4 sm:$0xff]   ;;  %v1834_v48 = vld [vmem:[%s2108_s20 + $0xe0] ss:$16 sps:$4 sm:$0xff]   ;;  %v1835_v49 = vld [vmem:[%s2108_s20 + $0xe8] ss:$16 sps:$4 sm:$0xff]  }
  0x65   : > { %v462_v18 = vld [vmem:[#allocation2 + $0x40] sm:$0xff]  ;;  %v464_v19 = vld [vmem:[#allocation2 + $0x50] sm:$0xff]  ;;  %v465_v21 = vld [vmem:[#allocation2 + $0x58] sm:$0xff] }
  0x66   : > { %v466_v24 = vld [vmem:[#allocation2 + $0x60] sm:$0xff]  ;;  %v468_v25 = vld [vmem:[#allocation2 + $0x70] sm:$0xff]  ;;  %v467_v30 = vld [vmem:[#allocation2 + $0x68] sm:$0xff] }
  0x67   : > { %751 = vmatpush1.bf16.msra.mxu0 %v1816_v36  ;;  %864 = vmatpush1.bf16.msra.mxu1 %v1817_v37  ;;  %v469_v31 = vld [vmem:[#allocation2 + $0x78] sm:$0xff] }
  0x68   : > { %752 = vmatprep.subr.bf16.mxu0 %v1818_v38  ;;  %865 = vmatprep.subr.bf16.mxu1 %v1820_v39 }
  0x6b   : > { %753 = vmatpush1.bf16.msra.mxu0 %v1822_v40  ;;  %866 = vmatpush1.bf16.msra.mxu1 %v1823_v41 }
  0x6c   : > { %754 = vmatprep.subr.bf16.mxu0 %v1824_v42  ;;  %867 = vmatprep.subr.bf16.mxu1 %v1826_v43  ;;  %v470_v42 = vld [vmem:[#allocation2 + $0x80] sm:$0xff]  ;;  %v472_v43 = vld [vmem:[#allocation2 + $0x90] sm:$0xff] }
  0x6f   : > { %755 = vmatpush1.bf16.msra.mxu0 %v1828_v44  ;;  %868 = vmatpush1.bf16.msra.mxu1 %v1829_v45  ;;  %v471_v44 = vld [vmem:[#allocation2 + $0x88] sm:$0xff]  ;;  %v473_v45 = vld [vmem:[#allocation2 + $0x98] sm:$0xff] }
  0x70   : > { %756 = vmatprep.subr.bf16.mxu0 %v1830_v46  ;;  %869 = vmatprep.subr.bf16.mxu1 %v1832_v47 }
  0x73   : > { %757 = vmatpush1.bf16.msra.mxu0 %v1834_v48  ;;  %870 = vmatpush1.bf16.msra.mxu1 %v1835_v49  ;;  %v474_v48 = vld [vmem:[#allocation2 + $0xa0] sm:$0xff]  ;;  %v476_v49 = vld [vmem:[#allocation2 + $0xb0] sm:$0xff] }
  0x76   : > { %775 = vmatmul.mubr.bf16.vlgmr.msra.gmra.mrb[0].mxu0 %v1836_v50  ;;  %888 = vmatmul.mubr.bf16.vlgmr.msra.gmra.mrb[0].mxu1 %v1836_v50 }
  0x77   : > { %784 = vmatprep.mubr.bf16.mxu0 %v1913_v17  ;;  %897 = vmatprep.mubr.bf16.mxu1 %v1913_v17 }
  0x7e   : > { %785 = vmatmul.mubr.bf16.gmra.mrb[4].mxu0 %v1837_v51  ;;  %898 = vmatmul.mubr.bf16.gmra.mrb[4].mxu1 %v1837_v51 }
  0x7f   : > { %794 = vmatprep.mubr.bf16.mxu0 %v1913_v17  ;;  %907 = vmatprep.mubr.bf16.mxu1 %v1913_v17 }
  0x86   : > { %795 = vmatmul.mubr.bf16.gmra.mrb[8].mxu0 %v1838_v52  ;;  %908 = vmatmul.mubr.bf16.gmra.mrb[8].mxu1 %v1838_v52 }
  0x87   : > { %804 = vmatprep.mubr.bf16.mxu0 %v1913_v17  ;;  %917 = vmatprep.mubr.bf16.mxu1 %v1913_v17 }
  0x8e   : > { %805 = vmatmul.mubr.bf16.gmra.mrb[12].mxu0 %v1839_v53  ;;  %918 = vmatmul.mubr.bf16.gmra.mrb[12].mxu1 %v1839_v53 }
  0x8f   : > { %814 = vmatprep.mubr.bf16.mxu0 %v1913_v17  ;;  %927 = vmatprep.mubr.bf16.mxu1 %v1913_v17 }
  0x96   : > { %815 = vmatmul.mubr.bf16.gmra.mrb[16].mxu0 %v1840_v54  ;;  %928 = vmatmul.mubr.bf16.gmra.mrb[16].mxu1 %v1840_v54  ;;  %v475_v54 = vld [vmem:[#allocation2 + $0xa8] sm:$0xff] }
  0x97   : > { %824 = vmatprep.mubr.bf16.mxu0 %v1913_v17  ;;  %937 = vmatprep.mubr.bf16.mxu1 %v1913_v17 }
  0x9e   : > { %825 = vmatmul.mubr.bf16.gmra.mrb[20].mxu0 %v1841_v55  ;;  %938 = vmatmul.mubr.bf16.gmra.mrb[20].mxu1 %v1841_v55  ;;  %v477_v55 = vld [vmem:[#allocation2 + $0xb8] sm:$0xff] }
  0x9f   : > { %834 = vmatprep.mubr.bf16.mxu0 %v1913_v17  ;;  %947 = vmatprep.mubr.bf16.mxu1 %v1913_v17 }
  0xa6   : > { %835 = vmatmul.mubr.bf16.gmra.mrb[24].mxu0 %v1842_v56  ;;  %948 = vmatmul.mubr.bf16.gmra.mrb[24].mxu1 %v1842_v56 }
  0xa7   : > { %844 = vmatprep.mubr.bf16.mxu0 %v1913_v17  ;;  %957 = vmatprep.mubr.bf16.mxu1 %v1913_v17 }
  0xae   : > { %845 = vmatmul.mubr.bf16.gmra.mrb[28].mxu0 %v1843_v57  ;;  %958 = vmatmul.mubr.bf16.gmra.mrb[28].mxu1 %v1843_v57 }
 0x149   : > { %v776_v62 = vpop.f32.mrb[0].mxu0  ;;  %v889_v63 = vpop.f32.mrb[0].mxu1 }
 0x14a   : > { %v968_v2 = vadd.f32 %v776_v62, %v454_v58  ;;  %v970_v3 = vadd.f32 %v889_v63, %v456_v59  ;;  %v778_v4 = vpop.f32.mrb[1].mxu0  ;;  %v891_v5 = vpop.f32.mrb[1].mxu1 }
 0x14b   : > { %v969_v8 = vadd.f32 %v778_v4, %v455_v60  ;;  %v971_v9 = vadd.f32 %v891_v5, %v457_v61  ;;  %v780_v10 = vpop.f32.mrb[2].mxu0  ;;  %v893_v11 = vpop.f32.mrb[2].mxu1  ;;  %v479_v4 = vld [vmem:[#allocation2 + $0xc8] sm:$0xff]  ;;  %v481_v5 = vld [vmem:[#allocation2 + $0xd8] sm:$0xff] }
 0x14c   : > { %1032 = vst [vmem:[#allocation2] sm:$0xff] %v968_v2  ;;  %1034 = vst [vmem:[#allocation2 + $0x10] sm:$0xff] %v970_v3  ;;  %v972_v12 = vadd.f32 %v780_v10, %v458_v0  ;;  %v974_v13 = vadd.f32 %v893_v11, %v460_v1  ;;  %v782_v14 = vpop.f32.mrb[3].mxu0  ;;  %v895_v15 = vpop.f32.mrb[3].mxu1  ;;  %v478_v2 = vld [vmem:[#allocation2 + $0xc0] sm:$0xff]  ;;  %v480_v3 = vld [vmem:[#allocation2 + $0xd0] sm:$0xff] }
 0x14d   : > { %1033 = vst [vmem:[#allocation2 + $0x8] sm:$0xff] %v969_v8  ;;  %1035 = vst [vmem:[#allocation2 + $0x18] sm:$0xff] %v971_v9  ;;  %v973_v16 = vadd.f32 %v782_v14, %v459_v6  ;;  %v975_v17 = vadd.f32 %v895_v15, %v461_v7  ;;  %v482_v8 = vld [vmem:[#allocation2 + $0xe0] sm:$0xff]  ;;  %v484_v9 = vld [vmem:[#allocation2 + $0xf0] sm:$0xff] }
 0x14e   : > { %1036 = vst [vmem:[#allocation2 + $0x20] sm:$0xff] %v972_v12  ;;  %1038 = vst [vmem:[#allocation2 + $0x30] sm:$0xff] %v974_v13  ;;  %v483_v14 = vld [vmem:[#allocation2 + $0xe8] sm:$0xff]  ;;  %v485_v15 = vld [vmem:[#allocation2 + $0xf8] sm:$0xff] }
 0x14f   : > { %1037 = vst [vmem:[#allocation2 + $0x28] sm:$0xff] %v973_v16  ;;  %1039 = vst [vmem:[#allocation2 + $0x38] sm:$0xff] %v975_v17 }
 0x151   : > { %v786_v22 = vpop.f32.mrb[4].mxu0  ;;  %v899_v23 = vpop.f32.mrb[4].mxu1 }
 0x152   : > { %v976_v26 = vadd.f32 %v786_v22, %v462_v18  ;;  %v978_v27 = vadd.f32 %v899_v23, %v464_v19  ;;  %v788_v28 = vpop.f32.mrb[5].mxu0  ;;  %v901_v29 = vpop.f32.mrb[5].mxu1 }
 0x153   : > { %v977_v32 = vadd.f32 %v788_v28, %v463_v20  ;;  %v979_v33 = vadd.f32 %v901_v29, %v465_v21  ;;  %v790_v34 = vpop.f32.mrb[6].mxu0  ;;  %v903_v35 = vpop.f32.mrb[6].mxu1  ;;  %v487_v28 = vld [vmem:[#allocation2 + $0x108] sm:$0xff]  ;;  %v489_v29 = vld [vmem:[#allocation2 + $0x118] sm:$0xff] }
 0x154   : > { %1040 = vst [vmem:[#allocation2 + $0x40] sm:$0xff] %v976_v26  ;;  %1042 = vst [vmem:[#allocation2 + $0x50] sm:$0xff] %v978_v27  ;;  %v980_v36 = vadd.f32 %v790_v34, %v466_v24  ;;  %v982_v37 = vadd.f32 %v903_v35, %v468_v25  ;;  %v792_v38 = vpop.f32.mrb[7].mxu0  ;;  %v905_v39 = vpop.f32.mrb[7].mxu1  ;;  %v486_v26 = vld [vmem:[#allocation2 + $0x100] sm:$0xff]  ;;  %v488_v27 = vld [vmem:[#allocation2 + $0x110] sm:$0xff] }
 0x155   : > { %1041 = vst [vmem:[#allocation2 + $0x48] sm:$0xff] %v977_v32  ;;  %1043 = vst [vmem:[#allocation2 + $0x58] sm:$0xff] %v979_v33  ;;  %v981_v40 = vadd.f32 %v792_v38, %v467_v30  ;;  %v983_v41 = vadd.f32 %v905_v39, %v469_v31  ;;  %v490_v32 = vld [vmem:[#allocation2 + $0x120] sm:$0xff]  ;;  %v492_v33 = vld [vmem:[#allocation2 + $0x130] sm:$0xff] }
 0x156   : > { %1044 = vst [vmem:[#allocation2 + $0x60] sm:$0xff] %v980_v36  ;;  %1046 = vst [vmem:[#allocation2 + $0x70] sm:$0xff] %v982_v37  ;;  %v491_v38 = vld [vmem:[#allocation2 + $0x128] sm:$0xff]  ;;  %v493_v39 = vld [vmem:[#allocation2 + $0x138] sm:$0xff] }
 0x157   : > { %1045 = vst [vmem:[#allocation2 + $0x68] sm:$0xff] %v981_v40  ;;  %1047 = vst [vmem:[#allocation2 + $0x78] sm:$0xff] %v983_v41 }
 0x159   : > { %v796_v46 = vpop.f32.mrb[8].mxu0  ;;  %v909_v47 = vpop.f32.mrb[8].mxu1 }
 0x15a   : > { %v984_v50 = vadd.f32 %v796_v46, %v470_v42  ;;  %v986_v51 = vadd.f32 %v909_v47, %v472_v43  ;;  %v798_v52 = vpop.f32.mrb[9].mxu0  ;;  %v911_v53 = vpop.f32.mrb[9].mxu1 }
 0x15b   : > { %v985_v56 = vadd.f32 %v798_v52, %v471_v44  ;;  %v987_v57 = vadd.f32 %v911_v53, %v473_v45  ;;  %v800_v58 = vpop.f32.mrb[10].mxu0  ;;  %v913_v59 = vpop.f32.mrb[10].mxu1  ;;  %v495_v52 = vld [vmem:[#allocation2 + $0x148] sm:$0xff]  ;;  %v497_v53 = vld [vmem:[#allocation2 + $0x158] sm:$0xff] }
 0x15c   : > { %1048 = vst [vmem:[#allocation2 + $0x80] sm:$0xff] %v984_v50  ;;  %1050 = vst [vmem:[#allocation2 + $0x90] sm:$0xff] %v986_v51  ;;  %v988_v60 = vadd.f32 %v800_v58, %v474_v48  ;;  %v990_v61 = vadd.f32 %v913_v59, %v476_v49  ;;  %v802_v62 = vpop.f32.mrb[11].mxu0  ;;  %v915_v63 = vpop.f32.mrb[11].mxu1  ;;  %v494_v50 = vld [vmem:[#allocation2 + $0x140] sm:$0xff]  ;;  %v496_v51 = vld [vmem:[#allocation2 + $0x150] sm:$0xff] }
 0x15d   : > { %1049 = vst [vmem:[#allocation2 + $0x88] sm:$0xff] %v985_v56  ;;  %1051 = vst [vmem:[#allocation2 + $0x98] sm:$0xff] %v987_v57  ;;  %v989_v0 = vadd.f32 %v802_v62, %v475_v54  ;;  %v991_v1 = vadd.f32 %v915_v63, %v477_v55  ;;  %v498_v56 = vld [vmem:[#allocation2 + $0x160] sm:$0xff]  ;;  %v500_v57 = vld [vmem:[#allocation2 + $0x170] sm:$0xff] }
 0x15e   : > { %1052 = vst [vmem:[#allocation2 + $0xa0] sm:$0xff] %v988_v60  ;;  %1054 = vst [vmem:[#allocation2 + $0xb0] sm:$0xff] %v990_v61  ;;  %v499_v62 = vld [vmem:[#allocation2 + $0x168] sm:$0xff]  ;;  %v501_v63 = vld [vmem:[#allocation2 + $0x178] sm:$0xff] }
 0x15f   : > { %1053 = vst [vmem:[#allocation2 + $0xa8] sm:$0xff] %v989_v0  ;;  %1055 = vst [vmem:[#allocation2 + $0xb8] sm:$0xff] %v991_v1 }
 0x161   : > { %v806_v6 = vpop.f32.mrb[12].mxu0  ;;  %v919_v7 = vpop.f32.mrb[12].mxu1 }
 0x162   : > { %v992_v10 = vadd.f32 %v806_v6, %v478_v2  ;;  %v994_v11 = vadd.f32 %v919_v7, %v480_v3  ;;  %v808_v12 = vpop.f32.mrb[13].mxu0  ;;  %v921_v13 = vpop.f32.mrb[13].mxu1 }
 0x163   : > { %v993_v16 = vadd.f32 %v808_v12, %v479_v4  ;;  %v995_v17 = vadd.f32 %v921_v13, %v481_v5  ;;  %v810_v18 = vpop.f32.mrb[14].mxu0  ;;  %v923_v19 = vpop.f32.mrb[14].mxu1  ;;  %v503_v12 = vld [vmem:[#allocation2 + $0x188] sm:$0xff]  ;;  %v505_v13 = vld [vmem:[#allocation2 + $0x198] sm:$0xff] }
 0x164   : > { %1056 = vst [vmem:[#allocation2 + $0xc0] sm:$0xff] %v992_v10  ;;  %1058 = vst [vmem:[#allocation2 + $0xd0] sm:$0xff] %v994_v11  ;;  %v996_v20 = vadd.f32 %v810_v18, %v482_v8  ;;  %v998_v21 = vadd.f32 %v923_v19, %v484_v9  ;;  %v812_v22 = vpop.f32.mrb[15].mxu0  ;;  %v925_v23 = vpop.f32.mrb[15].mxu1  ;;  %v502_v10 = vld [vmem:[#allocation2 + $0x180] sm:$0xff]  ;;  %v504_v11 = vld [vmem:[#allocation2 + $0x190] sm:$0xff] }
 0x165   : > { %1057 = vst [vmem:[#allocation2 + $0xc8] sm:$0xff] %v993_v16  ;;  %1059 = vst [vmem:[#allocation2 + $0xd8] sm:$0xff] %v995_v17  ;;  %v997_v24 = vadd.f32 %v812_v22, %v483_v14  ;;  %v999_v25 = vadd.f32 %v925_v23, %v485_v15  ;;  %v506_v16 = vld [vmem:[#allocation2 + $0x1a0] sm:$0xff]  ;;  %v508_v17 = vld [vmem:[#allocation2 + $0x1b0] sm:$0xff] }
 0x166   : > { %1060 = vst [vmem:[#allocation2 + $0xe0] sm:$0xff] %v996_v20  ;;  %1062 = vst [vmem:[#allocation2 + $0xf0] sm:$0xff] %v998_v21  ;;  %v507_v22 = vld [vmem:[#allocation2 + $0x1a8] sm:$0xff]  ;;  %v509_v23 = vld [vmem:[#allocation2 + $0x1b8] sm:$0xff] }
 0x167   : > { %1061 = vst [vmem:[#allocation2 + $0xe8] sm:$0xff] %v997_v24  ;;  %1063 = vst [vmem:[#allocation2 + $0xf8] sm:$0xff] %v999_v25 }
 0x169   : > { %v816_v30 = vpop.f32.mrb[16].mxu0  ;;  %v929_v31 = vpop.f32.mrb[16].mxu1 }
 0x16a   : > { %v1000_v34 = vadd.f32 %v816_v30, %v486_v26  ;;  %v1002_v35 = vadd.f32 %v929_v31, %v488_v27  ;;  %v818_v36 = vpop.f32.mrb[17].mxu0  ;;  %v931_v37 = vpop.f32.mrb[17].mxu1 }
 0x16b   : > { %v1001_v40 = vadd.f32 %v818_v36, %v487_v28  ;;  %v1003_v41 = vadd.f32 %v931_v37, %v489_v29  ;;  %v820_v42 = vpop.f32.mrb[18].mxu0  ;;  %v933_v43 = vpop.f32.mrb[18].mxu1  ;;  %v511_v36 = vld [vmem:[#allocation2 + $0x1c8] sm:$0xff]  ;;  %v513_v37 = vld [vmem:[#allocation2 + $0x1d8] sm:$0xff] }
 0x16c   : > { %1064 = vst [vmem:[#allocation2 + $0x100] sm:$0xff] %v1000_v34  ;;  %1066 = vst [vmem:[#allocation2 + $0x110] sm:$0xff] %v1002_v35  ;;  %v1004_v44 = vadd.f32 %v820_v42, %v490_v32  ;;  %v1006_v45 = vadd.f32 %v933_v43, %v492_v33  ;;  %v822_v46 = vpop.f32.mrb[19].mxu0  ;;  %v935_v47 = vpop.f32.mrb[19].mxu1  ;;  %v510_v34 = vld [vmem:[#allocation2 + $0x1c0] sm:$0xff]  ;;  %v512_v35 = vld [vmem:[#allocation2 + $0x1d0] sm:$0xff] }
 0x16d   : > { %1065 = vst [vmem:[#allocation2 + $0x108] sm:$0xff] %v1001_v40  ;;  %1067 = vst [vmem:[#allocation2 + $0x118] sm:$0xff] %v1003_v41  ;;  %v1005_v48 = vadd.f32 %v822_v46, %v491_v38  ;;  %v1007_v49 = vadd.f32 %v935_v47, %v493_v39  ;;  %v514_v40 = vld [vmem:[#allocation2 + $0x1e0] sm:$0xff]  ;;  %v516_v41 = vld [vmem:[#allocation2 + $0x1f0] sm:$0xff] }
 0x16e   : > { %1068 = vst [vmem:[#allocation2 + $0x120] sm:$0xff] %v1004_v44  ;;  %1070 = vst [vmem:[#allocation2 + $0x130] sm:$0xff] %v1006_v45  ;;  %v515_v46 = vld [vmem:[#allocation2 + $0x1e8] sm:$0xff]  ;;  %v517_v47 = vld [vmem:[#allocation2 + $0x1f8] sm:$0xff] }
 0x16f   : > { %1069 = vst [vmem:[#allocation2 + $0x128] sm:$0xff] %v1005_v48  ;;  %1071 = vst [vmem:[#allocation2 + $0x138] sm:$0xff] %v1007_v49 }
 0x171   : > { %v826_v54 = vpop.f32.mrb[20].mxu0  ;;  %v939_v55 = vpop.f32.mrb[20].mxu1 }
 0x172   : > { %v1008_v58 = vadd.f32 %v826_v54, %v494_v50  ;;  %v1010_v59 = vadd.f32 %v939_v55, %v496_v51  ;;  %v828_v60 = vpop.f32.mrb[21].mxu0  ;;  %v941_v61 = vpop.f32.mrb[21].mxu1 }
 0x173   : > { %v1009_v0 = vadd.f32 %v828_v60, %v495_v52  ;;  %v1011_v1 = vadd.f32 %v941_v61, %v497_v53  ;;  %v830_v2 = vpop.f32.mrb[22].mxu0  ;;  %v943_v3 = vpop.f32.mrb[22].mxu1 }
 0x174   : > { %1072 = vst [vmem:[#allocation2 + $0x140] sm:$0xff] %v1008_v58  ;;  %1074 = vst [vmem:[#allocation2 + $0x150] sm:$0xff] %v1010_v59  ;;  %v1012_v4 = vadd.f32 %v830_v2, %v498_v56  ;;  %v1014_v5 = vadd.f32 %v943_v3, %v500_v57  ;;  %v832_v6 = vpop.f32.mrb[23].mxu0  ;;  %v945_v7 = vpop.f32.mrb[23].mxu1 }
 0x175   : > { %1073 = vst [vmem:[#allocation2 + $0x148] sm:$0xff] %v1009_v0  ;;  %1075 = vst [vmem:[#allocation2 + $0x158] sm:$0xff] %v1011_v1  ;;  %v1013_v8 = vadd.f32 %v832_v6, %v499_v62  ;;  %v1015_v9 = vadd.f32 %v945_v7, %v501_v63 }
 0x176   : > { %1076 = vst [vmem:[#allocation2 + $0x160] sm:$0xff] %v1012_v4  ;;  %1078 = vst [vmem:[#allocation2 + $0x170] sm:$0xff] %v1014_v5 }
 0x177   : > { %1077 = vst [vmem:[#allocation2 + $0x168] sm:$0xff] %v1013_v8  ;;  %1079 = vst [vmem:[#allocation2 + $0x178] sm:$0xff] %v1015_v9 }
 0x179   : > { %v836_v14 = vpop.f32.mrb[24].mxu0  ;;  %v949_v15 = vpop.f32.mrb[24].mxu1 }
 0x17a   : > { %v1016_v18 = vadd.f32 %v836_v14, %v502_v10  ;;  %v1018_v19 = vadd.f32 %v949_v15, %v504_v11  ;;  %v838_v20 = vpop.f32.mrb[25].mxu0  ;;  %v951_v21 = vpop.f32.mrb[25].mxu1 }
 0x17b   : > { %v1017_v24 = vadd.f32 %v838_v20, %v503_v12  ;;  %v1019_v25 = vadd.f32 %v951_v21, %v505_v13  ;;  %v840_v26 = vpop.f32.mrb[26].mxu0  ;;  %v953_v27 = vpop.f32.mrb[26].mxu1 }
 0x17c   : > { %1080 = vst [vmem:[#allocation2 + $0x180] sm:$0xff] %v1016_v18  ;;  %1082 = vst [vmem:[#allocation2 + $0x190] sm:$0xff] %v1018_v19  ;;  %v1020_v28 = vadd.f32 %v840_v26, %v506_v16  ;;  %v1022_v29 = vadd.f32 %v953_v27, %v508_v17  ;;  %v842_v30 = vpop.f32.mrb[27].mxu0  ;;  %v955_v31 = vpop.f32.mrb[27].mxu1 }
 0x17d   : > { %1081 = vst [vmem:[#allocation2 + $0x188] sm:$0xff] %v1017_v24  ;;  %1083 = vst [vmem:[#allocation2 + $0x198] sm:$0xff] %v1019_v25  ;;  %v1021_v32 = vadd.f32 %v842_v30, %v507_v22  ;;  %v1023_v33 = vadd.f32 %v955_v31, %v509_v23 }
 0x17e   : > { %1084 = vst [vmem:[#allocation2 + $0x1a0] sm:$0xff] %v1020_v28  ;;  %1086 = vst [vmem:[#allocation2 + $0x1b0] sm:$0xff] %v1022_v29 }
 0x17f   : > { %1085 = vst [vmem:[#allocation2 + $0x1a8] sm:$0xff] %v1021_v32  ;;  %1087 = vst [vmem:[#allocation2 + $0x1b8] sm:$0xff] %v1023_v33 }
 0x181   : > { %v846_v38 = vpop.f32.mrb[28].mxu0  ;;  %v959_v39 = vpop.f32.mrb[28].mxu1 }
 0x182   : > { %v1024_v42 = vadd.f32 %v846_v38, %v510_v34  ;;  %v1026_v43 = vadd.f32 %v959_v39, %v512_v35  ;;  %v848_v44 = vpop.f32.mrb[29].mxu0  ;;  %v961_v45 = vpop.f32.mrb[29].mxu1 }
 0x183   : > { %v1025_v48 = vadd.f32 %v848_v44, %v511_v36  ;;  %v1027_v49 = vadd.f32 %v961_v45, %v513_v37  ;;  %v850_v50 = vpop.f32.mrb[30].mxu0  ;;  %v963_v51 = vpop.f32.mrb[30].mxu1 }
 0x184   : > { %1088 = vst [vmem:[#allocation2 + $0x1c0] sm:$0xff] %v1024_v42  ;;  %1090 = vst [vmem:[#allocation2 + $0x1d0] sm:$0xff] %v1026_v43  ;;  %v1028_v52 = vadd.f32 %v850_v50, %v514_v40  ;;  %v1030_v53 = vadd.f32 %v963_v51, %v516_v41  ;;  %v852_v54 = vpop.f32.mrb[31].mxu0  ;;  %v965_v55 = vpop.f32.mrb[31].mxu1 }
 0x185   : > { %1089 = vst [vmem:[#allocation2 + $0x1c8] sm:$0xff] %v1025_v48  ;;  %1091 = vst [vmem:[#allocation2 + $0x1d8] sm:$0xff] %v1027_v49  ;;  %v1029_v56 = vadd.f32 %v852_v54, %v515_v46  ;;  %v1031_v57 = vadd.f32 %v965_v55, %v517_v47 }
 0x186   : > { %1092 = vst [vmem:[#allocation2 + $0x1e0] sm:$0xff] %v1028_v52  ;;  %1094 = vst [vmem:[#allocation2 + $0x1f0] sm:$0xff] %v1030_v53 }
 0x187   : > { %1093 = vst [vmem:[#allocation2 + $0x1e8] sm:$0xff] %v1029_v56  ;;  %1095 = vst [vmem:[#allocation2 + $0x1f8] sm:$0xff] %v1031_v57 }
 0x188 PF: > { %v1165_v58 = vlaneseq  ;;  %v1163_v60 = vld [vmem:[%s2289_s4] sm:$0xf]  ;;  %v1100_v62 = vld [vmem:[#allocation2 + $0x8] sm:$0xff]  ;;  %v1101_v3 = vld [vmem:[#allocation2 + $0x10] sm:$0xff] }
 0x189   : > { %v1099_v61 = vld [vmem:[#allocation2] sm:$0xff]  ;;  %v1102_v4 = vld [vmem:[#allocation2 + $0x18] sm:$0xff]  ;;  %v1104_v10 = vld [vmem:[#allocation2 + $0x28] sm:$0xff] }
 0x18a   : > { %v1166_v59 = vshrl.u32 %v1165_v58, 7  ;;  %v1103_v5 = vld [vmem:[#allocation2 + $0x20] sm:$0xff]  ;;  %v1105_v11 = vld [vmem:[#allocation2 + $0x30] sm:$0xff]  ;;  %v1106_v12 = vld [vmem:[#allocation2 + $0x38] sm:$0xff] }
 0x18b   : > { %v1107_v21 = vld [vmem:[#allocation2 + $0x40] sm:$0xff]  ;;  %v1108_v22 = vld [vmem:[#allocation2 + $0x48] sm:$0xff]  ;;  %v1109_v27 = vld [vmem:[#allocation2 + $0x50] sm:$0xff] }
 0x18c   : > { %v1167_v63 = vsub.s32 0, %v1166_v59  ;;  %v1171_v0 = vsub.s32 1, %v1166_v59  ;;  %v1175_v1 = vsub.s32 2, %v1166_v59  ;;  %v1179_v2 = vsub.s32 3, %v1166_v59  ;;  %v1110_v28 = vld [vmem:[#allocation2 + $0x58] sm:$0xff]  ;;  %v1111_v33 = vld [vmem:[#allocation2 + $0x60] sm:$0xff] }
 0x18d   : > { %v1112_v34 = vld [vmem:[#allocation2 + $0x68] sm:$0xff]  ;;  %v1113_v39 = vld [vmem:[#allocation2 + $0x70] sm:$0xff]  ;;  %v1114_v40 = vld [vmem:[#allocation2 + $0x78] sm:$0xff] }
 0x18e   : > { %v2167_v6 = vrot.slane %v1163_v60, %v1167_v63  ;;  %v2169_v7 = vrot.slane %v1163_v60, %v1171_v0  ;;  %v2171_v8 = vrot.slane %v1163_v60, %v1175_v1  ;;  %v2173_v9 = vrot.slane %v1163_v60, %v1179_v2  ;;  %v1115_v45 = vld [vmem:[#allocation2 + $0x80] sm:$0xff]  ;;  %v1116_v50 = vld [vmem:[#allocation2 + $0x88] sm:$0xff]  ;;  %v1117_v55 = vld [vmem:[#allocation2 + $0x90] sm:$0xff] }
 0x18f   : > { %v1118_v56 = vld [vmem:[#allocation2 + $0x98] sm:$0xff] }
 0x190   : > { %v1185_v13 = vadd.f32 %v2167_v6, %v1099_v61  ;;  %v1186_v14 = vadd.f32 %v2169_v7, %v1100_v62  ;;  %v1187_v15 = vadd.f32 %v2171_v8, %v1101_v3  ;;  %v1188_v16 = vadd.f32 %v2173_v9, %v1102_v4  ;;  %v1119_v61 = vld [vmem:[#allocation2 + $0xa0] sm:$0xff]  ;;  %v1120_v62 = vld [vmem:[#allocation2 + $0xa8] sm:$0xff]  ;;  %v1121_v3 = vld [vmem:[#allocation2 + $0xb0] sm:$0xff] }
 0x191   : > { %v1189_v17 = vadd.f32 %v2167_v6, %v1103_v5  ;;  %v1190_v18 = vadd.f32 %v2169_v7, %v1104_v10  ;;  %v1191_v19 = vadd.f32 %v2171_v8, %v1105_v11  ;;  %v1192_v20 = vadd.f32 %v2173_v9, %v1106_v12  ;;  %v1122_v4 = vld [vmem:[#allocation2 + $0xb8] sm:$0xff] }
 0x192   : > { %v1249_v23 = vmax.f32 %v1185_v13, 0.0  ;;  %v1250_v24 = vmax.f32 %v1186_v14, 0.0  ;;  %v1251_v25 = vmax.f32 %v1187_v15, 0.0  ;;  %v1252_v26 = vmax.f32 %v1188_v16, 0.0  ;;  %v1123_v13 = vld [vmem:[#allocation2 + $0xc0] sm:$0xff] }
 0x193   : > { %v1253_v29 = vmax.f32 %v1189_v17, 0.0  ;;  %v1254_v30 = vmax.f32 %v1190_v18, 0.0  ;;  %v1255_v31 = vmax.f32 %v1191_v19, 0.0  ;;  %v1256_v32 = vmax.f32 %v1192_v20, 0.0  ;;  %v1124_v18 = vld [vmem:[#allocation2 + $0xc8] sm:$0xff] }
 0x194   : > { %v1712_v35 = vpack.c.bf16 %v1250_v24, %v1249_v23  ;;  %v1713_v36 = vpack.c.bf16 %v1252_v26, %v1251_v25  ;;  %v1193_v37 = vadd.f32 %v2167_v6, %v1107_v21  ;;  %v1194_v38 = vadd.f32 %v2169_v7, %v1108_v22  ;;  %v1125_v23 = vld [vmem:[#allocation2 + $0xd0] sm:$0xff]  ;;  %v1126_v24 = vld [vmem:[#allocation2 + $0xd8] sm:$0xff] }
 0x195   : > { %v1714_v41 = vpack.c.bf16 %v1254_v30, %v1253_v29  ;;  %v1715_v42 = vpack.c.bf16 %v1256_v32, %v1255_v31  ;;  %v1195_v43 = vadd.f32 %v2171_v8, %v1109_v27  ;;  %v1196_v44 = vadd.f32 %v2173_v9, %v1110_v28  ;;  %v1127_v29 = vld [vmem:[#allocation2 + $0xe0] sm:$0xff]  ;;  %v1128_v30 = vld [vmem:[#allocation2 + $0xe8] sm:$0xff] }
 0x196   : > { %1505 = vst [vmem:[%s2097_s12] sm:$0xff] %v1712_v35  ;;  %1506 = vst [vmem:[%s2097_s12 + $0x8] sm:$0xff] %v1713_v36  ;;  %v1257_v46 = vmax.f32 %v1193_v37, 0.0  ;;  %v1258_v47 = vmax.f32 %v1194_v38, 0.0  ;;  %v1197_v48 = vadd.f32 %v2167_v6, %v1111_v33  ;;  %v1198_v49 = vadd.f32 %v2169_v7, %v1112_v34  ;;  %v1129_v35 = vld [vmem:[#allocation2 + $0xf0] sm:$0xff]  ;;  %v1130_v36 = vld [vmem:[#allocation2 + $0xf8] sm:$0xff] }
 0x197   : > { %1507 = vst [vmem:[%s2097_s12 + $0x10] sm:$0xff] %v1714_v41  ;;  %1508 = vst [vmem:[%s2097_s12 + $0x18] sm:$0xff] %v1715_v42  ;;  %v1259_v51 = vmax.f32 %v1195_v43, 0.0  ;;  %v1260_v52 = vmax.f32 %v1196_v44, 0.0  ;;  %v1199_v53 = vadd.f32 %v2171_v8, %v1113_v39  ;;  %v1200_v54 = vadd.f32 %v2173_v9, %v1114_v40  ;;  %v1131_v41 = vld [vmem:[#allocation2 + $0x100] sm:$0xff] }
 0x198   : > { %v1716_v57 = vpack.c.bf16 %v1258_v47, %v1257_v46  ;;  %v1261_v58 = vmax.f32 %v1197_v48, 0.0  ;;  %v1262_v59 = vmax.f32 %v1198_v49, 0.0  ;;  %v1201_v60 = vadd.f32 %v2167_v6, %v1115_v45  ;;  %v1132_v46 = vld [vmem:[#allocation2 + $0x108] sm:$0xff] }
 0x199   : > { %v1717_v63 = vpack.c.bf16 %v1260_v52, %v1259_v51  ;;  %v1263_v0 = vmax.f32 %v1199_v53, 0.0  ;;  %v1264_v1 = vmax.f32 %v1200_v54, 0.0  ;;  %v1202_v2 = vadd.f32 %v2169_v7, %v1116_v50  ;;  %v1133_v51 = vld [vmem:[#allocation2 + $0x110] sm:$0xff]  ;;  %v1134_v52 = vld [vmem:[#allocation2 + $0x118] sm:$0xff] }
 0x19a   : > { %1509 = vst [vmem:[%s2097_s12 + $0x20] sm:$0xff] %v1716_v57  ;;  %v1718_v5 = vpack.c.bf16 %v1262_v59, %v1261_v58  ;;  %v1265_v10 = vmax.f32 %v1201_v60, 0.0  ;;  %v1203_v11 = vadd.f32 %v2171_v8, %v1117_v55  ;;  %v1204_v12 = vadd.f32 %v2173_v9, %v1118_v56  ;;  %v1135_v57 = vld [vmem:[#allocation2 + $0x120] sm:$0xff]  ;;  %v1136_v58 = vld [vmem:[#allocation2 + $0x128] sm:$0xff] }
 0x19b   : > { %1510 = vst [vmem:[%s2097_s12 + $0x28] sm:$0xff] %v1717_v63  ;;  %v1719_v14 = vpack.c.bf16 %v1264_v1, %v1263_v0  ;;  %v1266_v15 = vmax.f32 %v1202_v2, 0.0  ;;  %v1205_v16 = vadd.f32 %v2167_v6, %v1119_v61  ;;  %v1206_v17 = vadd.f32 %v2169_v7, %v1120_v62  ;;  %v1137_v63 = vld [vmem:[#allocation2 + $0x130] sm:$0xff]  ;;  %v1138_v0 = vld [vmem:[#allocation2 + $0x138] sm:$0xff] }
 0x19c   : > { %1511 = vst [vmem:[%s2097_s12 + $0x30] sm:$0xff] %v1718_v5  ;;  %v1267_v19 = vmax.f32 %v1203_v11, 0.0  ;;  %v1268_v20 = vmax.f32 %v1204_v12, 0.0  ;;  %v1207_v21 = vadd.f32 %v2171_v8, %v1121_v3  ;;  %v1208_v22 = vadd.f32 %v2173_v9, %v1122_v4  ;;  %v1139_v5 = vld [vmem:[#allocation2 + $0x140] sm:$0xff] }
 0x19d   : > { %1512 = vst [vmem:[%s2097_s12 + $0x38] sm:$0xff] %v1719_v14  ;;  %v1720_v25 = vpack.c.bf16 %v1266_v15, %v1265_v10  ;;  %v1269_v26 = vmax.f32 %v1205_v16, 0.0  ;;  %v1270_v27 = vmax.f32 %v1206_v17, 0.0  ;;  %v1209_v28 = vadd.f32 %v2167_v6, %v1123_v13  ;;  %v1140_v14 = vld [vmem:[#allocation2 + $0x148] sm:$0xff] }
 0x19e   : > { %v1721_v31 = vpack.c.bf16 %v1268_v20, %v1267_v19  ;;  %v1271_v32 = vmax.f32 %v1207_v21, 0.0  ;;  %v1272_v33 = vmax.f32 %v1208_v22, 0.0  ;;  %v1210_v34 = vadd.f32 %v2169_v7, %v1124_v18  ;;  %v1141_v19 = vld [vmem:[#allocation2 + $0x150] sm:$0xff]  ;;  %v1142_v20 = vld [vmem:[#allocation2 + $0x158] sm:$0xff] }
 0x19f   : > { %1513 = vst [vmem:[%s2097_s12 + $0x40] sm:$0xff] %v1720_v25  ;;  %v1722_v37 = vpack.c.bf16 %v1270_v27, %v1269_v26  ;;  %v1273_v38 = vmax.f32 %v1209_v28, 0.0  ;;  %v1211_v39 = vadd.f32 %v2171_v8, %v1125_v23  ;;  %v1212_v40 = vadd.f32 %v2173_v9, %v1126_v24  ;;  %v1143_v25 = vld [vmem:[#allocation2 + $0x160] sm:$0xff]  ;;  %v1144_v26 = vld [vmem:[#allocation2 + $0x168] sm:$0xff] }
 0x1a0   : > { %1514 = vst [vmem:[%s2097_s12 + $0x48] sm:$0xff] %v1721_v31  ;;  %v1723_v42 = vpack.c.bf16 %v1272_v33, %v1271_v32  ;;  %v1274_v43 = vmax.f32 %v1210_v34, 0.0  ;;  %v1213_v44 = vadd.f32 %v2167_v6, %v1127_v29  ;;  %v1214_v45 = vadd.f32 %v2169_v7, %v1128_v30  ;;  %v1145_v31 = vld [vmem:[#allocation2 + $0x170] sm:$0xff]  ;;  %v1146_v32 = vld [vmem:[#allocation2 + $0x178] sm:$0xff] }
 0x1a1   : > { %1515 = vst [vmem:[%s2097_s12 + $0x50] sm:$0xff] %v1722_v37  ;;  %v1275_v47 = vmax.f32 %v1211_v39, 0.0  ;;  %v1276_v48 = vmax.f32 %v1212_v40, 0.0  ;;  %v1215_v49 = vadd.f32 %v2171_v8, %v1129_v35  ;;  %v1216_v50 = vadd.f32 %v2173_v9, %v1130_v36  ;;  %v1147_v37 = vld [vmem:[#allocation2 + $0x180] sm:$0xff] }
 0x1a2   : > { %1516 = vst [vmem:[%s2097_s12 + $0x58] sm:$0xff] %v1723_v42  ;;  %v1724_v53 = vpack.c.bf16 %v1274_v43, %v1273_v38  ;;  %v1277_v54 = vmax.f32 %v1213_v44, 0.0  ;;  %v1278_v55 = vmax.f32 %v1214_v45, 0.0  ;;  %v1217_v56 = vadd.f32 %v2167_v6, %v1131_v41  ;;  %v1148_v42 = vld [vmem:[#allocation2 + $0x188] sm:$0xff] }
 0x1a3   : > { %v1725_v59 = vpack.c.bf16 %v1276_v48, %v1275_v47  ;;  %v1279_v60 = vmax.f32 %v1215_v49, 0.0  ;;  %v1280_v61 = vmax.f32 %v1216_v50, 0.0  ;;  %v1218_v62 = vadd.f32 %v2169_v7, %v1132_v46  ;;  %v1149_v47 = vld [vmem:[#allocation2 + $0x190] sm:$0xff]  ;;  %v1150_v48 = vld [vmem:[#allocation2 + $0x198] sm:$0xff] }
 0x1a4   : > { %1517 = vst [vmem:[%s2097_s12 + $0x60] sm:$0xff] %v1724_v53  ;;  %v1726_v1 = vpack.c.bf16 %v1278_v55, %v1277_v54  ;;  %v1281_v2 = vmax.f32 %v1217_v56, 0.0  ;;  %v1219_v3 = vadd.f32 %v2171_v8, %v1133_v51  ;;  %v1220_v4 = vadd.f32 %v2173_v9, %v1134_v52  ;;  %v1151_v53 = vld [vmem:[#allocation2 + $0x1a0] sm:$0xff]  ;;  %v1152_v54 = vld [vmem:[#allocation2 + $0x1a8] sm:$0xff] }
 0x1a5   : > { %1518 = vst [vmem:[%s2097_s12 + $0x68] sm:$0xff] %v1725_v59  ;;  %v1727_v10 = vpack.c.bf16 %v1280_v61, %v1279_v60  ;;  %v1282_v11 = vmax.f32 %v1218_v62, 0.0  ;;  %v1221_v12 = vadd.f32 %v2167_v6, %v1135_v57  ;;  %v1222_v13 = vadd.f32 %v2169_v7, %v1136_v58  ;;  %v1153_v59 = vld [vmem:[#allocation2 + $0x1b0] sm:$0xff]  ;;  %v1154_v60 = vld [vmem:[#allocation2 + $0x1b8] sm:$0xff] }
 0x1a6   : > { %1519 = vst [vmem:[%s2097_s12 + $0x70] sm:$0xff] %v1726_v1  ;;  %v1283_v15 = vmax.f32 %v1219_v3, 0.0  ;;  %v1284_v16 = vmax.f32 %v1220_v4, 0.0  ;;  %v1223_v17 = vadd.f32 %v2171_v8, %v1137_v63  ;;  %v1224_v18 = vadd.f32 %v2173_v9, %v1138_v0  ;;  %v1155_v1 = vld [vmem:[#allocation2 + $0x1c0] sm:$0xff] }
 0x1a7   : > { %1520 = vst [vmem:[%s2097_s12 + $0x78] sm:$0xff] %v1727_v10  ;;  %v1728_v21 = vpack.c.bf16 %v1282_v11, %v1281_v2  ;;  %v1285_v22 = vmax.f32 %v1221_v12, 0.0  ;;  %v1286_v23 = vmax.f32 %v1222_v13, 0.0  ;;  %v1225_v24 = vadd.f32 %v2167_v6, %v1139_v5  ;;  %v1156_v10 = vld [vmem:[#allocation2 + $0x1c8] sm:$0xff] }
 0x1a8   : > { %v1729_v27 = vpack.c.bf16 %v1284_v16, %v1283_v15  ;;  %v1287_v28 = vmax.f32 %v1223_v17, 0.0  ;;  %v1288_v29 = vmax.f32 %v1224_v18, 0.0  ;;  %v1226_v30 = vadd.f32 %v2169_v7, %v1140_v14  ;;  %v1157_v15 = vld [vmem:[#allocation2 + $0x1d0] sm:$0xff]  ;;  %v1158_v16 = vld [vmem:[#allocation2 + $0x1d8] sm:$0xff] }
 0x1a9   : > { %1521 = vst [vmem:[%s2097_s12 + $0x80] sm:$0xff] %v1728_v21  ;;  %v1730_v33 = vpack.c.bf16 %v1286_v23, %v1285_v22  ;;  %v1289_v34 = vmax.f32 %v1225_v24, 0.0  ;;  %v1227_v35 = vadd.f32 %v2171_v8, %v1141_v19  ;;  %v1228_v36 = vadd.f32 %v2173_v9, %v1142_v20  ;;  %v1159_v21 = vld [vmem:[#allocation2 + $0x1e0] sm:$0xff]  ;;  %v1160_v22 = vld [vmem:[#allocation2 + $0x1e8] sm:$0xff] }
 0x1aa   : > { %1522 = vst [vmem:[%s2097_s12 + $0x88] sm:$0xff] %v1729_v27  ;;  %v1731_v38 = vpack.c.bf16 %v1288_v29, %v1287_v28  ;;  %v1290_v39 = vmax.f32 %v1226_v30, 0.0  ;;  %v1229_v40 = vadd.f32 %v2167_v6, %v1143_v25  ;;  %v1230_v41 = vadd.f32 %v2169_v7, %v1144_v26  ;;  %v1161_v27 = vld [vmem:[#allocation2 + $0x1f0] sm:$0xff]  ;;  %v1162_v28 = vld [vmem:[#allocation2 + $0x1f8] sm:$0xff] }
 0x1ab   : > { %1523 = vst [vmem:[%s2097_s12 + $0x90] sm:$0xff] %v1730_v33  ;;  %v1291_v43 = vmax.f32 %v1227_v35, 0.0  ;;  %v1292_v44 = vmax.f32 %v1228_v36, 0.0  ;;  %v1231_v45 = vadd.f32 %v2171_v8, %v1145_v31  ;;  %v1232_v46 = vadd.f32 %v2173_v9, %v1146_v32 }
 0x1ac   : > { %1524 = vst [vmem:[%s2097_s12 + $0x98] sm:$0xff] %v1731_v38  ;;  %v1732_v49 = vpack.c.bf16 %v1290_v39, %v1289_v34  ;;  %v1293_v50 = vmax.f32 %v1229_v40, 0.0  ;;  %v1294_v51 = vmax.f32 %v1230_v41, 0.0  ;;  %v1233_v52 = vadd.f32 %v2167_v6, %v1147_v37 }
 0x1ad   : > { %v1733_v55 = vpack.c.bf16 %v1292_v44, %v1291_v43  ;;  %v1295_v56 = vmax.f32 %v1231_v45, 0.0  ;;  %v1296_v57 = vmax.f32 %v1232_v46, 0.0  ;;  %v1234_v58 = vadd.f32 %v2169_v7, %v1148_v42 }
 0x1ae   : > { %1525 = vst [vmem:[%s2097_s12 + $0xa0] sm:$0xff] %v1732_v49  ;;  %v1734_v61 = vpack.c.bf16 %v1294_v51, %v1293_v50  ;;  %v1297_v62 = vmax.f32 %v1233_v52, 0.0  ;;  %v1235_v63 = vadd.f32 %v2171_v8, %v1149_v47  ;;  %v1236_v0 = vadd.f32 %v2173_v9, %v1150_v48 }
 0x1af   : > { %1526 = vst [vmem:[%s2097_s12 + $0xa8] sm:$0xff] %v1733_v55  ;;  %v1735_v2 = vpack.c.bf16 %v1296_v57, %v1295_v56  ;;  %v1298_v3 = vmax.f32 %v1234_v58, 0.0  ;;  %v1237_v4 = vadd.f32 %v2167_v6, %v1151_v53  ;;  %v1238_v5 = vadd.f32 %v2169_v7, %v1152_v54 }
 0x1b0   : > { %1527 = vst [vmem:[%s2097_s12 + $0xb0] sm:$0xff] %v1734_v61  ;;  %v1299_v11 = vmax.f32 %v1235_v63, 0.0  ;;  %v1300_v12 = vmax.f32 %v1236_v0, 0.0  ;;  %v1239_v13 = vadd.f32 %v2171_v8, %v1153_v59  ;;  %v1240_v14 = vadd.f32 %v2173_v9, %v1154_v60 }
 0x1b1   : > { %1528 = vst [vmem:[%s2097_s12 + $0xb8] sm:$0xff] %v1735_v2  ;;  %v1736_v17 = vpack.c.bf16 %v1298_v3, %v1297_v62  ;;  %v1301_v18 = vmax.f32 %v1237_v4, 0.0  ;;  %v1302_v19 = vmax.f32 %v1238_v5, 0.0  ;;  %v1241_v20 = vadd.f32 %v2167_v6, %v1155_v1 }
 0x1b2   : > { %v1737_v23 = vpack.c.bf16 %v1300_v12, %v1299_v11  ;;  %v1303_v24 = vmax.f32 %v1239_v13, 0.0  ;;  %v1304_v25 = vmax.f32 %v1240_v14, 0.0  ;;  %v1242_v26 = vadd.f32 %v2169_v7, %v1156_v10 }
 0x1b3   : > { %1529 = vst [vmem:[%s2097_s12 + $0xc0] sm:$0xff] %v1736_v17  ;;  %v1738_v29 = vpack.c.bf16 %v1302_v19, %v1301_v18  ;;  %v1305_v30 = vmax.f32 %v1241_v20, 0.0  ;;  %v1243_v31 = vadd.f32 %v2171_v8, %v1157_v15  ;;  %v1244_v32 = vadd.f32 %v2173_v9, %v1158_v16 }
 0x1b4   : > { %1530 = vst [vmem:[%s2097_s12 + $0xc8] sm:$0xff] %v1737_v23  ;;  %v1739_v33 = vpack.c.bf16 %v1304_v25, %v1303_v24  ;;  %v1306_v34 = vmax.f32 %v1242_v26, 0.0  ;;  %v1245_v35 = vadd.f32 %v2167_v6, %v1159_v21  ;;  %v1246_v36 = vadd.f32 %v2169_v7, %v1160_v22 }
 0x1b5   : > { %1531 = vst [vmem:[%s2097_s12 + $0xd0] sm:$0xff] %v1738_v29  ;;  %v1307_v37 = vmax.f32 %v1243_v31, 0.0  ;;  %v1308_v38 = vmax.f32 %v1244_v32, 0.0  ;;  %v1247_v39 = vadd.f32 %v2171_v8, %v1161_v27  ;;  %v1248_v40 = vadd.f32 %v2173_v9, %v1162_v28 }
 0x1b6   : > { %1532 = vst [vmem:[%s2097_s12 + $0xd8] sm:$0xff] %v1739_v33  ;;  %v1740_v41 = vpack.c.bf16 %v1306_v34, %v1305_v30  ;;  %v1309_v42 = vmax.f32 %v1245_v35, 0.0  ;;  %v1310_v43 = vmax.f32 %v1246_v36, 0.0 }
 0x1b7   : > { %v1741_v44 = vpack.c.bf16 %v1308_v38, %v1307_v37  ;;  %v1311_v45 = vmax.f32 %v1247_v39, 0.0  ;;  %v1312_v46 = vmax.f32 %v1248_v40, 0.0 }
 0x1b8   : > { %1533 = vst [vmem:[%s2097_s12 + $0xe0] sm:$0xff] %v1740_v41  ;;  %v1742_v6 = vpack.c.bf16 %v1310_v43, %v1309_v42 }
 0x1b9   : > { %1534 = vst [vmem:[%s2097_s12 + $0xe8] sm:$0xff] %v1741_v44  ;;  %v1743_v7 = vpack.c.bf16 %v1312_v46, %v1311_v45 }
 0x1ba   : > { %1535 = vst [vmem:[%s2097_s12 + $0xf0] sm:$0xff] %v1742_v6 }
 0x1bb   : > { %1536 = vst [vmem:[%s2097_s12 + $0xf8] sm:$0xff] %v1743_v7 }
 0x1bc PF: > { %s25_s30 = sadd.s32 1, %s1908_s30   ;;  %s2293_s1 = smov %s1896_s27 }
 0x1bd   : > { %p22_p7 = scmp.ge.s32.totalorder %s25_s30, 4   ;;  %s2294_s27 = smov %s1987_s15 }
 0x1be   : > { %s2295_s28 = smov %s1904_s29  ;;  %s2296_s29 = smov %s2298_s6 }
 0x1bf   :  { %24 = sbr.rel (!%p22_p7) target bundleno = 28 (0x1c), region = 121 }

// kernel: gcn_forward.10
= control target key start
LH: loop header
LB: loop body
LE: loop exit
PB: predicated region body
PF: predicated region fallthrough
CT: control target
= control target key end

     0   :  { %s1324_s9 = smov 0   ;;  %s1487_s0 = inlined_call_operand.vmem [shape: bf16[256,512], index: 0, kind: input, shape index: {}]   ;;  %s1488_s1 = inlined_call_operand.vmem [shape: bf16[512,128], index: 1, kind: input, shape index: {}]   ;;  %s1489_s2 = inlined_call_operand.vmem [shape: bf16[256,128], index: 2, kind: output, shape index: {}]  }
   0x1 LB: > { %s929_s10 = sadd.s32 4294967295, %s1307_s9   ;;  %p933_p0 = scmp.ge.s32.totalorder %s1307_s9, 1  ;;  %s1307_s9 = sphi %s1324_s9, %s12_s9  }
   0x2   : > { %p114_p1 = scmp.lt.s32.totalorder %s1307_s9, 3 }
   0x4   : > { %p115_p2 = pnand %p933_p0, %p114_p1 }
   0x5   : > { %v1221_v0 = vld [vmem:[%s1488_s1 + $0x40] sm:$0xff] (!%p115_p2)   ;;  %v1225_v4 = vld [vmem:[%s1488_s1 + $0x48] sm:$0xff] (!%p115_p2)   ;;  %v1229_v8 = vld [vmem:[%s1488_s1 + $0x50] sm:$0xff] (!%p115_p2)   ;;  %s934_s17 = sshll.u32 (!%p115_p2), %s929_s10, 4 }
   0x6   : > { %118 = sbr.rel (%p115_p2) target bundleno = 318 (0x13e), region = 28  ;;  %v1222_v1 = vld [vmem:[%s1488_s1 + $0xc0] sm:$0xff] (!%p115_p2)   ;;  %1085 = vmatprep.subr.bf16.mxu0 (!%p115_p2), %v1221_v0  ;;  %v1226_v5 = vld [vmem:[%s1488_s1 + $0xc8] sm:$0xff] (!%p115_p2)   ;;  %v1230_v9 = vld [vmem:[%s1488_s1 + $0xd0] sm:$0xff] (!%p115_p2)   ;;  %p138_p3 = scmp.lt.s32.totalorder (!%p115_p2), %s934_s17, 31 }
   0x7   : > { %v1223_v2 = vld [vmem:[%s1488_s1] sm:$0xff] (!%p115_p2)   ;;  %1149 = vmatprep.subr.bf16.mxu1 (!%p115_p2), %v1222_v1  ;;  %v1227_v6 = vld [vmem:[%s1488_s1 + $0x8] sm:$0xff] (!%p115_p2)   ;;  %v1231_v10 = vld [vmem:[%s1488_s1 + $0x10] sm:$0xff] (!%p115_p2)  }
   0x8   : > { %v1224_v3 = vld [vmem:[%s1488_s1 + $0x80] sm:$0xff] (!%p115_p2)   ;;  %1086 = vmatpush3.bf16.msra.mxu0 (!%p115_p2), %v1223_v2  ;;  %v1228_v7 = vld [vmem:[%s1488_s1 + $0x88] sm:$0xff] (!%p115_p2)   ;;  %v1232_v11 = vld [vmem:[%s1488_s1 + $0x90] sm:$0xff] (!%p115_p2)  }
   0x9   : > { %1150 = vmatpush3.bf16.msra.mxu1 (!%p115_p2), %v1224_v3  ;;  %1087 = vmatprep.subr.bf16.mxu0 (!%p115_p2), %v1225_v4  ;;  %v1233_v12 = vld [vmem:[%s1488_s1 + $0x58] sm:$0xff] (!%p115_p2)   ;;  %v1237_v16 = vld [vmem:[%s1488_s1 + $0x60] sm:$0xff] (!%p115_p2)   ;;  %v1241_v20 = vld [vmem:[%s1488_s1 + $0x68] sm:$0xff] (!%p115_p2)  }
   0xa   : > { %1151 = vmatprep.subr.bf16.mxu1 (!%p115_p2), %v1226_v5  ;;  %v1234_v13 = vld [vmem:[%s1488_s1 + $0xd8] sm:$0xff] (!%p115_p2)   ;;  %v1238_v17 = vld [vmem:[%s1488_s1 + $0xe0] sm:$0xff] (!%p115_p2)   ;;  %v1242_v21 = vld [vmem:[%s1488_s1 + $0xe8] sm:$0xff] (!%p115_p2)  }
   0xb   : > { %v1235_v14 = vld [vmem:[%s1488_s1 + $0x18] sm:$0xff] (!%p115_p2)   ;;  %v1239_v18 = vld [vmem:[%s1488_s1 + $0x20] sm:$0xff] (!%p115_p2)   ;;  %v1243_v22 = vld [vmem:[%s1488_s1 + $0x28] sm:$0xff] (!%p115_p2)  }
   0xc   : > { %1088 = vmatpush3.bf16.msra.mxu0 (!%p115_p2), %v1227_v6  ;;  %v1236_v15 = vld [vmem:[%s1488_s1 + $0x98] sm:$0xff] (!%p115_p2)   ;;  %v1240_v19 = vld [vmem:[%s1488_s1 + $0xa0] sm:$0xff] (!%p115_p2)   ;;  %v1244_v23 = vld [vmem:[%s1488_s1 + $0xa8] sm:$0xff] (!%p115_p2)  }
   0xd   : > { %1152 = vmatpush3.bf16.msra.mxu1 %v1228_v7  ;;  %1089 = vmatprep.subr.bf16.mxu0 %v1229_v8  ;;  %s1491_s17 = smov (!%p138_p3, %s934_s17), 31  ;;  %v1245_v24 = vld [vmem:[%s1488_s1 + $0x70] sm:$0xff]   ;;  %v1249_v28 = vld [vmem:[%s1488_s1 + $0x78] sm:$0xff]  }
   0xe   : > { %1153 = vmatprep.subr.bf16.mxu1 %v1230_v9  ;;  %v1246_v25 = vld [vmem:[%s1488_s1 + $0xf0] sm:$0xff]   ;;  %s1021_s13 = sshll.u32 %s1491_s17, 4  ;;  %v1250_v29 = vld [vmem:[%s1488_s1 + $0xf8] sm:$0xff]   ;;  %s938_s27 = sshll.u32 %s1491_s17, 2 }
   0xf   : > { %v1247_v26 = vld [vmem:[%s1488_s1 + $0x30] sm:$0xff]   ;;  %s1430_s23 = scalar_lea.vmem %s1487_s0, %s1021_s13  ;;  %v1251_v30 = vld [vmem:[%s1488_s1 + $0x38] sm:$0xff]   ;;  %s1474_s30 = scalar_lea.vmem %s1489_s2, %s938_s27 }
  0x10   : > { %1090 = vmatpush3.bf16.msra.mxu0 %v1231_v10  ;;  %v1248_v27 = vld [vmem:[%s1488_s1 + $0xb0] sm:$0xff]   ;;  %v1252_v31 = vld [vmem:[%s1488_s1 + $0xb8] sm:$0xff]  }
  0x11   : > { %1154 = vmatpush3.bf16.msra.mxu1 %v1232_v11  ;;  %1091 = vmatprep.subr.bf16.mxu0 %v1233_v12  ;;  %v1253_v32 = vld [vmem:[%s1430_s23] ss:$16 sps:$4 sm:$0xff]   ;;  %v1255_v33 = vld [vmem:[%s1430_s23 + $0x4] ss:$16 sps:$4 sm:$0xff]   ;;  %v1256_v34 = vld [vmem:[%s1430_s23 + $0x8] ss:$16 sps:$4 sm:$0xff]  }
  0x12   : > { %1155 = vmatprep.subr.bf16.mxu1 %v1234_v13  ;;  %v1258_v35 = vld [vmem:[%s1430_s23 + $0xc] ss:$16 sps:$4 sm:$0xff]   ;;  %631 = vmatprep.mubr.bf16.mxu0 %v1255_v33  ;;  %v1259_v36 = vld [vmem:[%s1430_s23 + $0x24] ss:$16 sps:$4 sm:$0xff]   ;;  %v1263_v38 = vld [vmem:[%s1430_s23 + $0x20] ss:$16 sps:$4 sm:$0xff]  }
  0x13   : > { %728 = vmatprep.mubr.bf16.mxu1 %v1258_v35  ;;  %v1261_v37 = vld [vmem:[%s1430_s23 + $0x2c] ss:$16 sps:$4 sm:$0xff]   ;;  %v1264_v39 = vld [vmem:[%s1430_s23 + $0x28] ss:$16 sps:$4 sm:$0xff]   ;;  %v1265_v40 = vld [vmem:[%s1430_s23 + $0x44] ss:$16 sps:$4 sm:$0xff]  }
  0x14   : > { %1092 = vmatpush3.bf16.msra.mxu0 %v1235_v14  ;;  %v1267_v41 = vld [vmem:[%s1430_s23 + $0x4c] ss:$16 sps:$4 sm:$0xff]   ;;  %v1269_v42 = vld [vmem:[%s1430_s23 + $0x40] ss:$16 sps:$4 sm:$0xff]   ;;  %v1270_v43 = vld [vmem:[%s1430_s23 + $0x48] ss:$16 sps:$4 sm:$0xff]  }
  0x15   : > { %1156 = vmatpush3.bf16.msra.mxu1 %v1236_v15  ;;  %1093 = vmatprep.subr.bf16.mxu0 %v1237_v16  ;;  %v1271_v44 = vld [vmem:[%s1430_s23 + $0x64] ss:$16 sps:$4 sm:$0xff]   ;;  %v1273_v45 = vld [vmem:[%s1430_s23 + $0x6c] ss:$16 sps:$4 sm:$0xff]   ;;  %v1275_v46 = vld [vmem:[%s1430_s23 + $0x60] ss:$16 sps:$4 sm:$0xff]  }
  0x16   : > { %1157 = vmatprep.subr.bf16.mxu1 %v1238_v17  ;;  %v1276_v47 = vld [vmem:[%s1430_s23 + $0x68] ss:$16 sps:$4 sm:$0xff]   ;;  %v1277_v48 = vld [vmem:[%s1430_s23 + $0x84] ss:$16 sps:$4 sm:$0xff]   ;;  %v1279_v49 = vld [vmem:[%s1430_s23 + $0x8c] ss:$16 sps:$4 sm:$0xff]  }
  0x17   : > { %v1281_v50 = vld [vmem:[%s1430_s23 + $0x80] ss:$16 sps:$4 sm:$0xff]   ;;  %v1282_v51 = vld [vmem:[%s1430_s23 + $0x88] ss:$16 sps:$4 sm:$0xff]   ;;  %v1283_v52 = vld [vmem:[%s1430_s23 + $0xa4] ss:$16 sps:$4 sm:$0xff]  }
  0x18   : > { %1094 = vmatpush3.bf16.msra.mxu0 %v1239_v18  ;;  %v1285_v53 = vld [vmem:[%s1430_s23 + $0xac] ss:$16 sps:$4 sm:$0xff]   ;;  %v1287_v54 = vld [vmem:[%s1430_s23 + $0xa0] ss:$16 sps:$4 sm:$0xff]   ;;  %v1288_v55 = vld [vmem:[%s1430_s23 + $0xa8] ss:$16 sps:$4 sm:$0xff]  }
  0x19   : > { %1158 = vmatpush3.bf16.msra.mxu1 %v1240_v19  ;;  %1095 = vmatprep.subr.bf16.mxu0 %v1241_v20  ;;  %v1289_v56 = vld [vmem:[%s1430_s23 + $0xc4] ss:$16 sps:$4 sm:$0xff]   ;;  %v1291_v57 = vld [vmem:[%s1430_s23 + $0xcc] ss:$16 sps:$4 sm:$0xff]   ;;  %v1293_v58 = vld [vmem:[%s1430_s23 + $0xc0] ss:$16 sps:$4 sm:$0xff]  }
  0x1a   : > { %1159 = vmatprep.subr.bf16.mxu1 %v1242_v21  ;;  %v1294_v59 = vld [vmem:[%s1430_s23 + $0xc8] ss:$16 sps:$4 sm:$0xff]   ;;  %v1295_v60 = vld [vmem:[%s1430_s23 + $0xe4] ss:$16 sps:$4 sm:$0xff]   ;;  %v1297_v61 = vld [vmem:[%s1430_s23 + $0xec] ss:$16 sps:$4 sm:$0xff]  }
  0x1b   : > { %v1299_v62 = vld [vmem:[%s1430_s23 + $0xe0] ss:$16 sps:$4 sm:$0xff]   ;;  %v1300_v63 = vld [vmem:[%s1430_s23 + $0xe8] ss:$16 sps:$4 sm:$0xff]  }
  0x1c   : > { %1096 = vmatpush3.bf16.msra.mxu0 %v1243_v22 }
  0x1d   : > { %1160 = vmatpush3.bf16.msra.mxu1 %v1244_v23  ;;  %1097 = vmatprep.subr.bf16.mxu0 %v1245_v24 }
  0x1e   : > { %1161 = vmatprep.subr.bf16.mxu1 %v1246_v25 }
  0x20   : > { %1098 = vmatpush3.bf16.msra.mxu0 %v1247_v26 }
  0x21   : > { %1162 = vmatpush3.bf16.msra.mxu1 %v1248_v27  ;;  %1099 = vmatprep.subr.bf16.mxu0 %v1249_v28 }
  0x22   : > { %1163 = vmatprep.subr.bf16.mxu1 %v1250_v29 }
  0x24   : > { %1100 = vmatpush3.bf16.msra.mxu0 %v1251_v30 }
  0x25   : > { %1164 = vmatpush3.bf16.msra.mxu1 %v1252_v31 }
  0x27   : > { %632 = vmatmul.mubr.bf16.vlgmr.msra.gmra.mrb[0].mxu0 %v1253_v32 }
  0x28   : > { %729 = vmatmul.mubr.bf16.vlgmr.msra.gmra.mrb[0].mxu1 %v1256_v34  ;;  %639 = vmatprep.mubr.bf16.mxu0 %v1259_v36 }
  0x29   : > { %736 = vmatprep.mubr.bf16.mxu1 %v1261_v37 }
  0x2f   : > { %640 = vmatmul.mubr.bf16.gmra.mrb[4].mxu0 %v1263_v38 }
  0x30   : > { %737 = vmatmul.mubr.bf16.gmra.mrb[4].mxu1 %v1264_v39  ;;  %647 = vmatprep.mubr.bf16.mxu0 %v1265_v40 }
  0x31   : > { %744 = vmatprep.mubr.bf16.mxu1 %v1267_v41 }
  0x37   : > { %648 = vmatmul.mubr.bf16.gmra.mrb[8].mxu0 %v1269_v42 }
  0x38   : > { %745 = vmatmul.mubr.bf16.gmra.mrb[8].mxu1 %v1270_v43  ;;  %655 = vmatprep.mubr.bf16.mxu0 %v1271_v44 }
  0x39   : > { %752 = vmatprep.mubr.bf16.mxu1 %v1273_v45 }
  0x3f   : > { %656 = vmatmul.mubr.bf16.gmra.mrb[12].mxu0 %v1275_v46 }
  0x40   : > { %753 = vmatmul.mubr.bf16.gmra.mrb[12].mxu1 %v1276_v47  ;;  %663 = vmatprep.mubr.bf16.mxu0 %v1277_v48 }
  0x41   : > { %760 = vmatprep.mubr.bf16.mxu1 %v1279_v49 }
  0x47   : > { %664 = vmatmul.mubr.bf16.gmra.mrb[16].mxu0 %v1281_v50 }
  0x48   : > { %761 = vmatmul.mubr.bf16.gmra.mrb[16].mxu1 %v1282_v51  ;;  %671 = vmatprep.mubr.bf16.mxu0 %v1283_v52 }
  0x49   : > { %768 = vmatprep.mubr.bf16.mxu1 %v1285_v53 }
  0x4f   : > { %672 = vmatmul.mubr.bf16.gmra.mrb[20].mxu0 %v1287_v54 }
  0x50   : > { %769 = vmatmul.mubr.bf16.gmra.mrb[20].mxu1 %v1288_v55  ;;  %679 = vmatprep.mubr.bf16.mxu0 %v1289_v56 }
  0x51   : > { %776 = vmatprep.mubr.bf16.mxu1 %v1291_v57 }
  0x57   : > { %680 = vmatmul.mubr.bf16.gmra.mrb[24].mxu0 %v1293_v58 }
  0x58   : > { %777 = vmatmul.mubr.bf16.gmra.mrb[24].mxu1 %v1294_v59  ;;  %687 = vmatprep.mubr.bf16.mxu0 %v1295_v60 }
  0x59   : > { %784 = vmatprep.mubr.bf16.mxu1 %v1297_v61 }
  0x5f   : > { %688 = vmatmul.mubr.bf16.gmra.mrb[28].mxu0 %v1299_v62 }
  0x60   : > { %785 = vmatmul.mubr.bf16.gmra.mrb[28].mxu1 %v1300_v63 }
  0xfa   : > { %v1101_v0 = vpop.f32.mrb[0].mxu0 }
  0xfb   : > { %v1165_v1 = vpop.f32.mrb[0].mxu1  ;;  %v1102_v2 = vpop.f32.mrb[1].mxu0 }
  0xfc   : > { %v1103_v3 = vadd.f32 %v1102_v2, %v1101_v0  ;;  %v1166_v4 = vpop.f32.mrb[1].mxu1  ;;  %v1104_v5 = vpop.f32.mrb[2].mxu0 }
  0xfd   : > { %v1167_v6 = vadd.f32 %v1166_v4, %v1165_v1  ;;  %v1168_v7 = vpop.f32.mrb[2].mxu1  ;;  %v1105_v8 = vpop.f32.mrb[3].mxu0 }
  0xfe   : > { %v1106_v9 = vadd.f32 %v1105_v8, %v1104_v5  ;;  %v1169_v10 = vpop.f32.mrb[3].mxu1 }
  0xff   : > { %v731_v11 = vadd.f32 %v1167_v6, %v1103_v3  ;;  %v1170_v12 = vadd.f32 %v1169_v10, %v1168_v7 }
 0x101   : > { %v734_v13 = vadd.f32 %v1170_v12, %v1106_v9 }
 0x102   : > { %v1107_v14 = vpop.f32.mrb[4].mxu0 }
 0x103   : > { %v1041_v15 = vpack.c.bf16 %v734_v13, %v731_v11  ;;  %v1171_v16 = vpop.f32.mrb[4].mxu1  ;;  %v1108_v17 = vpop.f32.mrb[5].mxu0 }
 0x104   : > { %v1109_v18 = vadd.f32 %v1108_v17, %v1107_v14  ;;  %v1172_v19 = vpop.f32.mrb[5].mxu1  ;;  %v1110_v20 = vpop.f32.mrb[6].mxu0 }
 0x105   : > { %1042 = vst [vmem:[%s1474_s30] sm:$0xff] %v1041_v15   ;;  %v1173_v21 = vadd.f32 %v1172_v19, %v1171_v16  ;;  %v1174_v22 = vpop.f32.mrb[6].mxu1  ;;  %v1111_v23 = vpop.f32.mrb[7].mxu0 }
 0x106   : > { %v1112_v24 = vadd.f32 %v1111_v23, %v1110_v20  ;;  %v1175_v25 = vpop.f32.mrb[7].mxu1 }
 0x107   : > { %v739_v26 = vadd.f32 %v1173_v21, %v1109_v18  ;;  %v1176_v27 = vadd.f32 %v1175_v25, %v1174_v22 }
 0x109   : > { %v742_v28 = vadd.f32 %v1176_v27, %v1112_v24 }
 0x10a   : > { %v1113_v29 = vpop.f32.mrb[8].mxu0 }
 0x10b   : > { %v1046_v30 = vpack.c.bf16 %v742_v28, %v739_v26  ;;  %v1177_v31 = vpop.f32.mrb[8].mxu1  ;;  %v1114_v32 = vpop.f32.mrb[9].mxu0 }
 0x10c   : > { %v1115_v33 = vadd.f32 %v1114_v32, %v1113_v29  ;;  %v1178_v34 = vpop.f32.mrb[9].mxu1  ;;  %v1116_v35 = vpop.f32.mrb[10].mxu0 }
 0x10d   : > { %1078 = vst [vmem:[%s1474_s30 + $0x8] sm:$0xff] %v1046_v30   ;;  %v1179_v36 = vadd.f32 %v1178_v34, %v1177_v31  ;;  %v1180_v37 = vpop.f32.mrb[10].mxu1  ;;  %v1117_v38 = vpop.f32.mrb[11].mxu0 }
 0x10e   : > { %v1118_v39 = vadd.f32 %v1117_v38, %v1116_v35  ;;  %v1181_v40 = vpop.f32.mrb[11].mxu1 }
 0x10f   : > { %v747_v41 = vadd.f32 %v1179_v36, %v1115_v33  ;;  %v1182_v42 = vadd.f32 %v1181_v40, %v1180_v37 }
 0x111   : > { %v750_v43 = vadd.f32 %v1182_v42, %v1118_v39 }
 0x112   : > { %v1119_v44 = vpop.f32.mrb[12].mxu0 }
 0x113   : > { %v1051_v45 = vpack.c.bf16 %v750_v43, %v747_v41  ;;  %v1183_v46 = vpop.f32.mrb[12].mxu1  ;;  %v1120_v47 = vpop.f32.mrb[13].mxu0 }
 0x114   : > { %v1121_v48 = vadd.f32 %v1120_v47, %v1119_v44  ;;  %v1184_v49 = vpop.f32.mrb[13].mxu1  ;;  %v1122_v50 = vpop.f32.mrb[14].mxu0 }
 0x115   : > { %1079 = vst [vmem:[%s1474_s30 + $0x10] sm:$0xff] %v1051_v45   ;;  %v1185_v51 = vadd.f32 %v1184_v49, %v1183_v46  ;;  %v1186_v52 = vpop.f32.mrb[14].mxu1  ;;  %v1123_v53 = vpop.f32.mrb[15].mxu0 }
 0x116   : > { %v1124_v54 = vadd.f32 %v1123_v53, %v1122_v50  ;;  %v1187_v55 = vpop.f32.mrb[15].mxu1 }
 0x117   : > { %v755_v56 = vadd.f32 %v1185_v51, %v1121_v48  ;;  %v1188_v57 = vadd.f32 %v1187_v55, %v1186_v52 }
 0x119   : > { %v758_v58 = vadd.f32 %v1188_v57, %v1124_v54 }
 0x11a   : > { %v1125_v59 = vpop.f32.mrb[16].mxu0 }
 0x11b   : > { %v1056_v60 = vpack.c.bf16 %v758_v58, %v755_v56  ;;  %v1189_v61 = vpop.f32.mrb[16].mxu1  ;;  %v1126_v62 = vpop.f32.mrb[17].mxu0 }
 0x11c   : > { %v1127_v63 = vadd.f32 %v1126_v62, %v1125_v59  ;;  %v1190_v0 = vpop.f32.mrb[17].mxu1  ;;  %v1128_v1 = vpop.f32.mrb[18].mxu0 }
 0x11d   : > { %1080 = vst [vmem:[%s1474_s30 + $0x18] sm:$0xff] %v1056_v60   ;;  %v1191_v2 = vadd.f32 %v1190_v0, %v1189_v61  ;;  %v1192_v3 = vpop.f32.mrb[18].mxu1  ;;  %v1129_v4 = vpop.f32.mrb[19].mxu0 }
 0x11e   : > { %v1130_v5 = vadd.f32 %v1129_v4, %v1128_v1  ;;  %v1193_v6 = vpop.f32.mrb[19].mxu1 }
 0x11f   : > { %v763_v7 = vadd.f32 %v1191_v2, %v1127_v63  ;;  %v1194_v8 = vadd.f32 %v1193_v6, %v1192_v3 }
 0x121   : > { %v766_v9 = vadd.f32 %v1194_v8, %v1130_v5 }
 0x122   : > { %v1131_v10 = vpop.f32.mrb[20].mxu0 }
 0x123   : > { %v1061_v11 = vpack.c.bf16 %v766_v9, %v763_v7  ;;  %v1195_v12 = vpop.f32.mrb[20].mxu1  ;;  %v1132_v13 = vpop.f32.mrb[21].mxu0 }
 0x124   : > { %v1133_v14 = vadd.f32 %v1132_v13, %v1131_v10  ;;  %v1196_v15 = vpop.f32.mrb[21].mxu1  ;;  %v1134_v16 = vpop.f32.mrb[22].mxu0 }
 0x125   : > { %1081 = vst [vmem:[%s1474_s30 + $0x20] sm:$0xff] %v1061_v11   ;;  %v1197_v17 = vadd.f32 %v1196_v15, %v1195_v12  ;;  %v1198_v18 = vpop.f32.mrb[22].mxu1  ;;  %v1135_v19 = vpop.f32.mrb[23].mxu0 }
 0x126   : > { %v1136_v20 = vadd.f32 %v1135_v19, %v1134_v16  ;;  %v1199_v21 = vpop.f32.mrb[23].mxu1 }
 0x127   : > { %v771_v22 = vadd.f32 %v1197_v17, %v1133_v14  ;;  %v1200_v23 = vadd.f32 %v1199_v21, %v1198_v18 }
 0x129   : > { %v774_v24 = vadd.f32 %v1200_v23, %v1136_v20 }
 0x12a   : > { %v1137_v25 = vpop.f32.mrb[24].mxu0 }
 0x12b   : > { %v1066_v26 = vpack.c.bf16 %v774_v24, %v771_v22  ;;  %v1201_v27 = vpop.f32.mrb[24].mxu1  ;;  %v1138_v28 = vpop.f32.mrb[25].mxu0 }
 0x12c   : > { %v1139_v29 = vadd.f32 %v1138_v28, %v1137_v25  ;;  %v1202_v30 = vpop.f32.mrb[25].mxu1  ;;  %v1140_v31 = vpop.f32.mrb[26].mxu0 }
 0x12d   : > { %1082 = vst [vmem:[%s1474_s30 + $0x28] sm:$0xff] %v1066_v26   ;;  %v1203_v32 = vadd.f32 %v1202_v30, %v1201_v27  ;;  %v1204_v33 = vpop.f32.mrb[26].mxu1  ;;  %v1141_v34 = vpop.f32.mrb[27].mxu0 }
 0x12e   : > { %v1142_v35 = vadd.f32 %v1141_v34, %v1140_v31  ;;  %v1205_v36 = vpop.f32.mrb[27].mxu1 }
 0x12f   : > { %v779_v37 = vadd.f32 %v1203_v32, %v1139_v29  ;;  %v1206_v38 = vadd.f32 %v1205_v36, %v1204_v33 }
 0x131   : > { %v782_v39 = vadd.f32 %v1206_v38, %v1142_v35 }
 0x132   : > { %v1143_v40 = vpop.f32.mrb[28].mxu0 }
 0x133   : > { %v1071_v41 = vpack.c.bf16 %v782_v39, %v779_v37  ;;  %v1207_v42 = vpop.f32.mrb[28].mxu1  ;;  %v1144_v43 = vpop.f32.mrb[29].mxu0 }
 0x134   : > { %v1145_v44 = vadd.f32 %v1144_v43, %v1143_v40  ;;  %v1208_v45 = vpop.f32.mrb[29].mxu1  ;;  %v1146_v46 = vpop.f32.mrb[30].mxu0 }
 0x135   : > { %1083 = vst [vmem:[%s1474_s30 + $0x30] sm:$0xff] %v1071_v41   ;;  %v1209_v47 = vadd.f32 %v1208_v45, %v1207_v42  ;;  %v1210_v48 = vpop.f32.mrb[30].mxu1  ;;  %v1147_v49 = vpop.f32.mrb[31].mxu0 }
 0x136   : > { %v1148_v50 = vadd.f32 %v1147_v49, %v1146_v46  ;;  %v1211_v51 = vpop.f32.mrb[31].mxu1 }
 0x137   : > { %v787_v52 = vadd.f32 %v1209_v47, %v1145_v44  ;;  %v1212_v53 = vadd.f32 %v1211_v51, %v1210_v48 }
 0x139   : > { %v790_v54 = vadd.f32 %v1212_v53, %v1148_v50 }
 0x13b   : > { %v1076_v55 = vpack.c.bf16 %v790_v54, %v787_v52 }
 0x13d   : > { %1084 = vst [vmem:[%s1474_s30 + $0x38] sm:$0xff] %v1076_v55  }
 0x13e PF: > { %s12_s9 = sadd.s32 1, %s1307_s9  }
 0x13f   : > { %p9_p4 = scmp.ge.s32.totalorder %s12_s9, 4  }
 0x141   :  { %11 = sbr.rel (!%p9_p4) target bundleno = 1 (0x1), region = 58 }

// kernel: gcn_forward.11
= control target key start
LH: loop header
LB: loop body
LE: loop exit
PB: predicated region body
PF: predicated region fallthrough
CT: control target
= control target key end

     0   :  { %s1242_s0 = inlined_call_operand.vmem [shape: s32[2], index: 0, kind: input, shape index: {}]   ;;  %s1243_s2 = inlined_call_operand.vmem [shape: bf16[256,256], index: 2, kind: input, shape index: {}]   ;;  %s1244_s3 = inlined_call_operand.vmem [shape: bf16[2,128,128], index: 3, kind: input, shape index: {}]   ;;  %s1245_s4 = inlined_call_operand.vmem [shape: f32[1,128], index: 4, kind: input, shape index: {}]   ;;  %s1246_s5 = inlined_call_operand.vmem [shape: f32[256,128], index: 5, kind: output, shape index: {}]   ;;  %s1247_s1 = inlined_call_operand.vmem [shape: s32[2,1], index: 1, kind: input, shape index: {}]  }
   0x1   :  { %s10_s20 = sshll.u32 %s1242_s0, 4  ;;  %s14_s23 = sshll.u32 %s1247_s1, 4  ;;  %s11_s20 = int_to_ptr.vmem [resolvable:$true] %s10_s20  ;;  %s15_s23 = int_to_ptr.vmem [resolvable:$true] %s14_s23 }
   0x2   :  { %s942_s24 = scalar_lea.vmem %s11_s20, 16  ;;  %p947_p1 = scmp.lt.s32.totalorder %s11_s20, %s11_s20 }
   0x3   :  { %p943_p0 = scmp.ne.s32.totalorder %s11_s20, %s942_s24  ;;  %p948_p2 = scmp.lt.s32.totalorder %s942_s24, %s942_s24 }
   0x5   :  { %p949_p3 = por %p948_p2, %p947_p1 }
   0x7   :  { %p950_p4 = pnand %p949_p3, %p943_p0 }
   0x9   :  { %953 = shalt.err (!%p950_p4)  }
   0xa   :  { %s1008_s25 = smov [#allocation3]   ;;  %s954_s26 = scalar_lea.vmem %s15_s23, 32 }
   0xb   :  { %13 = dma.vmem_to_smem %s11_s20, 16, %s1008_s25, [#allocation2] }
   0xc   :  { %p955_p5 = scmp.ne.s32.totalorder %s15_s23, %s954_s26  ;;  %p959_p6 = scmp.lt.s32.totalorder %s15_s23, %s15_s23 }
   0xd   :  { %p960_p7 = scmp.lt.s32.totalorder %s954_s26, %s954_s26 }
   0xf   :  { %p961_p8 = por %p960_p7, %p959_p6 }
  0x11   :  { %p962_p9 = pnand %p961_p8, %p955_p5 }
  0x13   :  { %965 = shalt.err (!%p962_p9)  }
  0x14   :  { %s1009_s0 = smov [#allocation4]  }
  0x15   :  { %17 = dma.vmem_to_smem %s15_s23, 32, %s1009_s0, [#allocation2] }
  0x16   :  { %986 = dma.done.wait [#allocation2], 48 }
  0x17   :  { %987 = vsyncadd [#allocation2], 4294967248 }
  0x18   :  { %19 = sfence }
  0x19   :  { %s1047_s1 = smov 0   ;;  %s1049_s27 = smov 0  }
  0x1a   :  { %s1051_s28 = smov 0   ;;  %s1053_s29 = smov 0  }
  0x1b   :  { %s1055_s30 = smov 0  }
  0x1c LB: > { %s37_s6 = sadd.s32 1, %s1002_s29  ;;  %s780_s7 = sshll.u32 %s1002_s29, 7  ;;  %s1006_s30 = sphi %s1055_s30, %s25_s30   ;;  %s1002_s29 = sphi %s1053_s29, %s1251_s29   ;;  %s998_s28 = sphi %s1051_s28, %s1250_s28   ;;  %s994_s27 = sphi %s1049_s27, %s1249_s27   ;;  %s990_s1 = sphi %s1047_s1, %s1248_s1  }
  0x1d   : > { %p39_p10 = scmp.ge.s32.totalorder %s37_s6, 2  ;;  %p69_p11 = scmp.ne.s32.totalorder %s994_s27, %s990_s1 }
  0x1e   : > { %s48_s8 = sld [smem:[#allocation4 + %s780_s7]]  ;;  %p70_p12 = scmp.eq.s32.totalorder %s1006_s30, 0 }
  0x1f   : > { %s1253_s6 = smov (%p39_p10, %s37_s6), 0  ;;  %s62_s14 = sadd.s32 1, %s994_s27 }
  0x20   : > { %s781_s9 = sshll.u32 %s1253_s6, 7  ;;  %p71_p13 = por %p70_p12, %p69_p11 }
  0x21   : > { %s56_s10 = sld [smem:[#allocation4 + %s781_s9]]  ;;  %s57_s11 = ssub.s32 %s1002_s29, %s1253_s6 }
  0x22   : > { %p783_p1 = scmp.ge.s32.totalorder %s1006_s30, 2 }
  0x25   : > { %169 = sbr.rel (%p783_p1) target bundleno = 64 (0x40), region = 24 }
  0x27   : > { %s58_s12 = ssub.s32 %s48_s8, %s56_s10 }
  0x28   : > { %s59_s13 = sor.u32 %s58_s12, %s57_s11 }
  0x29   : > { %p60_p0 = scmp.eq.s32.totalorder %s59_s13, 0 }
  0x2b   : > { %s1084_s15 = scalar_select %p60_p0, %s994_s27, %s62_s14  }
  0x2c   : > { %172 = sbr.rel (!%p71_p13) target bundleno = 64 (0x40), region = 28  ;;  %s184_s16 = sld [smem:[#allocation4 + %s780_s7]] (%p71_p13) }
  0x2d   : > { %s174_s17 = sand.u32 (%p71_p13), 1, %s994_s27   ;;  %s817_s18 = sshll.u32 (%p71_p13), %s1002_s29, 5 }
  0x2e   : > { %s784_s19 = sshll.u32 (%p71_p13), %s174_s17, 6 }
  0x2f   : > { %s176_s25 = scalar_lea.vmem (%p71_p13), [#allocation5], %s784_s19 }
  0x32   : > { %s187_s20 = sadd.s32 (%p71_p13), %s817_s18, %s184_s16 }
  0x33   : > { %s788_s21 = sshll.u32 %s187_s20, 2 }
  0x34   : > { %s1092_s24 = scalar_lea.vmem %s1243_s2, %s788_s21 }
  0x35   : > { %v205_v0 = vld [vmem:[%s1092_s24] sm:$0xf]  ;;  %v207_v1 = vld [vmem:[%s1092_s24 + $0x8] sm:$0xf]  ;;  %v209_v2 = vld [vmem:[%s1092_s24 + $0x10] sm:$0xf] }
  0x36   : > { %206 = vst [vmem:[%s176_s25] sm:$0xf] %v205_v0  ;;  %208 = vst [vmem:[%s176_s25 + $0x4] sm:$0xf] %v207_v1  ;;  %v211_v3 = vld [vmem:[%s1092_s24 + $0x18] sm:$0xf] }
  0x37   : > { %210 = vst [vmem:[%s176_s25 + $0x8] sm:$0xf] %v209_v2  ;;  %v213_v4 = vld [vmem:[%s1092_s24 + $0x20] sm:$0xf]  ;;  %v215_v5 = vld [vmem:[%s1092_s24 + $0x28] sm:$0xf] }
  0x38   : > { %212 = vst [vmem:[%s176_s25 + $0xc] sm:$0xf] %v211_v3  ;;  %214 = vst [vmem:[%s176_s25 + $0x10] sm:$0xf] %v213_v4  ;;  %v217_v6 = vld [vmem:[%s1092_s24 + $0x30] sm:$0xf] }
  0x39   : > { %216 = vst [vmem:[%s176_s25 + $0x14] sm:$0xf] %v215_v5  ;;  %v219_v7 = vld [vmem:[%s1092_s24 + $0x38] sm:$0xf]  ;;  %v221_v8 = vld [vmem:[%s1092_s24 + $0x40] sm:$0xf] }
  0x3a   : > { %218 = vst [vmem:[%s176_s25 + $0x18] sm:$0xf] %v217_v6  ;;  %220 = vst [vmem:[%s176_s25 + $0x1c] sm:$0xf] %v219_v7  ;;  %v223_v9 = vld [vmem:[%s1092_s24 + $0x48] sm:$0xf] }
  0x3b   : > { %222 = vst [vmem:[%s176_s25 + $0x20] sm:$0xf] %v221_v8  ;;  %v225_v10 = vld [vmem:[%s1092_s24 + $0x50] sm:$0xf]  ;;  %v227_v11 = vld [vmem:[%s1092_s24 + $0x58] sm:$0xf] }
  0x3c   : > { %224 = vst [vmem:[%s176_s25 + $0x24] sm:$0xf] %v223_v9  ;;  %226 = vst [vmem:[%s176_s25 + $0x28] sm:$0xf] %v225_v10  ;;  %v229_v12 = vld [vmem:[%s1092_s24 + $0x60] sm:$0xf] }
  0x3d   : > { %228 = vst [vmem:[%s176_s25 + $0x2c] sm:$0xf] %v227_v11  ;;  %v231_v13 = vld [vmem:[%s1092_s24 + $0x68] sm:$0xf]  ;;  %v233_v14 = vld [vmem:[%s1092_s24 + $0x70] sm:$0xf] }
  0x3e   : > { %230 = vst [vmem:[%s176_s25 + $0x30] sm:$0xf] %v229_v12  ;;  %232 = vst [vmem:[%s176_s25 + $0x34] sm:$0xf] %v231_v13  ;;  %v235_v15 = vld [vmem:[%s1092_s24 + $0x78] sm:$0xf] }
  0x3f   : > { %234 = vst [vmem:[%s176_s25 + $0x38] sm:$0xf] %v233_v14  ;;  %236 = vst [vmem:[%s176_s25 + $0x3c] sm:$0xf] %v235_v15 }
  0x40 PF: > { %p789_p2 = scmp.ge.s32.totalorder %s1006_s30, 1  ;;  %p290_p3 = scmp.lt.s32.totalorder %s1006_s30, 3 }
  0x42   : > { %p291_p4 = pnand %p789_p2, %p290_p3 }
  0x43   : > { %s297_s26 = sand.u32 (!%p291_p4), 1, %s990_s1   ;;  %s791_s0 = sshll.u32 (!%p291_p4), %s998_s28, 4  ;;  %v1010_v16 = vmov (!%p291_p4), 0.0  }
  0x44   : > { %294 = sbr.rel (%p291_p4) target bundleno = 357 (0x165), region = 69  ;;  %s790_s7 = sshll.u32 (!%p291_p4), %s297_s26, 6 }
  0x45   : > { %p330_p5 = scmp.lt.s32.totalorder (!%p291_p4), %s791_s0, 31  ;;  %s356_s8 = sld [smem:[#allocation3 + %s998_s28]] (!%p291_p4) }
  0x46   : > { %s1136_s1 = scalar_lea.vmem (!%p291_p4), [#allocation5], %s790_s7 }
  0x4b   : > { %s1255_s0 = smov (!%p330_p5, %s791_s0), 31  ;;  %p794_p6 = scmp.le.s32.totalorder %s356_s8, 0 }
  0x4c   : > { %s792_s9 = sshll.u32 %s1255_s0, 3  ;;  %s795_s13 = sshll.u32 (!%p794_p6), %s998_s28, 7  ;;  %v934_v17 = vld [vmem:[%s1136_s1] sm:$0xff] (!%p794_p6)   ;;  %v936_v27 = vld [vmem:[%s1136_s1 + $0x8] sm:$0xff] (!%p794_p6)   ;;  %v938_v29 = vld [vmem:[%s1136_s1 + $0x10] sm:$0xff] (!%p794_p6)  }
  0x4d   : > { %s1118_s12 = scalar_lea.vmem %s1246_s5, %s792_s9  ;;  %s368_s14 = sld [smem:[#allocation4 + %s795_s13]] (!%p794_p6)  ;;  %v935_v18 = vld [vmem:[%s1136_s1 + $0x20] sm:$0xff] (!%p794_p6)   ;;  %851 = vmatprep.mubr.bf16.mxu0 (!%p794_p6), %v934_v17  ;;  %v937_v28 = vld [vmem:[%s1136_s1 + $0x28] sm:$0xff] (!%p794_p6)   ;;  %v939_v30 = vld [vmem:[%s1136_s1 + $0x30] sm:$0xff] (!%p794_p6)  }
  0x4e   : > { %340 = vst [vmem:[%s1118_s12] sm:$0xff] %v1010_v16  ;;  %341 = vst [vmem:[%s1118_s12 + $0x8] sm:$0xff] %v1010_v16  ;;  %859 = vmatprep.mubr.bf16.mxu1 (!%p794_p6), %v935_v18  ;;  %v940_v31 = vld [vmem:[%s1136_s1 + $0x18] sm:$0xff] (!%p794_p6)  }
  0x4f   : > { %342 = vst [vmem:[%s1118_s12 + $0x10] sm:$0xff] %v1010_v16  ;;  %343 = vst [vmem:[%s1118_s12 + $0x18] sm:$0xff] %v1010_v16  ;;  %360 = sbr.rel (%p794_p6) target bundleno = 344 (0x158), region = 81  ;;  %v941_v32 = vld [vmem:[%s1136_s1 + $0x38] sm:$0xff] (!%p794_p6)  }
  0x50   : > { %344 = vst [vmem:[%s1118_s12 + $0x20] sm:$0xff] %v1010_v16  ;;  %345 = vst [vmem:[%s1118_s12 + $0x28] sm:$0xff] %v1010_v16 }
  0x51   : > { %346 = vst [vmem:[%s1118_s12 + $0x30] sm:$0xff] %v1010_v16  ;;  %347 = vst [vmem:[%s1118_s12 + $0x38] sm:$0xff] %v1010_v16 }
  0x52   : > { %348 = vst [vmem:[%s1118_s12 + $0x40] sm:$0xff] %v1010_v16  ;;  %349 = vst [vmem:[%s1118_s12 + $0x48] sm:$0xff] %v1010_v16 }
  0x53   : > { %350 = vst [vmem:[%s1118_s12 + $0x50] sm:$0xff] %v1010_v16  ;;  %351 = vst [vmem:[%s1118_s12 + $0x58] sm:$0xff] %v1010_v16  ;;  %s818_s16 = sshll.u32 (!%p794_p6), %s368_s14, 6 }
  0x54   : > { %352 = vst [vmem:[%s1118_s12 + $0x60] sm:$0xff] %v1010_v16  ;;  %353 = vst [vmem:[%s1118_s12 + $0x68] sm:$0xff] %v1010_v16  ;;  %s1144_s19 = scalar_lea.vmem (!%p794_p6), %s1244_s3, %s818_s16 }
  0x55   : > { %354 = vst [vmem:[%s1118_s12 + $0x70] sm:$0xff] %v1010_v16  ;;  %355 = vst [vmem:[%s1118_s12 + $0x78] sm:$0xff] %v1010_v16  ;;  %v926_v19 = vld [vmem:[%s1144_s19] sm:$0xff] (!%p794_p6)   ;;  %v927_v20 = vld [vmem:[%s1144_s19 + $0x8] sm:$0xff] (!%p794_p6)  }
  0x56   : > { %835 = vmatprep.subr.bf16.mxu0 %v926_v19  ;;  %867 = vmatprep.subr.bf16.mxu1 %v926_v19  ;;  %v928_v21 = vld [vmem:[%s1144_s19 + $0x10] sm:$0xff]   ;;  %v929_v22 = vld [vmem:[%s1144_s19 + $0x18] sm:$0xff]   ;;  %v930_v23 = vld [vmem:[%s1144_s19 + $0x20] sm:$0xff]  }
  0x57   : > { %836 = vmatpush3.bf16.msra.mxu0 %v926_v19  ;;  %875 = vmatpush3.bf16.msra.mxu1 %v926_v19  ;;  %v931_v24 = vld [vmem:[%s1144_s19 + $0x28] sm:$0xff]   ;;  %v932_v25 = vld [vmem:[%s1144_s19 + $0x30] sm:$0xff]   ;;  %v933_v26 = vld [vmem:[%s1144_s19 + $0x38] sm:$0xff]  }
  0x58   : > { %837 = vmatprep.subr.bf16.mxu0 %v927_v20  ;;  %868 = vmatprep.subr.bf16.mxu1 %v927_v20  ;;  %v390_v33 = vld [vmem:[%s1118_s12 + $0x10] sm:$0xff]  ;;  %v388_v35 = vld [vmem:[%s1118_s12] sm:$0xff]  ;;  %v391_v39 = vld [vmem:[%s1118_s12 + $0x18] sm:$0xff] }
  0x59   : > { %v396_v36 = vld [vmem:[%s1118_s12 + $0x40] sm:$0xff]  ;;  %v389_v45 = vld [vmem:[%s1118_s12 + $0x8] sm:$0xff]  ;;  %v394_v57 = vld [vmem:[%s1118_s12 + $0x30] sm:$0xff] }
  0x5a   : > { %v398_v34 = vld [vmem:[%s1118_s12 + $0x50] sm:$0xff]  ;;  %v399_v40 = vld [vmem:[%s1118_s12 + $0x58] sm:$0xff]  ;;  %v397_v46 = vld [vmem:[%s1118_s12 + $0x48] sm:$0xff] }
  0x5b   : > { %838 = vmatpush3.bf16.msra.mxu0 %v927_v20  ;;  %876 = vmatpush3.bf16.msra.mxu1 %v927_v20  ;;  %v392_v59 = vld [vmem:[%s1118_s12 + $0x20] sm:$0xff]  ;;  %v395_v63 = vld [vmem:[%s1118_s12 + $0x38] sm:$0xff]  ;;  %v393_v5 = vld [vmem:[%s1118_s12 + $0x28] sm:$0xff] }
  0x5c   : > { %839 = vmatprep.subr.bf16.mxu0 %v928_v21  ;;  %869 = vmatprep.subr.bf16.mxu1 %v928_v21  ;;  %v402_v58 = vld [vmem:[%s1118_s12 + $0x70] sm:$0xff]  ;;  %v400_v60 = vld [vmem:[%s1118_s12 + $0x60] sm:$0xff]  ;;  %v403_v0 = vld [vmem:[%s1118_s12 + $0x78] sm:$0xff] }
  0x5d   : > { %v401_v6 = vld [vmem:[%s1118_s12 + $0x68] sm:$0xff] }
  0x5f   : > { %840 = vmatpush3.bf16.msra.mxu0 %v928_v21  ;;  %877 = vmatpush3.bf16.msra.mxu1 %v928_v21 }
  0x60   : > { %841 = vmatprep.subr.bf16.mxu0 %v929_v22  ;;  %870 = vmatprep.subr.bf16.mxu1 %v929_v22 }
  0x63   : > { %842 = vmatpush3.bf16.msra.mxu0 %v929_v22  ;;  %878 = vmatpush3.bf16.msra.mxu1 %v929_v22 }
  0x64   : > { %843 = vmatprep.subr.bf16.mxu0 %v930_v23  ;;  %871 = vmatprep.subr.bf16.mxu1 %v930_v23 }
  0x67   : > { %844 = vmatpush3.bf16.msra.mxu0 %v930_v23  ;;  %879 = vmatpush3.bf16.msra.mxu1 %v930_v23 }
  0x68   : > { %845 = vmatprep.subr.bf16.mxu0 %v931_v24  ;;  %872 = vmatprep.subr.bf16.mxu1 %v931_v24 }
  0x6b   : > { %846 = vmatpush3.bf16.msra.mxu0 %v931_v24  ;;  %880 = vmatpush3.bf16.msra.mxu1 %v931_v24 }
  0x6c   : > { %847 = vmatprep.subr.bf16.mxu0 %v932_v25  ;;  %873 = vmatprep.subr.bf16.mxu1 %v932_v25 }
  0x6f   : > { %848 = vmatpush3.bf16.msra.mxu0 %v932_v25  ;;  %881 = vmatpush3.bf16.msra.mxu1 %v932_v25 }
  0x70   : > { %849 = vmatprep.subr.bf16.mxu0 %v933_v26  ;;  %874 = vmatprep.subr.bf16.mxu1 %v933_v26 }
  0x73   : > { %850 = vmatpush3.bf16.msra.mxu0 %v933_v26  ;;  %882 = vmatpush3.bf16.msra.mxu1 %v933_v26 }
  0x76   : > { %852 = vmatmul.mubr.bf16.vlgmr.msra.gmra.mrb[0].mxu0 %v936_v27  ;;  %860 = vmatmul.mubr.bf16.vlgmr.msra.gmra.mrb[0].mxu1 %v937_v28 }
  0x77   : > { %855 = vmatprep.mubr.bf16.mxu0 %v938_v29  ;;  %863 = vmatprep.mubr.bf16.mxu1 %v939_v30 }
  0x7e   : > { %856 = vmatmul.mubr.bf16.gmra.mrb[4].mxu0 %v940_v31  ;;  %864 = vmatmul.mubr.bf16.gmra.mrb[4].mxu1 %v941_v32 }
 0x149   : > { %v853_v37 = vpop.f32.mrb[0].mxu0  ;;  %v861_v38 = vpop.f32.mrb[0].mxu1 }
 0x14a   : > { %v615_v41 = vadd.f32 %v853_v37, %v390_v33  ;;  %v623_v42 = vadd.f32 %v861_v38, %v398_v34  ;;  %v550_v43 = vpop.f32.mrb[1].mxu0  ;;  %v582_v44 = vpop.f32.mrb[1].mxu1 }
 0x14b   : > { %v613_v47 = vadd.f32 %v550_v43, %v388_v35  ;;  %v621_v48 = vadd.f32 %v582_v44, %v396_v36  ;;  %v854_v49 = vpop.f32.mrb[2].mxu0  ;;  %v862_v50 = vpop.f32.mrb[2].mxu1 }
 0x14c   : > { %631 = vst [vmem:[%s1118_s12 + $0x10] sm:$0xff] %v615_v41  ;;  %639 = vst [vmem:[%s1118_s12 + $0x50] sm:$0xff] %v623_v42  ;;  %v616_v51 = vadd.f32 %v854_v49, %v391_v39  ;;  %v624_v52 = vadd.f32 %v862_v50, %v399_v40  ;;  %v553_v53 = vpop.f32.mrb[3].mxu0  ;;  %v585_v54 = vpop.f32.mrb[3].mxu1 }
 0x14d   : > { %629 = vst [vmem:[%s1118_s12] sm:$0xff] %v613_v47  ;;  %637 = vst [vmem:[%s1118_s12 + $0x40] sm:$0xff] %v621_v48  ;;  %v614_v55 = vadd.f32 %v553_v53, %v389_v45  ;;  %v622_v56 = vadd.f32 %v585_v54, %v397_v46 }
 0x14e   : > { %632 = vst [vmem:[%s1118_s12 + $0x18] sm:$0xff] %v616_v51  ;;  %640 = vst [vmem:[%s1118_s12 + $0x58] sm:$0xff] %v624_v52 }
 0x14f   : > { %630 = vst [vmem:[%s1118_s12 + $0x8] sm:$0xff] %v614_v55  ;;  %638 = vst [vmem:[%s1118_s12 + $0x48] sm:$0xff] %v622_v56 }
 0x151   : > { %v857_v61 = vpop.f32.mrb[4].mxu0  ;;  %v865_v62 = vpop.f32.mrb[4].mxu1 }
 0x152   : > { %v619_v1 = vadd.f32 %v857_v61, %v394_v57  ;;  %v627_v2 = vadd.f32 %v865_v62, %v402_v58  ;;  %v566_v3 = vpop.f32.mrb[5].mxu0  ;;  %v598_v4 = vpop.f32.mrb[5].mxu1 }
 0x153   : > { %v617_v7 = vadd.f32 %v566_v3, %v392_v59  ;;  %v625_v8 = vadd.f32 %v598_v4, %v400_v60  ;;  %v858_v9 = vpop.f32.mrb[6].mxu0  ;;  %v866_v10 = vpop.f32.mrb[6].mxu1 }
 0x154   : > { %635 = vst [vmem:[%s1118_s12 + $0x30] sm:$0xff] %v619_v1  ;;  %643 = vst [vmem:[%s1118_s12 + $0x70] sm:$0xff] %v627_v2  ;;  %v620_v11 = vadd.f32 %v858_v9, %v395_v63  ;;  %v628_v12 = vadd.f32 %v866_v10, %v403_v0  ;;  %v569_v13 = vpop.f32.mrb[7].mxu0  ;;  %v601_v14 = vpop.f32.mrb[7].mxu1 }
 0x155   : > { %633 = vst [vmem:[%s1118_s12 + $0x20] sm:$0xff] %v617_v7  ;;  %641 = vst [vmem:[%s1118_s12 + $0x60] sm:$0xff] %v625_v8  ;;  %v618_v15 = vadd.f32 %v569_v13, %v393_v5  ;;  %v626_v16 = vadd.f32 %v601_v14, %v401_v6 }
 0x156   : > { %636 = vst [vmem:[%s1118_s12 + $0x38] sm:$0xff] %v620_v11  ;;  %644 = vst [vmem:[%s1118_s12 + $0x78] sm:$0xff] %v628_v12 }
 0x157   : > { %634 = vst [vmem:[%s1118_s12 + $0x28] sm:$0xff] %v618_v15  ;;  %642 = vst [vmem:[%s1118_s12 + $0x68] sm:$0xff] %v626_v16 }
 0x158 PF: > { %v648_v17 = vld [vmem:[%s1118_s12] sm:$0xff]  ;;  %v649_v19 = vld [vmem:[%s1118_s12 + $0x8] sm:$0xff]  ;;  %v650_v22 = vld [vmem:[%s1118_s12 + $0x10] sm:$0xff] }
 0x159   : > { %v814_v18 = vld [vmem:[%s1245_s4] ss:$0 sm:$0xff]  ;;  %v651_v23 = vld [vmem:[%s1118_s12 + $0x18] sm:$0xff] }
 0x15a   : > { %v671_v20 = vadd.f32 %v814_v18, %v648_v17  ;;  %v672_v21 = vadd.f32 %v814_v18, %v649_v19  ;;  %v673_v25 = vadd.f32 %v814_v18, %v650_v22  ;;  %v674_v26 = vadd.f32 %v814_v18, %v651_v23 }
 0x15b   : > { %v654_v29 = vld [vmem:[%s1118_s12 + $0x30] sm:$0xff]  ;;  %v656_v34 = vld [vmem:[%s1118_s12 + $0x40] sm:$0xff]  ;;  %v657_v35 = vld [vmem:[%s1118_s12 + $0x48] sm:$0xff] }
 0x15c   : > { %v652_v24 = vld [vmem:[%s1118_s12 + $0x20] sm:$0xff]  ;;  %687 = vst [vmem:[%s1118_s12] sm:$0xff] %v671_v20  ;;  %688 = vst [vmem:[%s1118_s12 + $0x8] sm:$0xff] %v672_v21  ;;  %v677_v32 = vadd.f32 %v814_v18, %v654_v29  ;;  %v658_v36 = vld [vmem:[%s1118_s12 + $0x50] sm:$0xff]  ;;  %v679_v37 = vadd.f32 %v814_v18, %v656_v34  ;;  %v680_v38 = vadd.f32 %v814_v18, %v657_v35 }
 0x15d   : > { %v675_v27 = vadd.f32 %v814_v18, %v652_v24  ;;  %v655_v30 = vld [vmem:[%s1118_s12 + $0x38] sm:$0xff]  ;;  %689 = vst [vmem:[%s1118_s12 + $0x10] sm:$0xff] %v673_v25  ;;  %690 = vst [vmem:[%s1118_s12 + $0x18] sm:$0xff] %v674_v26  ;;  %v681_v39 = vadd.f32 %v814_v18, %v658_v36  ;;  %v660_v41 = vld [vmem:[%s1118_s12 + $0x60] sm:$0xff] }
 0x15e   : > { %v653_v28 = vld [vmem:[%s1118_s12 + $0x28] sm:$0xff]  ;;  %v678_v33 = vadd.f32 %v814_v18, %v655_v30  ;;  %v659_v40 = vld [vmem:[%s1118_s12 + $0x58] sm:$0xff]  ;;  %693 = vst [vmem:[%s1118_s12 + $0x30] sm:$0xff] %v677_v32  ;;  %v683_v44 = vadd.f32 %v814_v18, %v660_v41  ;;  %v662_v46 = vld [vmem:[%s1118_s12 + $0x70] sm:$0xff] }
 0x15f   : > { %v676_v31 = vadd.f32 %v814_v18, %v653_v28  ;;  %691 = vst [vmem:[%s1118_s12 + $0x20] sm:$0xff] %v675_v27  ;;  %v661_v42 = vld [vmem:[%s1118_s12 + $0x68] sm:$0xff]  ;;  %v682_v43 = vadd.f32 %v814_v18, %v659_v40  ;;  %v663_v47 = vld [vmem:[%s1118_s12 + $0x78] sm:$0xff]  ;;  %695 = vst [vmem:[%s1118_s12 + $0x40] sm:$0xff] %v679_v37  ;;  %v685_v48 = vadd.f32 %v814_v18, %v662_v46 }
 0x160   : > { %694 = vst [vmem:[%s1118_s12 + $0x38] sm:$0xff] %v678_v33  ;;  %v684_v45 = vadd.f32 %v814_v18, %v661_v42  ;;  %696 = vst [vmem:[%s1118_s12 + $0x48] sm:$0xff] %v680_v38  ;;  %v686_v49 = vadd.f32 %v814_v18, %v663_v47 }
 0x161   : > { %692 = vst [vmem:[%s1118_s12 + $0x28] sm:$0xff] %v676_v31  ;;  %697 = vst [vmem:[%s1118_s12 + $0x50] sm:$0xff] %v681_v39 }
 0x162   : > { %698 = vst [vmem:[%s1118_s12 + $0x58] sm:$0xff] %v682_v43  ;;  %699 = vst [vmem:[%s1118_s12 + $0x60] sm:$0xff] %v683_v44 }
 0x163   : > { %700 = vst [vmem:[%s1118_s12 + $0x68] sm:$0xff] %v684_v45  ;;  %701 = vst [vmem:[%s1118_s12 + $0x70] sm:$0xff] %v685_v48 }
 0x164   : > { %702 = vst [vmem:[%s1118_s12 + $0x78] sm:$0xff] %v686_v49 }
 0x165 PF: > { %s25_s30 = sadd.s32 1, %s1006_s30   ;;  %s1248_s1 = smov %s994_s27 }
 0x166   : > { %p22_p7 = scmp.ge.s32.totalorder %s25_s30, 4   ;;  %s1249_s27 = smov %s1084_s15 }
 0x167   : > { %s1250_s28 = smov %s1002_s29  ;;  %s1251_s29 = smov %s1253_s6 }
 0x168   :  { %24 = sbr.rel (!%p22_p7) target bundleno = 28 (0x1c), region = 121 }

</bundles_post_ra>
